<compile_context>
chip_gen: v6e
topology: v6e:2x2x1
jax: 0.10.0
libtpu: 0.0.40
codegen_flags: <defaults>
</compile_context>

<pallas_src>
import functools

import jax
import jax.numpy as jnp
from jax.experimental import pallas as pl
from jax.experimental.pallas import tpu as pltpu

EPS = 1e-5          # PyTorch BatchNorm default
K = 5               # conv kernel size
PAD = K // 2
LANE = 128
C2_PAD = 64         # conv2 out-channels padded 50 -> 64 (lane-dense epilogue)
FC_PAD = 512        # fc1 width padded 500 -> 512

_VMEM_LIMIT = 48 * 1024 * 1024   # < 64 MiB physical on v7x, < 128 MiB on v5e/v6e
_VMEM_BUDGET = 36 * 1024 * 1024  # what the batch tile is budgeted against
_TILE_CAP = 256                  # upper bound on samples per grid step


# ---------------------------------------------------------------------------
# Init-time weight transforms
# ---------------------------------------------------------------------------
def _build_toeplitz(w_pt, bias, bn_scale, bn_shift, W, cout_pad):
    """Fused conv weight + additive shift for the in-kernel layout.

    Folds: the W-direction im2col, the 'same' W zero padding, the BatchNorm
    scale (into the weight columns) and the conv bias + BatchNorm shift (into
    the returned additive shift).  Output channels are zero-padded to cout_pad.

    Returns
      T     : (K*Cin*W, cout_pad*W) -- lhs lanes ordered (kh, ci, w_in);
              output columns parity-major (p, co, w2) with w_out = 2*w2 + p so
              the 2x2 W-pool is a max of contiguous halves.
      shift : (1, cout_pad*W) in the same column order.
    """
    Cout, Cin, k, _ = w_pt.shape
    w_s = w_pt * bn_scale[:, None, None, None]
    shift_c = bn_shift + bn_scale * bias
    if cout_pad > Cout:
        w_s = jnp.pad(w_s, ((0, cout_pad - Cout), (0, 0), (0, 0), (0, 0)))
        shift_c = jnp.pad(shift_c, (0, cout_pad - Cout))
    pad = k // 2
    w_in = jnp.arange(W)[:, None]
    w_out = jnp.arange(W)[None, :]
    kw = w_in - w_out + pad                        # (W_in, W_out)
    valid = (kw >= 0) & (kw < k)
    g = w_s[:, :, :, jnp.clip(kw, 0, k - 1)]       # (Coutp, Cin, K, W_in, W_out)
    g = jnp.where(valid[None, None, None], g, 0.0)
    g = jnp.transpose(g, (2, 1, 3, 0, 4))          # (K, Cin, W_in, Coutp, W_out)
    g = g.reshape(k, Cin, W, cout_pad, W // 2, 2)  # w_out -> (w2, parity)
    g = jnp.transpose(g, (0, 1, 2, 5, 3, 4))       # (K, Cin, W_in, p, Coutp, W2)
    T = g.reshape(k * Cin * W, cout_pad * W)
    shift = jnp.tile(jnp.repeat(shift_c, W // 2), 2).reshape(1, -1)
    return T, shift


# ---------------------------------------------------------------------------
# Fused LeNet kernel
# ---------------------------------------------------------------------------
def _fill_im2col(dst_ref, src_slice, n_rows, width, tile_b):
    """dst[:, h, kh*width:(kh+1)*width] = padded_src[:, h + kh, :] (bf16).

    Only the (at most 2*PAD) zero-pad rows of each kh strip are written with
    zeros; the interior comes straight from src_slice.
    """
    for kh in range(K):
        lo = max(0, PAD - kh)               # first valid output row
        hi = n_rows - max(0, kh - PAD)      # one past the last valid row
        c0 = kh * width
        if lo > 0:
            dst_ref[:, :lo, c0:c0 + width] = jnp.zeros(
                (tile_b, lo, width), jnp.bfloat16)
        if hi < n_rows:
            dst_ref[:, hi:, c0:c0 + width] = jnp.zeros(
                (tile_b, n_rows - hi, width), jnp.bfloat16)
        dst_ref[:, lo:hi, c0:c0 + width] = src_slice(lo + kh - PAD,
                                                     hi + kh - PAD)


def _make_lenet_kernel(tile_b, H, W, Cin, C1, C2p):
    CW0 = Cin * W                  # conv1 input lanes
    CW1 = C1 * W                   # conv1 output lanes (pre W-pool)
    H2, W2 = H // 2, W // 2
    CW1p = C1 * W2                 # conv1 pooled == conv2 input lanes
    CW2 = C2p * W2                 # conv2 output lanes (pre W-pool)
    H3, W3 = H2 // 2, W2 // 2
    CW2p = C2p * W3
    n_feat = H3 * CW2p

    def kernel(x_ref, t1_ref, b1_ref, t2_ref, b2_ref,
               w1_ref, ft_ref, w2_ref, lb_ref,
               o_ref, im1_ref, im2_ref):
        # -------- conv1 (single MXU matmul) + shift + ReLU + maxpool(2,2) ---
        _fill_im2col(im1_ref,
                     lambda a, b: x_ref[:, a:b, :].astype(jnp.bfloat16),
                     H, CW0, tile_b)
        a1 = jnp.dot(im1_ref[...].reshape(tile_b * H, K * CW0), t1_ref[...],
                     preferred_element_type=jnp.float32)
        y = jnp.maximum(a1 + b1_ref[...], 0.0)
        y = jnp.maximum(y[:, :CW1 // 2], y[:, CW1 // 2:])      # pool along W
        y = y.reshape(tile_b * H2, 2, CW1p)
        y = jnp.maximum(y[:, 0, :], y[:, 1, :])                # pool along H

        # -------- conv2 (single MXU matmul) + shift + ReLU + maxpool(2,2) ---
        y_bf = y.reshape(tile_b, H2, CW1p).astype(jnp.bfloat16)  # cast once
        _fill_im2col(im2_ref, lambda a, b: y_bf[:, a:b, :], H2, CW1p, tile_b)
        a2 = jnp.dot(im2_ref[...].reshape(tile_b * H2, K * CW1p), t2_ref[...],
                     preferred_element_type=jnp.float32)
        y2 = jnp.maximum(a2 + b2_ref[...], 0.0)
        y2 = jnp.maximum(y2[:, :CW2 // 2], y2[:, CW2 // 2:])   # pool along W
        y2 = y2.reshape(tile_b * H3, 2, CW2p)
        y2 = jnp.maximum(y2[:, 0, :], y2[:, 1, :])             # pool along H

        # -------- Linear(n_feat, 512) + BN1d shift + Linear(512, out_pad) ---
        feat = y2.reshape(tile_b, n_feat).astype(jnp.bfloat16)
        h = jnp.dot(feat, w1_ref[...],
                    preferred_element_type=jnp.float32) + ft_ref[...]
        out = jnp.dot(h.astype(jnp.bfloat16), w2_ref[...],
                      preferred_element_type=jnp.float32) + lb_ref[...]
        o_ref[...] = out.astype(o_ref.dtype)

    return kernel


# ---------------------------------------------------------------------------
# Batch-tile planning (VMEM-budgeted, generation aware)
# ---------------------------------------------------------------------------
def _per_sample_vmem_bytes(H, W, Cin, C1, C2p):
    H2, W2, H3, W3 = H // 2, W // 2, H // 4, W // 4
    CW0, CW1, CW1p = Cin * W, C1 * W, C1 * W2
    CW2, CW2p = C2p * W2, C2p * W3
    b = 2 * H * CW0 * 4            # input block (double buffered)
    b += H * K * CW0 * 2           # im2col 1 (bf16 scratch)
    b += H * CW1 * 4               # conv1 output (f32 value)
    b += H2 * CW1p * 4             # pooled conv1
    b += H2 * K * CW1p * 2         # im2col 2 (bf16 scratch)
    b += H2 * CW2 * 4              # conv2 output
    b += H3 * CW2p * 6             # pooled conv2 (f32) + feat (bf16)
    return int(b * 1.5)            # headroom for compiler temporaries


def _choose_tile(N, H, W, Cin, C1, C2p, weight_bytes):
    budget = _VMEM_BUDGET - 2 * weight_bytes      # weights double-buffered
    cap = int(max(8, min(_TILE_CAP,
                         budget // _per_sample_vmem_bytes(H, W, Cin, C1, C2p))))
    try:                                           # 2 TensorCores on v7x
        kind = jax.devices()[0].device_kind.lower()
    except Exception:
        kind = ""
    min_steps = 2 if ("v7" in kind or "7x" in kind) else 1
    tile_b = int(max(1, min(cap, pl.cdiv(N, min_steps))))
    return tile_b, int(pl.cdiv(N, tile_b))


def _full_spec(arr):
    nd = arr.ndim
    return pl.BlockSpec(arr.shape, lambda i, nd=nd: (0,) * nd)


@functools.partial(jax.jit, static_argnames=("out_dim",))
def lenet_forward(x_nchw, params, out_dim=10):
    N, Cin, H, W = x_nchw.shape
    assert H % 4 == 0 and W % 4 == 0
    t1, t2 = params["t1"], params["t2"]
    C1 = t1.shape[1] // W
    C2p = t2.shape[1] // (W // 2)
    out_pad = params["last_w"].shape[1]
    assert t2.shape[0] == K * C1 * (W // 2)
    assert params["fc1_w"].shape[0] == (H // 4) * C2p * (W // 4)

    kernel_arrays = (t1, params["b1"], t2, params["b2"],
                     params["fc1_w"], params["fc1_t"],
                     params["last_w"], params["last_b"])
    weight_bytes = sum(int(a.size) * a.dtype.itemsize for a in kernel_arrays)
    tile_b, num_tiles = _choose_tile(N, H, W, Cin, C1, C2p, weight_bytes)
    n_pad = num_tiles * tile_b

    # NCHW -> (num_tiles, tile_b, H, Cin*W); free reshape when Cin == 1.
    x = jnp.transpose(x_nchw.astype(jnp.float32), (0, 2, 1, 3))
    x = x.reshape(N, H, Cin * W)
    if n_pad != N:
        x = jnp.pad(x, ((0, n_pad - N), (0, 0), (0, 0)))
    x = x.reshape(num_tiles, tile_b, H, Cin * W)

    kernel = _make_lenet_kernel(tile_b, H, W, Cin, C1, C2p)
    out = pl.pallas_call(
        kernel,
        out_shape=jax.ShapeDtypeStruct((num_tiles, tile_b, out_pad),
                                       jnp.float32),
        grid=(num_tiles,),
        in_specs=[
            pl.BlockSpec((None, tile_b, H, Cin * W), lambda i: (i, 0, 0, 0)),
            _full_spec(t1), _full_spec(params["b1"]),
            _full_spec(t2), _full_spec(params["b2"]),
            _full_spec(params["fc1_w"]), _full_spec(params["fc1_t"]),
            _full_spec(params["last_w"]), _full_spec(params["last_b"]),
        ],
        out_specs=pl.BlockSpec((None, tile_b, out_pad), lambda i: (i, 0, 0)),
        scratch_shapes=[
            pltpu.VMEM((tile_b, H, K * Cin * W), jnp.bfloat16),
            pltpu.VMEM((tile_b, H // 2, K * C1 * (W // 2)), jnp.bfloat16),
        ],
        compiler_params=pltpu.CompilerParams(
            dimension_semantics=("parallel",),
            vmem_limit_bytes=_VMEM_LIMIT),
    )(x, t1, params["b1"], t2, params["b2"],
      params["fc1_w"], params["fc1_t"], params["last_w"], params["last_b"])
    return out.reshape(n_pad, out_pad)[:N, :out_dim]


# ---------------------------------------------------------------------------
# Parameters (deterministic synthetic init) + pure-JAX reference
# ---------------------------------------------------------------------------
def init_params(key, out_dim=10, in_channel=1, img_sz=16):
    assert img_sz % 4 == 0
    fs = img_sz // 4
    n_feat = 50 * fs * fs
    W1, W2 = img_sz, img_sz // 2
    ks = jax.random.split(key, 21)

    def bn(kg, kb, km, kv, c):
        gamma = 1.0 + 0.1 * jax.random.normal(kg, (c,), jnp.float32)
        beta = 0.1 * jax.random.normal(kb, (c,), jnp.float32)
        mean = 0.1 * jax.random.normal(km, (c,), jnp.float32)
        var = 1.0 + 0.1 * jnp.abs(jax.random.normal(kv, (c,), jnp.float32))
        scale = gamma / jnp.sqrt(var + EPS)
        shift = beta - mean * scale
        return scale, shift

    # PyTorch-layout parameters (source of truth for the reference check).
    w1 = 0.1 * jax.random.normal(ks[0], (20, in_channel, K, K), jnp.float32)
    b1 = 0.1 * jax.random.normal(ks[1], (20,), jnp.float32)
    c1_s, c1_t = bn(ks[2], ks[3], ks[4], ks[5], 20)
    w2 = 0.05 * jax.random.normal(ks[6], (50, 20, K, K), jnp.float32)
    b2 = 0.1 * jax.random.normal(ks[7], (50,), jnp.float32)
    c2_s, c2_t = bn(ks[8], ks[9], ks[10], ks[11], 50)
    fc1_w = 0.05 * jax.random.normal(ks[12], (n_feat, 500), jnp.float32)
    fc1_b = 0.1 * jax.random.normal(ks[13], (500,), jnp.float32)
    f_s, f_t = bn(ks[14], ks[15], ks[16], ks[17], 500)
    last_w = 0.05 * jax.random.normal(ks[18], (500, out_dim), jnp.float32)
    last_b = 0.1 * jax.random.normal(ks[19], (out_dim,), jnp.float32)
    t_rev = 0.1 * jax.random.normal(ks[20], (2, 2), jnp.float32)

    ref = dict(w1=w1, b1=b1, s1=c1_s, t1=c1_t, w2=w2, b2=b2, s2=c2_s, t2=c2_t,
               fc1_w=fc1_w, fc1_b=fc1_b, fc1_s=f_s, fc1_t=f_t,
               last_w=last_w, last_b=last_b)

    # ---- kernel-ready parameters -------------------------------------------
    out_pad = LANE * pl.cdiv(out_dim, LANE)

    # Conv Toeplitz weights: BN scale + conv bias folded; conv2 channels
    # zero-padded to C2_PAD for lane-dense epilogues.
    t1k, sh1 = _build_toeplitz(w1, b1, c1_s, c1_t, W1, cout_pad=20)
    t2k, sh2 = _build_toeplitz(w2, b2, c2_s, c2_t, W2, cout_pad=C2_PAD)

    # fc1: fold BN1d scale into the columns and fc1 bias into the shift; map
    # the rows to the kernel's (h, c, w) feature order including the padded
    # channels; pad the output width 500 -> FC_PAD.
    fc1_scaled = fc1_w * f_s[None, :]
    hh, cc, ww = jnp.meshgrid(jnp.arange(fs), jnp.arange(C2_PAD),
                              jnp.arange(fs), indexing="ij")
    src = (cc * (fs * fs) + hh * fs + ww).reshape(-1)
    valid = (cc < 50).reshape(-1)
    fc1_k = jnp.where(valid[:, None],
                      fc1_scaled[jnp.where(valid, src, 0), :], 0.0)
    fc1_k = jnp.pad(fc1_k, ((0, 0), (0, FC_PAD - 500)))
    fc1_shift = jnp.pad(f_t + f_s * fc1_b, (0, FC_PAD - 500)).reshape(1, -1)

    # Classifier padded to FC_PAD contraction rows and 128 output lanes.
    last_wk = jnp.pad(last_w, ((0, FC_PAD - 500), (0, out_pad - out_dim)))
    last_bk = jnp.pad(last_b, (0, out_pad - out_dim)).reshape(1, -1)

    p = {
        "t1": t1k.astype(jnp.bfloat16), "b1": sh1,
        "t2": t2k.astype(jnp.bfloat16), "b2": sh2,
        "fc1_w": fc1_k.astype(jnp.bfloat16), "fc1_t": fc1_shift,
        "last_w": last_wk.astype(jnp.bfloat16), "last_b": last_bk,
        # TODO(synk): T_revision (Linear(2,2,bias=False)) is only returned on
        # the revision=True path of the PyTorch module; kept here, unused.
        "T_revision_w": t_rev,
    }
    return p, ref


def reference_forward(x_nchw, rp):
    """Pure-JAX (XLA) LeNet forward in PyTorch layout, inference-mode BN."""
    def conv_bn_relu_pool(x, w, b, s, t):
        y = jax.lax.conv_general_dilated(
            x, w, window_strides=(1, 1), padding="SAME",
            dimension_numbers=("NCHW", "OIHW", "NCHW"))
        y = y + b[None, :, None, None]
        y = y * s[None, :, None, None] + t[None, :, None, None]
        y = jnp.maximum(y, 0.0)
        return jax.lax.reduce_window(y, -jnp.inf, jax.lax.max,
                                     (1, 1, 2, 2), (1, 1, 2, 2), "VALID")

    y = conv_bn_relu_pool(x_nchw, rp["w1"], rp["b1"], rp["s1"], rp["t1"])
    y = conv_bn_relu_pool(y, rp["w2"], rp["b2"], rp["s2"], rp["t2"])
    feat = y.reshape(y.shape[0], -1)                 # PyTorch view(-1, n_feat)
    h = feat @ rp["fc1_w"] + rp["fc1_b"]
    h = h * rp["fc1_s"] + rp["fc1_t"]
    return h @ rp["last_w"] + rp["last_b"]


if __name__ == "__main__":
    key = jax.random.PRNGKey(0)
    k_param, k_x = jax.random.split(key)

    batch, in_channel, img_sz, out_dim = 2, 1, 16, 10
    params, ref_params = init_params(k_param, out_dim=out_dim,
                                     in_channel=in_channel, img_sz=img_sz)
    x = jax.random.normal(k_x, (batch, in_channel, img_sz, img_sz),
                          jnp.float32)

    out = jax.block_until_ready(lenet_forward(x, params, out_dim=out_dim))

    assert out.shape == (batch, out_dim), out.shape
    assert bool(jnp.all(jnp.isfinite(out)))

    # Correctness vs pure-JAX reference (loose tol: bf16 matmul operands).
    ref_out = reference_forward(x, ref_params)
    max_err = float(jnp.max(jnp.abs(out - ref_out)))
    assert max_err < 0.15, f"mismatch vs reference: {max_err}"

    print("KERNEL_OK")
</pallas_src>

<mosaic_0001>
module attributes {stable_mosaic.version = 11 : i64} {
  func.func @kernel(%arg0: i32, %arg1: memref<1x2x16x16xf32, #tpu.memory_space<vmem>>, %arg2: memref<80x320xbf16, #tpu.memory_space<vmem>>, %arg3: memref<1x320xf32, #tpu.memory_space<vmem>>, %arg4: memref<800x512xbf16, #tpu.memory_space<vmem>>, %arg5: memref<1x512xf32, #tpu.memory_space<vmem>>, %arg6: memref<1024x512xbf16, #tpu.memory_space<vmem>>, %arg7: memref<1x512xf32, #tpu.memory_space<vmem>>, %arg8: memref<512x128xbf16, #tpu.memory_space<vmem>>, %arg9: memref<1x128xf32, #tpu.memory_space<vmem>>, %arg10: memref<1x2x128xf32, #tpu.memory_space<vmem>>, %arg11: memref<2x16x80xbf16, #tpu.memory_space<vmem>>, %arg12: memref<2x8x800xbf16, #tpu.memory_space<vmem>>) attributes {dimension_semantics = [#tpu.dimension_semantics<parallel>], iteration_bounds = array<i64: 1>, scalar_prefetch = 0 : i64, scratch_operands = 2 : i64, tpu.core_type = #tpu.core_type<tc>, window_params = [{transform_indices = @transform_0, window_bounds = array<i64: 1, 2, 16, 16>}, {pipeline_mode = #tpu.pipeline_mode<synchronous>, transform_indices = @transform_1, window_bounds = array<i64: 80, 320>}, {pipeline_mode = #tpu.pipeline_mode<synchronous>, transform_indices = @transform_2, window_bounds = array<i64: 1, 320>}, {pipeline_mode = #tpu.pipeline_mode<synchronous>, transform_indices = @transform_3, window_bounds = array<i64: 800, 512>}, {pipeline_mode = #tpu.pipeline_mode<synchronous>, transform_indices = @transform_4, window_bounds = array<i64: 1, 512>}, {pipeline_mode = #tpu.pipeline_mode<synchronous>, transform_indices = @transform_5, window_bounds = array<i64: 1024, 512>}, {pipeline_mode = #tpu.pipeline_mode<synchronous>, transform_indices = @transform_6, window_bounds = array<i64: 1, 512>}, {pipeline_mode = #tpu.pipeline_mode<synchronous>, transform_indices = @transform_7, window_bounds = array<i64: 512, 128>}, {pipeline_mode = #tpu.pipeline_mode<synchronous>, transform_indices = @transform_8, window_bounds = array<i64: 1, 128>}, {transform_indices = @transform_9, window_bounds = array<i64: 1, 2, 128>}]} {
    %cst = arith.constant 0.000000e+00 : bf16
    %0 = vector.broadcast %cst : bf16 to vector<2x2x16xbf16>
    %c0 = arith.constant 0 : index
    %c0_0 = arith.constant 0 : index
    %c0_1 = arith.constant 0 : index
    %1 = vector.load %arg11[%c0, %c0_0, %c0_1] : memref<2x16x80xbf16, #tpu.memory_space<vmem>>, vector<2x2x16xbf16>
    tpu.vector_store %arg11[%c0, %c0_0, %c0_1], %0 {strides = array<i32>} : memref<2x16x80xbf16, #tpu.memory_space<vmem>>, vector<2x2x16xbf16>,
    %c0_2 = arith.constant 0 : index
    %c0_3 = arith.constant 0 : index
    %c0_4 = arith.constant 0 : index
    %c0_5 = arith.constant 0 : index
    %2 = vector.load %arg1[%c0_2, %c0_3, %c0_4, %c0_5] : memref<1x2x16x16xf32, #tpu.memory_space<vmem>>, vector<1x2x14x16xf32>
    %3 = vector.shape_cast %2 : vector<1x2x14x16xf32> to vector<2x14x16xf32>
    %4 = arith.truncf %3 : vector<2x14x16xf32> to vector<2x14x16xbf16>
    %c0_6 = arith.constant 0 : index
    %c2 = arith.constant 2 : index
    %c0_7 = arith.constant 0 : index
    %5 = vector.load %arg11[%c0_6, %c2, %c0_7] : memref<2x16x80xbf16, #tpu.memory_space<vmem>>, vector<2x14x16xbf16>
    tpu.vector_store %arg11[%c0_6, %c2, %c0_7], %4 {strides = array<i32>} : memref<2x16x80xbf16, #tpu.memory_space<vmem>>, vector<2x14x16xbf16>,
    %cst_8 = arith.constant 0.000000e+00 : bf16
    %6 = vector.broadcast %cst_8 : bf16 to vector<2x1x16xbf16>
    %c0_9 = arith.constant 0 : index
    %c0_10 = arith.constant 0 : index
    %c16 = arith.constant 16 : index
    %7 = vector.load %arg11[%c0_9, %c0_10, %c16] : memref<2x16x80xbf16, #tpu.memory_space<vmem>>, vector<2x1x16xbf16>
    tpu.vector_store %arg11[%c0_9, %c0_10, %c16], %6 {strides = array<i32>} : memref<2x16x80xbf16, #tpu.memory_space<vmem>>, vector<2x1x16xbf16>,
    %c0_11 = arith.constant 0 : index
    %c0_12 = arith.constant 0 : index
    %c0_13 = arith.constant 0 : index
    %c0_14 = arith.constant 0 : index
    %8 = vector.load %arg1[%c0_11, %c0_12, %c0_13, %c0_14] : memref<1x2x16x16xf32, #tpu.memory_space<vmem>>, vector<1x2x15x16xf32>
    %9 = vector.shape_cast %8 : vector<1x2x15x16xf32> to vector<2x15x16xf32>
    %10 = arith.truncf %9 : vector<2x15x16xf32> to vector<2x15x16xbf16>
    %c0_15 = arith.constant 0 : index
    %c1 = arith.constant 1 : index
    %c16_16 = arith.constant 16 : index
    %11 = vector.load %arg11[%c0_15, %c1, %c16_16] : memref<2x16x80xbf16, #tpu.memory_space<vmem>>, vector<2x15x16xbf16>
    tpu.vector_store %arg11[%c0_15, %c1, %c16_16], %10 {strides = array<i32>} : memref<2x16x80xbf16, #tpu.memory_space<vmem>>, vector<2x15x16xbf16>,
    %c0_17 = arith.constant 0 : index
    %c0_18 = arith.constant 0 : index
    %c0_19 = arith.constant 0 : index
    %c0_20 = arith.constant 0 : index
    %12 = vector.load %arg1[%c0_17, %c0_18, %c0_19, %c0_20] : memref<1x2x16x16xf32, #tpu.memory_space<vmem>>, vector<1x2x16x16xf32>
    %13 = vector.shape_cast %12 : vector<1x2x16x16xf32> to vector<2x16x16xf32>
    %14 = arith.truncf %13 : vector<2x16x16xf32> to vector<2x16x16xbf16>
    %c0_21 = arith.constant 0 : index
    %c0_22 = arith.constant 0 : index
    %c32 = arith.constant 32 : index
    %15 = vector.load %arg11[%c0_21, %c0_22, %c32] : memref<2x16x80xbf16, #tpu.memory_space<vmem>>, vector<2x16x16xbf16>
    tpu.vector_store %arg11[%c0_21, %c0_22, %c32], %14 {strides = array<i32>} : memref<2x16x80xbf16, #tpu.memory_space<vmem>>, vector<2x16x16xbf16>,
    %cst_23 = arith.constant 0.000000e+00 : bf16
    %16 = vector.broadcast %cst_23 : bf16 to vector<2x1x16xbf16>
    %c0_24 = arith.constant 0 : index
    %c15 = arith.constant 15 : index
    %c48 = arith.constant 48 : index
    %17 = vector.load %arg11[%c0_24, %c15, %c48] : memref<2x16x80xbf16, #tpu.memory_space<vmem>>, vector<2x1x16xbf16>
    tpu.vector_store %arg11[%c0_24, %c15, %c48], %16 {strides = array<i32>} : memref<2x16x80xbf16, #tpu.memory_space<vmem>>, vector<2x1x16xbf16>,
    %c0_25 = arith.constant 0 : index
    %c0_26 = arith.constant 0 : index
    %c1_27 = arith.constant 1 : index
    %c0_28 = arith.constant 0 : index
    %18 = vector.load %arg1[%c0_25, %c0_26, %c1_27, %c0_28] : memref<1x2x16x16xf32, #tpu.memory_space<vmem>>, vector<1x2x15x16xf32>
    %19 = vector.shape_cast %18 : vector<1x2x15x16xf32> to vector<2x15x16xf32>
    %20 = arith.truncf %19 : vector<2x15x16xf32> to vector<2x15x16xbf16>
    %c0_29 = arith.constant 0 : index
    %c0_30 = arith.constant 0 : index
    %c48_31 = arith.constant 48 : index
    %21 = vector.load %arg11[%c0_29, %c0_30, %c48_31] : memref<2x16x80xbf16, #tpu.memory_space<vmem>>, vector<2x15x16xbf16>
    tpu.vector_store %arg11[%c0_29, %c0_30, %c48_31], %20 {strides = array<i32>} : memref<2x16x80xbf16, #tpu.memory_space<vmem>>, vector<2x15x16xbf16>,
    %cst_32 = arith.constant 0.000000e+00 : bf16
    %22 = vector.broadcast %cst_32 : bf16 to vector<2x2x16xbf16>
    %c0_33 = arith.constant 0 : index
    %c14 = arith.constant 14 : index
    %c64 = arith.constant 64 : index
    %23 = vector.load %arg11[%c0_33, %c14, %c64] : memref<2x16x80xbf16, #tpu.memory_space<vmem>>, vector<2x2x16xbf16>
    tpu.vector_store %arg11[%c0_33, %c14, %c64], %22 {strides = array<i32>} : memref<2x16x80xbf16, #tpu.memory_space<vmem>>, vector<2x2x16xbf16>,
    %c0_34 = arith.constant 0 : index
    %c0_35 = arith.constant 0 : index
    %c2_36 = arith.constant 2 : index
    %c0_37 = arith.constant 0 : index
    %24 = vector.load %arg1[%c0_34, %c0_35, %c2_36, %c0_37] : memref<1x2x16x16xf32, #tpu.memory_space<vmem>>, vector<1x2x14x16xf32>
    %25 = vector.shape_cast %24 : vector<1x2x14x16xf32> to vector<2x14x16xf32>
    %26 = arith.truncf %25 : vector<2x14x16xf32> to vector<2x14x16xbf16>
    %c0_38 = arith.constant 0 : index
    %c0_39 = arith.constant 0 : index
    %c64_40 = arith.constant 64 : index
    %27 = vector.load %arg11[%c0_38, %c0_39, %c64_40] : memref<2x16x80xbf16, #tpu.memory_space<vmem>>, vector<2x14x16xbf16>
    tpu.vector_store %arg11[%c0_38, %c0_39, %c64_40], %26 {strides = array<i32>} : memref<2x16x80xbf16, #tpu.memory_space<vmem>>, vector<2x14x16xbf16>,
    %c0_41 = arith.constant 0 : index
    %c0_42 = arith.constant 0 : index
    %c0_43 = arith.constant 0 : index
    %28 = vector.load %arg11[%c0_41, %c0_42, %c0_43] : memref<2x16x80xbf16, #tpu.memory_space<vmem>>, vector<2x16x80xbf16>
    %29 = vector.shape_cast %28 : vector<2x16x80xbf16> to vector<32x80xbf16>
    %c0_44 = arith.constant 0 : index
    %c0_45 = arith.constant 0 : index
    %30 = vector.load %arg2[%c0_44, %c0_45] : memref<80x320xbf16, #tpu.memory_space<vmem>>, vector<80x320xbf16>
    %cst_46 = arith.constant dense<0.000000e+00> : vector<32x320xf32>
    %31 = tpu.matmul %29, %30, %cst_46 {dimension_numbers = #tpu.dot_dimension_numbers<[1], [0], [0], [1], [0, 0, 1, 1], [], []>} : vector<32x80xbf16>, vector<80x320xbf16>, vector<32x320xf32> -> vector<32x320xf32>
    %c0_47 = arith.constant 0 : index
    %c0_48 = arith.constant 0 : index
    %32 = vector.load %arg3[%c0_47, %c0_48] : memref<1x320xf32, #tpu.memory_space<vmem>>, vector<1x320xf32>
    %33 = vector.broadcast %32 : vector<1x320xf32> to vector<32x320xf32>
    %34 = arith.addf %31, %33 : vector<32x320xf32>
    %cst_49 = arith.constant 0.000000e+00 : f32
    %35 = vector.broadcast %cst_49 : f32 to vector<32x320xf32>
    %36 = arith.maximumf %34, %35 : vector<32x320xf32>
    %37 = vector.extract_strided_slice %36 {offsets = [0, 0], sizes = [32, 160], strides = [1, 1]} : vector<32x320xf32> to vector<32x160xf32>
    %38 = vector.extract_strided_slice %36 {offsets = [0, 160], sizes = [32, 160], strides = [1, 1]} : vector<32x320xf32> to vector<32x160xf32>
    %39 = arith.maximumf %37, %38 : vector<32x160xf32>
    %40 = vector.shape_cast %39 : vector<32x160xf32> to vector<16x2x160xf32>
    %41 = vector.extract_strided_slice %40 {offsets = [0, 0, 0], sizes = [16, 1, 160], strides = [1, 1, 1]} : vector<16x2x160xf32> to vector<16x1x160xf32>
    %42 = vector.shape_cast %41 : vector<16x1x160xf32> to vector<16x160xf32>
    %43 = vector.extract_strided_slice %40 {offsets = [0, 1, 0], sizes = [16, 1, 160], strides = [1, 1, 1]} : vector<16x2x160xf32> to vector<16x1x160xf32>
    %44 = vector.shape_cast %43 : vector<16x1x160xf32> to vector<16x160xf32>
    %45 = arith.maximumf %42, %44 : vector<16x160xf32>
    %46 = vector.shape_cast %45 : vector<16x160xf32> to vector<2x8x160xf32>
    %47 = arith.truncf %46 : vector<2x8x160xf32> to vector<2x8x160xbf16>
    %cst_50 = arith.constant 0.000000e+00 : bf16
    %48 = vector.broadcast %cst_50 : bf16 to vector<2x2x160xbf16>
    %c0_51 = arith.constant 0 : index
    %c0_52 = arith.constant 0 : index
    %c0_53 = arith.constant 0 : index
    %49 = vector.load %arg12[%c0_51, %c0_52, %c0_53] : memref<2x8x800xbf16, #tpu.memory_space<vmem>>, vector<2x2x160xbf16>
    tpu.vector_store %arg12[%c0_51, %c0_52, %c0_53], %48 {strides = array<i32>} : memref<2x8x800xbf16, #tpu.memory_space<vmem>>, vector<2x2x160xbf16>,
    %50 = vector.extract_strided_slice %47 {offsets = [0, 0, 0], sizes = [2, 6, 160], strides = [1, 1, 1]} : vector<2x8x160xbf16> to vector<2x6x160xbf16>
    %c0_54 = arith.constant 0 : index
    %c2_55 = arith.constant 2 : index
    %c0_56 = arith.constant 0 : index
    %51 = vector.load %arg12[%c0_54, %c2_55, %c0_56] : memref<2x8x800xbf16, #tpu.memory_space<vmem>>, vector<2x6x160xbf16>
    tpu.vector_store %arg12[%c0_54, %c2_55, %c0_56], %50 {strides = array<i32>} : memref<2x8x800xbf16, #tpu.memory_space<vmem>>, vector<2x6x160xbf16>,
    %cst_57 = arith.constant 0.000000e+00 : bf16
    %52 = vector.broadcast %cst_57 : bf16 to vector<2x1x160xbf16>
    %c0_58 = arith.constant 0 : index
    %c0_59 = arith.constant 0 : index
    %c160 = arith.constant 160 : index
    %53 = vector.load %arg12[%c0_58, %c0_59, %c160] : memref<2x8x800xbf16, #tpu.memory_space<vmem>>, vector<2x1x160xbf16>
    tpu.vector_store %arg12[%c0_58, %c0_59, %c160], %52 {strides = array<i32>} : memref<2x8x800xbf16, #tpu.memory_space<vmem>>, vector<2x1x160xbf16>,
    %54 = vector.extract_strided_slice %47 {offsets = [0, 0, 0], sizes = [2, 7, 160], strides = [1, 1, 1]} : vector<2x8x160xbf16> to vector<2x7x160xbf16>
    %c0_60 = arith.constant 0 : index
    %c1_61 = arith.constant 1 : index
    %c160_62 = arith.constant 160 : index
    %55 = vector.load %arg12[%c0_60, %c1_61, %c160_62] : memref<2x8x800xbf16, #tpu.memory_space<vmem>>, vector<2x7x160xbf16>
    tpu.vector_store %arg12[%c0_60, %c1_61, %c160_62], %54 {strides = array<i32>} : memref<2x8x800xbf16, #tpu.memory_space<vmem>>, vector<2x7x160xbf16>,
    %c0_63 = arith.constant 0 : index
    %c0_64 = arith.constant 0 : index
    %c320 = arith.constant 320 : index
    %56 = vector.load %arg12[%c0_63, %c0_64, %c320] : memref<2x8x800xbf16, #tpu.memory_space<vmem>>, vector<2x8x160xbf16>
    tpu.vector_store %arg12[%c0_63, %c0_64, %c320], %47 {strides = array<i32>} : memref<2x8x800xbf16, #tpu.memory_space<vmem>>, vector<2x8x160xbf16>,
    %cst_65 = arith.constant 0.000000e+00 : bf16
    %57 = vector.broadcast %cst_65 : bf16 to vector<2x1x160xbf16>
    %c0_66 = arith.constant 0 : index
    %c7 = arith.constant 7 : index
    %c480 = arith.constant 480 : index
    %58 = vector.load %arg12[%c0_66, %c7, %c480] : memref<2x8x800xbf16, #tpu.memory_space<vmem>>, vector<2x1x160xbf16>
    tpu.vector_store %arg12[%c0_66, %c7, %c480], %57 {strides = array<i32>} : memref<2x8x800xbf16, #tpu.memory_space<vmem>>, vector<2x1x160xbf16>,
    %59 = vector.extract_strided_slice %47 {offsets = [0, 1, 0], sizes = [2, 7, 160], strides = [1, 1, 1]} : vector<2x8x160xbf16> to vector<2x7x160xbf16>
    %c0_67 = arith.constant 0 : index
    %c0_68 = arith.constant 0 : index
    %c480_69 = arith.constant 480 : index
    %60 = vector.load %arg12[%c0_67, %c0_68, %c480_69] : memref<2x8x800xbf16, #tpu.memory_space<vmem>>, vector<2x7x160xbf16>
    tpu.vector_store %arg12[%c0_67, %c0_68, %c480_69], %59 {strides = array<i32>} : memref<2x8x800xbf16, #tpu.memory_space<vmem>>, vector<2x7x160xbf16>,
    %cst_70 = arith.constant 0.000000e+00 : bf16
    %61 = vector.broadcast %cst_70 : bf16 to vector<2x2x160xbf16>
    %c0_71 = arith.constant 0 : index
    %c6 = arith.constant 6 : index
    %c640 = arith.constant 640 : index
    %62 = vector.load %arg12[%c0_71, %c6, %c640] : memref<2x8x800xbf16, #tpu.memory_space<vmem>>, vector<2x2x160xbf16>
    tpu.vector_store %arg12[%c0_71, %c6, %c640], %61 {strides = array<i32>} : memref<2x8x800xbf16, #tpu.memory_space<vmem>>, vector<2x2x160xbf16>,
    %63 = vector.extract_strided_slice %47 {offsets = [0, 2, 0], sizes = [2, 6, 160], strides = [1, 1, 1]} : vector<2x8x160xbf16> to vector<2x6x160xbf16>
    %c0_72 = arith.constant 0 : index
    %c0_73 = arith.constant 0 : index
    %c640_74 = arith.constant 640 : index
    %64 = vector.load %arg12[%c0_72, %c0_73, %c640_74] : memref<2x8x800xbf16, #tpu.memory_space<vmem>>, vector<2x6x160xbf16>
    tpu.vector_store %arg12[%c0_72, %c0_73, %c640_74], %63 {strides = array<i32>} : memref<2x8x800xbf16, #tpu.memory_space<vmem>>, vector<2x6x160xbf16>,
    %c0_75 = arith.constant 0 : index
    %c0_76 = arith.constant 0 : index
    %c0_77 = arith.constant 0 : index
    %65 = vector.load %arg12[%c0_75, %c0_76, %c0_77] : memref<2x8x800xbf16, #tpu.memory_space<vmem>>, vector<2x8x800xbf16>
    %66 = vector.shape_cast %65 : vector<2x8x800xbf16> to vector<16x800xbf16>
    %c0_78 = arith.constant 0 : index
    %c0_79 = arith.constant 0 : index
    %67 = vector.load %arg4[%c0_78, %c0_79] : memref<800x512xbf16, #tpu.memory_space<vmem>>, vector<800x512xbf16>
    %cst_80 = arith.constant dense<0.000000e+00> : vector<16x512xf32>
    %68 = tpu.matmul %66, %67, %cst_80 {dimension_numbers = #tpu.dot_dimension_numbers<[1], [0], [0], [1], [0, 0, 1, 1], [], []>} : vector<16x800xbf16>, vector<800x512xbf16>, vector<16x512xf32> -> vector<16x512xf32>
    %c0_81 = arith.constant 0 : index
    %c0_82 = arith.constant 0 : index
    %69 = vector.load %arg5[%c0_81, %c0_82] : memref<1x512xf32, #tpu.memory_space<vmem>>, vector<1x512xf32>
    %70 = vector.broadcast %69 : vector<1x512xf32> to vector<16x512xf32>
    %71 = arith.addf %68, %70 : vector<16x512xf32>
    %cst_83 = arith.constant 0.000000e+00 : f32
    %72 = vector.broadcast %cst_83 : f32 to vector<16x512xf32>
    %73 = arith.maximumf %71, %72 : vector<16x512xf32>
    %74 = vector.extract_strided_slice %73 {offsets = [0, 0], sizes = [16, 256], strides = [1, 1]} : vector<16x512xf32> to vector<16x256xf32>
    %75 = vector.extract_strided_slice %73 {offsets = [0, 256], sizes = [16, 256], strides = [1, 1]} : vector<16x512xf32> to vector<16x256xf32>
    %76 = arith.maximumf %74, %75 : vector<16x256xf32>
    %77 = vector.shape_cast %76 : vector<16x256xf32> to vector<8x2x256xf32>
    %78 = vector.extract_strided_slice %77 {offsets = [0, 0, 0], sizes = [8, 1, 256], strides = [1, 1, 1]} : vector<8x2x256xf32> to vector<8x1x256xf32>
    %79 = vector.shape_cast %78 : vector<8x1x256xf32> to vector<8x256xf32>
    %80 = vector.extract_strided_slice %77 {offsets = [0, 1, 0], sizes = [8, 1, 256], strides = [1, 1, 1]} : vector<8x2x256xf32> to vector<8x1x256xf32>
    %81 = vector.shape_cast %80 : vector<8x1x256xf32> to vector<8x256xf32>
    %82 = arith.maximumf %79, %81 : vector<8x256xf32>
    %83 = vector.shape_cast %82 : vector<8x256xf32> to vector<2x1024xf32>
    %84 = arith.truncf %83 : vector<2x1024xf32> to vector<2x1024xbf16>
    %c0_84 = arith.constant 0 : index
    %c0_85 = arith.constant 0 : index
    %85 = vector.load %arg6[%c0_84, %c0_85] : memref<1024x512xbf16, #tpu.memory_space<vmem>>, vector<1024x512xbf16>
    %cst_86 = arith.constant dense<0.000000e+00> : vector<2x512xf32>
    %86 = tpu.matmul %84, %85, %cst_86 {dimension_numbers = #tpu.dot_dimension_numbers<[1], [0], [0], [1], [0, 0, 1, 1], [], []>} : vector<2x1024xbf16>, vector<1024x512xbf16>, vector<2x512xf32> -> vector<2x512xf32>
    %c0_87 = arith.constant 0 : index
    %c0_88 = arith.constant 0 : index
    %87 = vector.load %arg7[%c0_87, %c0_88] : memref<1x512xf32, #tpu.memory_space<vmem>>, vector<1x512xf32>
    %88 = vector.broadcast %87 : vector<1x512xf32> to vector<2x512xf32>
    %89 = arith.addf %86, %88 : vector<2x512xf32>
    %90 = arith.truncf %89 : vector<2x512xf32> to vector<2x512xbf16>
    %c0_89 = arith.constant 0 : index
    %c0_90 = arith.constant 0 : index
    %91 = vector.load %arg8[%c0_89, %c0_90] : memref<512x128xbf16, #tpu.memory_space<vmem>>, vector<512x128xbf16>
    %cst_91 = arith.constant dense<0.000000e+00> : vector<2x128xf32>
    %92 = tpu.matmul %90, %91, %cst_91 {dimension_numbers = #tpu.dot_dimension_numbers<[1], [0], [0], [1], [0, 0, 1, 1], [], []>} : vector<2x512xbf16>, vector<512x128xbf16>, vector<2x128xf32> -> vector<2x128xf32>
    %c0_92 = arith.constant 0 : index
    %c0_93 = arith.constant 0 : index
    %93 = vector.load %arg9[%c0_92, %c0_93] : memref<1x128xf32, #tpu.memory_space<vmem>>, vector<1x128xf32>
    %94 = vector.broadcast %93 : vector<1x128xf32> to vector<2x128xf32>
    %95 = arith.addf %92, %94 : vector<2x128xf32>
    %c0_94 = arith.constant 0 : index
    %c0_95 = arith.constant 0 : index
    %c0_96 = arith.constant 0 : index
    %96 = vector.load %arg10[%c0_94, %c0_95, %c0_96] : memref<1x2x128xf32, #tpu.memory_space<vmem>>, vector<1x2x128xf32>
    %97 = vector.shape_cast %96 : vector<1x2x128xf32> to vector<2x128xf32>
    %98 = vector.shape_cast %95 : vector<2x128xf32> to vector<1x2x128xf32>
    tpu.vector_store %arg10[%c0_94, %c0_95, %c0_96], %98 {strides = array<i32>} : memref<1x2x128xf32, #tpu.memory_space<vmem>>, vector<1x2x128xf32>,
    return
  }
  func.func @transform_0(%arg0: i32) -> (i32, i32, i32, i32) {
    %c0_i32 = arith.constant 0 : i32
    %c0_i32_0 = arith.constant 0 : i32
    %c0_i32_1 = arith.constant 0 : i32
    %c0_i32_2 = arith.constant 0 : i32
    return %arg0, %c0_i32, %c0_i32_0, %c0_i32_1 : i32, i32, i32, i32
  }
  func.func @transform_1(%arg0: i32) -> (i32, i32) {
    %c0_i32 = arith.constant 0 : i32
    %c0_i32_0 = arith.constant 0 : i32
    %c0_i32_1 = arith.constant 0 : i32
    return %c0_i32, %c0_i32_0 : i32, i32
  }
  func.func @transform_2(%arg0: i32) -> (i32, i32) {
    %c0_i32 = arith.constant 0 : i32
    %c0_i32_0 = arith.constant 0 : i32
    %c0_i32_1 = arith.constant 0 : i32
    return %c0_i32, %c0_i32_0 : i32, i32
  }
  func.func @transform_3(%arg0: i32) -> (i32, i32) {
    %c0_i32 = arith.constant 0 : i32
    %c0_i32_0 = arith.constant 0 : i32
    %c0_i32_1 = arith.constant 0 : i32
    return %c0_i32, %c0_i32_0 : i32, i32
  }
  func.func @transform_4(%arg0: i32) -> (i32, i32) {
    %c0_i32 = arith.constant 0 : i32
    %c0_i32_0 = arith.constant 0 : i32
    %c0_i32_1 = arith.constant 0 : i32
    return %c0_i32, %c0_i32_0 : i32, i32
  }
  func.func @transform_5(%arg0: i32) -> (i32, i32) {
    %c0_i32 = arith.constant 0 : i32
    %c0_i32_0 = arith.constant 0 : i32
    %c0_i32_1 = arith.constant 0 : i32
    return %c0_i32, %c0_i32_0 : i32, i32
  }
  func.func @transform_6(%arg0: i32) -> (i32, i32) {
    %c0_i32 = arith.constant 0 : i32
    %c0_i32_0 = arith.constant 0 : i32
    %c0_i32_1 = arith.constant 0 : i32
    return %c0_i32, %c0_i32_0 : i32, i32
  }
  func.func @transform_7(%arg0: i32) -> (i32, i32) {
    %c0_i32 = arith.constant 0 : i32
    %c0_i32_0 = arith.constant 0 : i32
    %c0_i32_1 = arith.constant 0 : i32
    return %c0_i32, %c0_i32_0 : i32, i32
  }
  func.func @transform_8(%arg0: i32) -> (i32, i32) {
    %c0_i32 = arith.constant 0 : i32
    %c0_i32_0 = arith.constant 0 : i32
    %c0_i32_1 = arith.constant 0 : i32
    return %c0_i32, %c0_i32_0 : i32, i32
  }
  func.func @transform_9(%arg0: i32) -> (i32, i32, i32) {
    %c0_i32 = arith.constant 0 : i32
    %c0_i32_0 = arith.constant 0 : i32
    %c0_i32_1 = arith.constant 0 : i32
    return %arg0, %c0_i32, %c0_i32_0 : i32, i32, i32
  }
}

</mosaic_0001>

<bundles_post_ra>
// kernel: lenet_forward.1
= control target key start
LH: loop header
LB: loop body
LE: loop exit
PB: predicated region body
PF: predicated region fallthrough
CT: control target
= control target key end

     0   :  { %14 = vsyncpa [#allocation5], 0  ;;  %s8205_s0 = inlined_call_operand.hbm [shape: f32[1,2,16,16], index: 0, kind: input, shape index: {}]   ;;  %s8206_s1 = inlined_call_operand.hbm [shape: bf16[80,320], index: 1, kind: input, shape index: {}]   ;;  %s8207_s2 = inlined_call_operand.hbm [shape: f32[1,320], index: 2, kind: input, shape index: {}]   ;;  %s8208_s3 = inlined_call_operand.hbm [shape: bf16[800,512], index: 3, kind: input, shape index: {}]   ;;  %s8209_s4 = inlined_call_operand.vmem [shape: f32[1,512], index: 4, kind: input, shape index: {}]   ;;  %s8210_s5 = inlined_call_operand.hbm [shape: bf16[1024,512], index: 5, kind: input, shape index: {}]   ;;  %s8211_s6 = inlined_call_operand.hbm [shape: f32[1,512], index: 6, kind: input, shape index: {}]   ;;  %s8212_s7 = inlined_call_operand.hbm [shape: bf16[512,128], index: 7, kind: input, shape index: {}]   ;;  %s8213_s8 = inlined_call_operand.vmem [shape: f32[1,128], index: 8, kind: input, shape index: {}]   ;;  %s8214_s9 = inlined_call_operand.hbm [shape: f32[1,2,128], index: 9, kind: output, shape index: {}]  }
   0x1   :  { %15 = vsyncpa [#allocation8], 0 }
   0x2   :  { %16 = vsyncpa [#allocation11], 0 }
   0x3   :  { %17 = vsyncpa [#allocation14], 0 }
   0x4   :  { %18 = vsyncpa [#allocation6], 0  ;;  %s7249_s30 = smov [#allocation7]  }
   0x5   :  { %s36_s10 = sshll.u32 %s7249_s30, 4  ;;  %s37_s10 = int_to_ptr.vmem [resolvable:$true] %s36_s10 }
   0x6   :  { %s7087_s11 = scalar_lea.vmem %s37_s10, 1920  ;;  %p7092_p1 = scmp.lt.s32.totalorder %s37_s10, %s37_s10 }
   0x7   :  { %p7088_p0 = scmp.ne.s32.totalorder %s37_s10, %s7087_s11  ;;  %p7093_p2 = scmp.lt.s32.totalorder %s7087_s11, %s7087_s11 }
   0x9   :  { %p7094_p3 = por %p7093_p2, %p7092_p1 }
   0xb   :  { %p7095_p4 = pnand %p7094_p3, %p7088_p0 }
   0xd   :  { %7098 = shalt.err (!%p7095_p4)
}
   0xe   :  { %s7250_s12 = smov 192   ;;  %s7251_s13 = smov 12  }
   0xf   :  { %42 = dma.hbm_to_vmem [thread:$0]  %s8206_s1, 1920, %s37_s10, [#allocation8], %s7250_s12, %s7250_s12, %s7251_s13  }
  0x10   :  { %s7252_s16 = smov [#allocation10]  }
  0x11   :  { %s58_s17 = sshll.u32 %s7252_s16, 4  ;;  %s59_s17 = int_to_ptr.vmem [resolvable:$true] %s58_s17 }
  0x12   :  { %s7107_s18 = scalar_lea.vmem %s59_s17, 25600  ;;  %p7112_p6 = scmp.lt.s32.totalorder %s59_s17, %s59_s17 }
  0x13   :  { %p7108_p5 = scmp.ne.s32.totalorder %s59_s17, %s7107_s18  ;;  %p7113_p7 = scmp.lt.s32.totalorder %s7107_s18, %s7107_s18 }
  0x15   :  { %p7114_p8 = por %p7113_p7, %p7112_p6 }
  0x17   :  { %p7115_p9 = pnand %p7114_p8, %p7108_p5 }
  0x19   :  { %7118 = shalt.err (!%p7115_p9)
}
  0x1a   :  { %s7253_s19 = smov 256   ;;  %s7254_s20 = smov 16  }
  0x1b   :  { %64 = dma.hbm_to_vmem [thread:$0]  %s8208_s3, 25600, %s59_s17, [#allocation11], %s7253_s19, %s7253_s19, %s7254_s20  }
  0x1c   :  { %s7255_s1 = smov [#allocation13]   ;;  %s7256_s24 = smov [#allocation4]  }
  0x1d   :  { %s85_s23 = sshll.u32 %s7255_s1, 4  ;;  %s24_s25 = sshll.u32 %s7256_s24, 4  ;;  %s86_s23 = int_to_ptr.vmem [resolvable:$true] %s85_s23  ;;  %s25_s25 = int_to_ptr.vmem [resolvable:$true] %s24_s25 }
  0x1e   :  { %s7127_s26 = scalar_lea.vmem %s86_s23, 64  ;;  %p7132_p11 = scmp.lt.s32.totalorder %s86_s23, %s86_s23 }
  0x1f   :  { %p7128_p10 = scmp.ne.s32.totalorder %s86_s23, %s7127_s26  ;;  %p7133_p12 = scmp.lt.s32.totalorder %s7127_s26, %s7127_s26 }
  0x21   :  { %p7134_p13 = por %p7133_p12, %p7132_p11 }
  0x23   :  { %p7135_p0 = pnand %p7134_p13, %p7128_p10 }
  0x25   :  { %7138 = shalt.err (!%p7135_p0)
}
  0x26   :  { %88 = dma.hbm_to_vmem [thread:$0]  %s8211_s6, 64, %s86_s23, [#allocation14]  }
  0x27   :  { %s7147_s29 = scalar_lea.vmem %s25_s25, 512  ;;  %p7152_p2 = scmp.lt.s32.totalorder %s25_s25, %s25_s25 }
  0x28   :  { %p7148_p1 = scmp.ne.s32.totalorder %s25_s25, %s7147_s29  ;;  %p7153_p3 = scmp.lt.s32.totalorder %s7147_s29, %s7147_s29 }
  0x2a   :  { %p7154_p4 = por %p7153_p3, %p7152_p2 }
  0x2c   :  { %p7155_p5 = pnand %p7154_p4, %p7148_p1 }
  0x2e   :  { %7158 = shalt.err (!%p7155_p5)
}
  0x2f   :  { %s7257_s3 = smov 128   ;;  %s7258_s30 = smov 8  }
  0x30   :  { %30 = dma.hbm_to_vmem [thread:$0]  %s8205_s0, 512, %s25_s25, [#allocation5], %s7257_s3, %s7257_s3, %s7258_s30  }
  0x31   :  { %s7259_s12 = smov [#allocation9]   ;;  %s7260_s14 = smov [#allocation12]  }
  0x32   :  { %s49_s13 = sshll.u32 %s7259_s12, 4  ;;  %s72_s15 = sshll.u32 %s7260_s14, 4  ;;  %s50_s13 = int_to_ptr.vmem [resolvable:$true] %s49_s13  ;;  %s73_s15 = int_to_ptr.vmem [resolvable:$true] %s72_s15 }
  0x33   :  { %s7167_s6 = scalar_lea.vmem %s50_s13, 48  ;;  %s7171_s16 = scalar_lea.vmem %s50_s13, 64 }
  0x34   :  { %p7168_p6 = scmp.ne.s32.totalorder %s50_s13, %s7167_s6  ;;  %p7172_p7 = scmp.lt.s32.totalorder %s50_s13, %s50_s13 }
  0x35   :  { %p7173_p8 = scmp.lt.s32.totalorder %s7171_s16, %s7167_s6 }
  0x37   :  { %p7174_p9 = por %p7173_p8, %p7172_p7 }
  0x39   :  { %p7175_p10 = pnand %p7174_p9, %p7168_p6 }
  0x3b   :  { %7178 = shalt.err (!%p7175_p10)
}
  0x3c   :  { %52 = dma.hbm_to_vmem [thread:$0]  %s8207_s2, 48, %s50_s13, [#allocation8]  }
  0x3d   :  { %s7187_s21 = scalar_lea.vmem %s73_s15, 32768  ;;  %p7192_p12 = scmp.lt.s32.totalorder %s73_s15, %s73_s15 }
  0x3e   :  { %p7188_p11 = scmp.ne.s32.totalorder %s73_s15, %s7187_s21  ;;  %p7193_p13 = scmp.lt.s32.totalorder %s7187_s21, %s7187_s21 }
  0x40   :  { %p7194_p0 = por %p7193_p13, %p7192_p12 }
  0x42   :  { %p7195_p1 = pnand %p7194_p0, %p7188_p11 }
  0x44   :  { %7198 = shalt.err (!%p7195_p1)
}
  0x45   :  { %78 = dma.hbm_to_vmem [thread:$0]  %s8210_s5, 32768, %s73_s15, [#allocation11], %s7253_s19, %s7253_s19, %s7254_s20  }
  0x46   :  { %s7261_s1 = smov [#allocation15]  }
  0x47   :  { %s94_s23 = sshll.u32 %s7261_s1, 4  ;;  %s95_s23 = int_to_ptr.vmem [resolvable:$true] %s94_s23 }
  0x48   :  { %s7207_s24 = scalar_lea.vmem %s95_s23, 4096  ;;  %p7212_p3 = scmp.lt.s32.totalorder %s95_s23, %s95_s23 }
  0x49   :  { %p7208_p2 = scmp.ne.s32.totalorder %s95_s23, %s7207_s24  ;;  %p7213_p4 = scmp.lt.s32.totalorder %s7207_s24, %s7207_s24 }
  0x4b   :  { %p7214_p5 = por %p7213_p4, %p7212_p3 }
  0x4d   :  { %p7215_p6 = pnand %p7214_p5, %p7208_p2 }
  0x4f   :  { %7218 = shalt.err (!%p7215_p6)
}
  0x50   :  { %s7262_s2 = smov 64   ;;  %s7263_s25 = smov 4  }
  0x51   :  { %100 = dma.hbm_to_vmem [thread:$0]  %s8212_s7, 4096, %s95_s23, [#allocation14], %s7262_s2, %s7262_s2, %s7263_s25  }
  0x52   :  { %7239 = dma.done.wait [#allocation5], 512  }
  0x53   :  { %7240 = vsyncadd [#allocation5], 4294966784 }
  0x54   :  { %7241 = dma.done.wait [#allocation8], 1968  }
  0x55   :  { %7242 = vsyncadd [#allocation8], 4294965328 }
  0x56   :  { %7243 = dma.done.wait [#allocation11], 58368  }
  0x57   :  { %7244 = vsyncadd [#allocation11], 4294908928 }
  0x58   :  { %7245 = dma.done.wait [#allocation14], 4160  }
  0x59   :  { %7246 = vsyncadd [#allocation14], 4294963136  ;;  %vm125_vm0 = vcmask 122880   ;;  %vm165_vm1 = vcmask 254080   ;;  %vm1033_vm2 = vcmask 258052   ;;  %v8215_v0 = vmov 0  }
  0x5a   :  { %126 = vst.msk [vmem:[#allocation2] sm:$0x1] %vm125_vm0, %v8215_v0  ;;  %127 = vst.msk [vmem:[#allocation2 + $0x8] sm:$0x1] %vm125_vm0, %v8215_v0  ;;  %537 = vmatprep.mubr.bf16.mxu0 %v8215_v0  ;;  %vm166_vm3 = vsmask.f32 256 }
  0x5b   :  { %vm1179_vm4 = vcmask 1040640   ;;  %vm144_vm5 = vcmask 1040384   ;;  %vm7356_vm6 = vmand %vm165_vm1, %vm166_vm3  ;;  %vm1181_vm7 = vcmask 520196   ;;  %vm1182_vm8 = vsmask.f32 4352  ;;  %v251_v4 = vld [vmem:[#allocation4 + $0x18] sm:$0xff] }
  0x5c   :  { %vm1034_vm9 = vmor %vm1033_vm2, %vm144_vm5  ;;  %v248_v5 = vld [vmem:[#allocation4] sm:$0xff]  ;;  %v175_v6 = vld [vmem:[#allocation4 + $0x8] sm:$0x7f]  ;;  %v6217_v7 = vpack.c.bf16 %v251_v4, %v251_v4  ;;  %vm190_vm12 = vsmask.f32 4368  ;;  %s7265_s5 = smov 32  }
  0x5d   :  { %1035 = vst.msk [vmem:[#allocation3] sm:$0x11] %vm1034_vm9, %v8215_v0  ;;  %1036 = vst.msk [vmem:[#allocation3 + $0x1c] sm:$0x11] %vm1034_vm9, %v8215_v0  ;;  %v7372_v8 = vpack.c.bf16 %v248_v5, %v248_v5  ;;  %v6211_v9 = vpack.c.bf16 %v175_v6, %v175_v6  ;;  %v176_v14 = vld [vmem:[#allocation4 + $0x10] sm:$0xff]  ;;  %vm145_vm14 = vcmask 1044484  }
  0x5e   :  { %vm7364_vm10 = vmand %vm1179_vm4, %vm166_vm3  ;;  %v177_v15 = vld [vmem:[#allocation4 + $0x18] sm:$0x7f]  ;;  %270 = vrot.lane.b32.xlu1 %v6217_v7, %s7265_s5  ;;  %v7384_v19 = vpack.c.bf16 %v176_v14, %v176_v14  ;;  %v249_v33 = vld [vmem:[#allocation4 + $0x8] sm:$0xff]  ;;  %vm159_vm0 = vcmask 125953   ;;  %vm161_vm2 = vcmask 125952   ;;  %s7266_s7 = smov 48  }
  0x5f   :  { %vm7368_vm11 = vmand %vm1181_vm7, %vm1182_vm8  ;;  %v193_v16 = vshrl.u32 %v7372_v8, 16  ;;  %v201_v17 = vshrl.u32 %v6211_v9, 16  ;;  %v204_v18 = vshll.u32 %v6211_v9, 16  ;;  %v6213_v20 = vpack.c.bf16 %v177_v15, %v177_v15  ;;  %v290_v36 = vld [vmem:[#allocation4 + $0x1] sm:$0xff]  ;;  %v131_v40 = vld [vmem:[#allocation4 + $0x18] sm:$0x3f] }
  0x60   :  { %vm1184_vm13 = vmor %vm7368_vm11, %vm7364_vm10  ;;  %v209_v28 = vshrl.u32 %v7384_v19, 16  ;;  %v129_v37 = vld [vmem:[#allocation4 + $0x8] sm:$0x3f]  ;;  %v196_v39 = vshll.u32 %v7372_v8, 16  ;;  %v6331_v41 = vld [vmem:[#allocation7 + $0x64] ss:$12 sps:$4 sm:$0xff]   ;;  %v6215_v44 = vpack.c.bf16 %v249_v33, %v249_v33  ;;  %v6209_v48 = vpack.c.bf16 %v131_v40, %v131_v40 }
  0x61   :  { %v168_v10 = vld [vmem:[#allocation2] sm:$0x1]  ;;  %v171_v11 = vld [vmem:[#allocation2 + $0x8] sm:$0x1]  ;;  %v195_v21 = vrot.slane %v193_v16, 7  ;;  %v203_v22 = vrot.slane %v201_v17, 7  ;;  %vm7388_vm15 = vmor %vm166_vm3, %vm190_vm12  ;;  %v6207_v46 = vpack.c.bf16 %v129_v37, %v129_v37  ;;  %511 = vmatprep.subr.bf16.mxu0 %v6331_v41  ;;  %v6218_v51 = vpack.c.bf16 %v290_v36, %v290_v36 }
  0x62   :  { %v169_v12 = vsel %vm7356_vm6, 0, %v168_v10  ;;  %v172_v13 = vsel %vm7356_vm6, 0, %v171_v11  ;;  %v217_v29 = vshrl.u32 %v6213_v20, 16  ;;  %264 = vrot.lane.b32.xlu1 %v7372_v8, %s7265_s5  ;;  %v220_v32 = vshll.u32 %v6213_v20, 16  ;;  %v6333_v45 = vld [vmem:[#allocation7 + $0x60] ss:$12 sps:$4 sm:$0xff]   ;;  %vm7408_vm1 = vmor %vm144_vm5, %vm145_vm14 }
  0x63   :  { %170 = vst [vmem:[#allocation2] sm:$0x1] %v169_v12  ;;  %173 = vst [vmem:[#allocation2 + $0x8] sm:$0x1] %v172_v13  ;;  %v199_v30 = vrot.slane %v195_v21, 4  ;;  %v206_v31 = vor.u32 %v204_v18, %v203_v22  ;;  %v7395_v34 = vrot.slane %v209_v28, 7  ;;  %512 = vmatpush1.bf16.msra.mxu0 %v6333_v45  ;;  %v198_v58 = vor.u32 %v196_v39, %v195_v21 }
  0x64   :  { %v1185_v23 = vld [vmem:[#allocation3 + $0x4] sm:$0x11]  ;;  %v219_v35 = vrot.slane %v217_v29, 7  ;;  %v147_v47 = vrot.slane %v7372_v8, 7  ;;  %v151_v49 = vrot.slane %v7384_v19, 7  ;;  %v149_v54 = vrot.slane %v6207_v46, 7 }
  0x65   :  { %v1188_v24 = vld [vmem:[#allocation3 + $0x20] sm:$0x11]  ;;  %v1186_v26 = vsel %vm1184_vm13, 0, %v1185_v23  ;;  %v207_v38 = vsel %vm7388_vm15, %v199_v30, %v206_v31  ;;  %v215_v42 = vrot.slane %v7395_v34, 4  ;;  %v153_v56 = vrot.slane %v6209_v48, 7  ;;  %v292_v8 = vld [vmem:[#allocation4 + $0x11] sm:$0xff] }
  0x66   :  { %v1189_v27 = vsel %vm1184_vm13, 0, %v1188_v24  ;;  %1187 = vst [vmem:[#allocation3 + $0x4] sm:$0x11] %v1186_v26  ;;  %226 = vrot.lane.b32.xlu0 %v207_v38, %s7254_s20  ;;  %v222_v43 = vor.u32 %v220_v32, %v219_v35  ;;  %v148_v53 = vrot.slane %v147_v47, 4  ;;  %v152_v55 = vrot.slane %v151_v49, 4  ;;  %v333_v3 = vld [vmem:[#allocation4 + $0x2] sm:$0xff] }
  0x67   :  { %1190 = vst [vmem:[#allocation3 + $0x20] sm:$0x11] %v1189_v27  ;;  %160 = vst.msk [vmem:[#allocation2] sm:$0xe] %vm159_vm0, %v147_v47  ;;  %v6334_v57 = vld [vmem:[#allocation7 + $0x4c] ss:$12 sps:$4 sm:$0xff]   ;;  %v6222_v10 = vpack.c.bf16 %v333_v3, %v333_v3  ;;  %v6220_v15 = vpack.c.bf16 %v292_v8, %v292_v8 }
  0x68   :  { %v223_v50 = vsel %vm7388_vm15, %v215_v42, %v222_v43  ;;  %163 = vst.msk [vmem:[#allocation2 + $0x8] sm:$0xe] %vm159_vm0, %v151_v49  ;;  %v334_v59 = vld [vmem:[#allocation4 + $0xa] sm:$0x3f]  ;;  %v150_v61 = vsel %vm7408_vm1, %v148_v53, %v149_v54  ;;  %v154_v62 = vsel %vm7408_vm1, %v152_v55, %v153_v56  ;;  %513 = vmatprep.subr.bf16.mxu0 %v6334_v57  ;;  %v6338_v4 = vld [vmem:[#allocation7 + $0x34] ss:$12 sps:$4 sm:$0xff]  }
  0x69   :  { %230 = vrot.lane.b32.xlu1 %v223_v50, %s7254_s20  ;;  %v291_v60 = vld [vmem:[#allocation4 + $0x9] sm:$0x7f]  ;;  %162 = vst.msk [vmem:[#allocation2 + $0x4] sm:$0xf] %vm161_vm2, %v150_v61  ;;  %164 = vst.msk [vmem:[#allocation2 + $0xc] sm:$0xf] %vm161_vm2, %v154_v62  ;;  %v6223_v2 = vpack.c.bf16 %v334_v59, %v334_v59  ;;  %v393_v59 = vlaneseq }
  0x6a   :  { %266 = vrot.lane.b32.xlu0 %v6215_v44, %s7265_s5  ;;  %v6336_v63 = vld [vmem:[#allocation7 + $0x48] ss:$12 sps:$4 sm:$0xff]   ;;  %v6219_v5 = vpack.c.bf16 %v291_v60, %v291_v60  ;;  %v6340_v6 = vld [vmem:[#allocation7 + $0x30] ss:$12 sps:$4 sm:$0xff]   ;;  %v212_v11 = vshll.u32 %v7384_v19, 16  ;;  %vm236_vm4 = vcmask 257152  }
  0x6b   :  { %v6337_v1 = vld [vmem:[#allocation7 + $0x68] ss:$12 sps:$4 sm:$0xff]   ;;  %514 = vmatpush1.bf16.msra.mxu0 %v6336_v63  ;;  %v6341_v7 = vld [vmem:[#allocation7 + $0x50] ss:$12 sps:$4 sm:$0xff]   ;;  %v6344_v12 = vld [vmem:[#allocation7 + $0x18] ss:$12 sps:$4 sm:$0xff]  }
  0x6c   :  { %6293 = vmatprep.subr.bf16.mxu1 %v6337_v1  ;;  %515 = vmatprep.subr.bf16.mxu0 %v6338_v4  ;;  %v6342_v9 = vld [vmem:[#allocation7 + $0x1c] ss:$12 sps:$4 sm:$0xff]   ;;  %v6345_v13 = vld [vmem:[#allocation7 + $0x38] ss:$12 sps:$4 sm:$0xff]   ;;  %v6348_v18 = vld [vmem:[#allocation7] ss:$12 sps:$4 sm:$0xff]   ;;  %v214_v21 = vor.u32 %v212_v11, %v7395_v34 }
  0x6d   :  { %306 = vrot.lane.b32.xlu1 %v6218_v51, %s7266_s7  ;;  %6294 = vmatpush3.bf16.msra.mxu1 %v6337_v1  ;;  %v336_v14 = vld [vmem:[#allocation4 + $0x1a] sm:$0x3f]  ;;  %v6346_v17 = vld [vmem:[#allocation7 + $0x4] ss:$12 sps:$4 sm:$0xff]   ;;  %v6349_v20 = vld [vmem:[#allocation7 + $0x20] ss:$12 sps:$4 sm:$0xff]  }
  0x6e   :  { %224 = vrot.lane.b32.xlu0 %v198_v58, %s7254_s20  ;;  %6295 = vmatprep.subr.bf16.mxu1 %v6341_v7  ;;  %v293_v16 = vld [vmem:[#allocation4 + $0x19] sm:$0x7f]  ;;  %v6225_v22 = vpack.c.bf16 %v336_v14, %v336_v14  ;;  %v6351_v24 = vld [vmem:[#allocation7 + $0x8] ss:$12 sps:$4 sm:$0xff]   ;;  %vm237_vm3 = vsmask.f32 7938 }
  0x6f   :  { %516 = vmatpush1.bf16.msra.mxu0 %v6340_v6  ;;  %v335_v23 = vld [vmem:[#allocation4 + $0x12] sm:$0xff]  ;;  %vm7437_vm5 = vmand %vm236_vm4, %vm237_vm3  ;;  %vm281_vm6 = vcmask 519555   ;;  %vm282_vm7 = vsmask.f32 7950  ;;  %vm276_vm8 = vcmask 388352   ;;  %vm318_vm11 = vcmask 519552  }
  0x70   :  { %517 = vmatprep.subr.bf16.mxu0 %v6342_v9  ;;  %v6224_v25 = vpack.c.bf16 %v335_v23, %v335_v23  ;;  %vm7442_vm9 = vmand %vm281_vm6, %vm282_vm7  ;;  %v239_v33 = vld [vmem:[#allocation2] sm:$0xf]  ;;  %vm321_vm10 = vsmask.f32 3328  ;;  %vm361_vm13 = vcmask 650752   ;;  %vm330_vm15 = vcmask 650755  }
  0x71   :  { %351 = vrot.lane.b32.xlu1 %v6223_v2, %s7262_s2  ;;  %6296 = vmatpush3.bf16.msra.mxu1 %v6341_v7  ;;  %vm7453_vm12 = vmand %vm318_vm11, %vm321_vm10  ;;  %v244_v46 = vld [vmem:[#allocation2 + $0x8] sm:$0xf]  ;;  %vm363_vm0 = vcmask 649728   ;;  %vm498_vm1 = vcmask 654336   ;;  %v7477_v60 = vshrl.u32 %v393_v59, 7  ;;  %s7267_s19 = smov 96  }
  0x72   :  { %308 = vrot.lane.b32.xlu0 %v6219_v5, %s7266_s7  ;;  %6297 = vmatprep.subr.bf16.mxu1 %v6345_v13  ;;  %v7482_v62 = vld [vmem:[#allocation9] sm:$0x7]  ;;  %v6373_v37 = vld [vmem:[#allocation10 + $0x2e4] ss:$16 sps:$4 sm:$0xff]   ;;  %vm1457_vm2 = vcmask 261127   ;;  %vm643_vm6 = vcmask 785408  }
  0x73   :  { %518 = vmatpush1.bf16.msra.mxu0 %v6344_v12  ;;  %v7480_v61 = vsub.s32 1, %v7477_v60  ;;  %v7485_v63 = vsub.s32 2, %v7477_v60  ;;  %v6395_v59 = vld [vmem:[#allocation10 + $0x260] ss:$16 sps:$4 sm:$0xff]   ;;  %s7272_s3 = smov [#allocation16]  }
  0x74   :  { %519 = vmatprep.subr.bf16.mxu0 %v6346_v17  ;;  %s5615_s30 = sshll.u32 %s7272_s3, 4  ;;  %s5616_s30 = int_to_ptr.vmem [resolvable:$true] %s5615_s30 }
  0x75   :  { %268 = vrot.lane.b32.xlu1 %v7384_v19, %s7265_s5  ;;  %6298 = vmatpush3.bf16.msra.mxu1 %v6345_v13  ;;  %v6221_v19 = vpack.c.bf16 %v293_v16, %v293_v16  ;;  %v400_v1 = vrot.slane %v7482_v62, %v7480_v61  ;;  %v404_v4 = vrot.slane %v7482_v62, %v7485_v63  ;;  %s7219_s10 = scalar_lea.vmem %s5616_s30, 32  ;;  %p7224_p8 = scmp.lt.s32.totalorder %s5616_s30, %s5616_s30 }
  0x76   :  { %349 = vrot.lane.b32.xlu0 %v6222_v10, %s7262_s2  ;;  %6299 = vmatprep.subr.bf16.mxu1 %v6349_v20  ;;  %p7220_p7 = scmp.ne.s32.totalorder %s5616_s30, %s7219_s10  ;;  %p7225_p9 = scmp.lt.s32.totalorder %s7219_s10, %s7219_s10 }
  0x77   :  { %520 = vmatpush1.bf16.msra.mxu0 %v6348_v18 }
  0x78   :  { %p7226_p10 = por %p7225_p9, %p7224_p8 }
  0x79   :  { %310 = vrot.lane.b32.xlu1 %v6220_v15, %s7266_s7  ;;  %6300 = vmatpush3.bf16.msra.mxu1 %v6349_v20 }
  0x7a   :  { %228 = vrot.lane.b32.xlu0 %v214_v21, %s7254_s20  ;;  %6301 = vmatprep.subr.bf16.mxu1 %v6351_v24  ;;  %p7227_p11 = pnand %p7226_p10, %p7220_p7 }
  0x7d   :  { %355 = vrot.lane.b32.xlu1 %v6225_v22, %s7262_s2  ;;  %6302 = vmatpush3.bf16.msra.mxu1 %v6351_v24 }
  0x7e   :  { %312 = vrot.lane.b32.xlu0 %v6221_v19, %s7266_s7  ;;  %2822 = vmatprep.subr.bf16.mxu1 %v6373_v37  ;;  %v6388_v37 = vld [vmem:[#allocation10 + $0x1e4] ss:$16 sps:$4 sm:$0xff]  }
  0x82   :  { %353 = vrot.lane.b32.xlu0 %v6224_v25, %s7262_s2 }
  0xd0   :  { %v271_v26 = vpop.permute.xlu1 %270 }
  0xd4   :  { %v265_v27 = vpop.permute.xlu1 %264 }
  0xd8   :  { %v227_v29 = vpop.permute.xlu0 %226 }
  0xd9   :  { %243 = vst.msk [vmem:[#allocation2 + $0x4] sm:$0xf] %vm236_vm4, %v227_v29 }
  0xdb   :  { %v231_v31 = vpop.permute.xlu1 %230 }
  0xdc   :  { %247 = vst.msk [vmem:[#allocation2 + $0xc] sm:$0xf] %vm236_vm4, %v231_v31  ;;  %v267_v32 = vpop.permute.xlu0 %266  ;;  %v6353_v31 = vld [vmem:[#allocation10 + $0xe0] ss:$16 sps:$4 sm:$0xff]   ;;  %vm8217_vm4 = vcmask 1043459  }
  0xdd   :  { %280 = vst.msk [vmem:[#allocation2 + $0xc] sm:$0xf] %vm276_vm8, %v271_v26  ;;  %278 = vst.msk [vmem:[#allocation2 + $0x4] sm:$0xf] %vm276_vm8, %v267_v32  ;;  %v6355_v32 = vld [vmem:[#allocation10 + $0xe4] ss:$16 sps:$4 sm:$0xff]  }
  0xde   :  { %2779 = vmatprep.subr.bf16.mxu0 %v6355_v32  ;;  %v6380_v32 = vld [vmem:[#allocation10] ss:$16 sps:$4 sm:$0xff]  }
  0xdf   :  { %v307_v34 = vpop.permute.xlu1 %306 }
  0xe0   :  { %v225_v35 = vpop.permute.xlu0 %224 }
  0xe1   :  { %v240_v36 = vsel %vm7437_vm5, %v225_v35, %v239_v33  ;;  %v6358_v33 = vld [vmem:[#allocation10 + $0xc4] ss:$16 sps:$4 sm:$0xff]  }
  0xe2   :  { %241 = vst [vmem:[#allocation2] sm:$0xf] %v240_v36  ;;  %v6361_v35 = vld [vmem:[#allocation10 + $0xa4] ss:$16 sps:$4 sm:$0xff]   ;;  %v6371_v36 = vld [vmem:[#allocation10 + $0x2e0] ss:$16 sps:$4 sm:$0xff]  }
  0xe3   :  { %277 = vst.msk [vmem:[#allocation2] sm:$0xf] %vm276_vm8, %v265_v27  ;;  %v352_v38 = vpop.permute.xlu1 %351 }
  0xe4   :  { %v287_v39 = vld [vmem:[#allocation2 + $0xc] sm:$0x8]  ;;  %v284_v40 = vld [vmem:[#allocation2 + $0x4] sm:$0x8]  ;;  %v309_v41 = vpop.permute.xlu0 %308  ;;  %319 = vst.msk [vmem:[#allocation2] sm:$0xf] %vm318_vm11, %v307_v34 }
  0xe5   :  { %v288_v42 = vsel %vm7442_vm9, 0, %v287_v39  ;;  %v285_v43 = vsel %vm7442_vm9, 0, %v284_v40  ;;  %v6356_v34 = vld [vmem:[#allocation10 + $0xc0] ss:$16 sps:$4 sm:$0xff]   ;;  %vm1298_vm9 = vcmask 1041409  }
  0xe6   :  { %289 = vst [vmem:[#allocation2 + $0xc] sm:$0x8] %v288_v42  ;;  %286 = vst [vmem:[#allocation2 + $0x4] sm:$0x8] %v285_v43  ;;  %v6359_v39 = vld [vmem:[#allocation10 + $0xa0] ss:$16 sps:$4 sm:$0xff]  }
  0xe7   :  { %v269_v44 = vpop.permute.xlu1 %268  ;;  %v6377_v40 = vld [vmem:[#allocation10 + $0x2c0] ss:$16 sps:$4 sm:$0xff]   ;;  %v6385_v42 = vld [vmem:[#allocation10 + $0x2a4] ss:$16 sps:$4 sm:$0xff]   ;;  %v7528_v43 = vsub.s32 0, %v7477_v60 }
  0xe8   :  { %v350_v45 = vpop.permute.xlu0 %349 }
  0xe9   :  { %362 = vst.msk [vmem:[#allocation2] sm:$0xf] %vm361_vm13, %v350_v45  ;;  %v6383_v45 = vld [vmem:[#allocation10 + $0x2a0] ss:$16 sps:$4 sm:$0xff]  }
  0xeb   :  { %v311_v47 = vpop.permute.xlu1 %310 }
  0xec   :  { %v229_v48 = vpop.permute.xlu0 %228 }
  0xed   :  { %v323_v49 = vld [vmem:[#allocation2 + $0x4] sm:$0xf]  ;;  %v245_v50 = vsel %vm7437_vm5, %v229_v48, %v244_v46  ;;  %v327_v52 = vld [vmem:[#allocation2 + $0xc] sm:$0xf]  ;;  %v6367_v46 = vld [vmem:[#allocation10 + $0x64] ss:$16 sps:$4 sm:$0xff]   ;;  %v396_v48 = vrot.slane %v7482_v62, %v7528_v43 }
  0xee   :  { %v324_v51 = vsel %vm7453_vm12, %v309_v41, %v323_v49  ;;  %246 = vst [vmem:[#allocation2 + $0x8] sm:$0xf] %v245_v50  ;;  %v6364_v41 = vld [vmem:[#allocation10 + $0x84] ss:$16 sps:$4 sm:$0xff]   ;;  %v6365_v49 = vld [vmem:[#allocation10 + $0x60] ss:$16 sps:$4 sm:$0xff]   ;;  %vm1458_vm5 = vmor %vm1457_vm2, %vm8217_vm4 }
  0xef   :  { %325 = vst [vmem:[#allocation2 + $0x4] sm:$0xf] %v324_v51  ;;  %279 = vst.msk [vmem:[#allocation2 + $0x8] sm:$0xf] %vm276_vm8, %v269_v44  ;;  %v356_v54 = vpop.permute.xlu1 %355  ;;  %v6362_v44 = vld [vmem:[#allocation10 + $0x80] ss:$16 sps:$4 sm:$0xff]  }
  0xf0   :  { %331 = vst.msk [vmem:[#allocation2 + $0x4] sm:$0x8] %vm330_vm15, %v8215_v0  ;;  %v313_v53 = vpop.permute.xlu0 %312  ;;  %v6389_v50 = vld [vmem:[#allocation10 + $0x280] ss:$16 sps:$4 sm:$0xff]   ;;  %vm1129_vm8 = vcmask 1045509   ;;  %vm1174_vm2 = vcmask 1043457  }
  0xf1   :  { %364 = vst.msk [vmem:[#allocation2 + $0x4] sm:$0x7] %vm363_vm0, %v352_v38  ;;  %v328_v55 = vsel %vm7453_vm12, %v313_v53, %v327_v52  ;;  %v6379_v38 = vld [vmem:[#allocation10 + $0x2c4] ss:$16 sps:$4 sm:$0xff]   ;;  %vm8218_vm12 = vcmask 1046534  }
  0xf2   :  { %326 = vst.msk [vmem:[#allocation2 + $0x8] sm:$0xf] %vm318_vm11, %v311_v47  ;;  %329 = vst [vmem:[#allocation2 + $0xc] sm:$0xf] %v328_v55  ;;  %v6391_v47 = vld [vmem:[#allocation10 + $0x284] ss:$16 sps:$4 sm:$0xff]  }
  0xf3   :  { %332 = vst.msk [vmem:[#allocation2 + $0xc] sm:$0x8] %vm330_vm15, %v8215_v0  ;;  %v6370_v52 = vld [vmem:[#allocation10 + $0x44] ss:$16 sps:$4 sm:$0xff]   ;;  %vm8219_vm11 = vcmask 1042434   ;;  %vm1505_vm15 = vcmask 1042432  }
  0xf4   :  { %366 = vst.msk [vmem:[#allocation2 + $0xc] sm:$0x7] %vm363_vm0, %v356_v54  ;;  %v354_v56 = vpop.permute.xlu0 %353  ;;  %v6397_v53 = vld [vmem:[#allocation10 + $0x264] ss:$16 sps:$4 sm:$0xff]   ;;  %v7268_v54 = vmov 1983009808  }
  0xf5   :  { %365 = vst.msk [vmem:[#allocation2 + $0x8] sm:$0xf] %vm361_vm13, %v354_v56  ;;  %v675_v55 = vunpack.c.l.s4 %v7268_v54  ;;  %vm1135_vm13 = vcmask 1047559   ;;  %vm1506_vm0 = vcmask 260100  }
  0xf6   :  { %1459 = vst.msk [vmem:[#allocation3 + $0x14] sm:$0x88] %vm1458_vm5, %v8215_v0  ;;  %1460 = vst.msk [vmem:[#allocation3 + $0x30] sm:$0x88] %vm1458_vm5, %v8215_v0  ;;  %vm1175_vm5 = vcmask 261125  }
  0xf8   :  { %v6350_v57 = vld [vmem:[#allocation2] sm:$0xff]  }
  0xf9   :  { %5664 = vmatmul.mubr.msk.bf16.vlgmr.msra.gmra.mxu0 %vm498_vm1, %v6350_v57  ;;  %6303 = vmatprep.mubr.msk.bf16.mxu1 %vm498_vm1, %v6350_v57 }
  0xfa   :  { %547 = vmatprep.mubr.bf16.mxu0 %v8215_v0  ;;  %2780 = vmatpush1.bf16.msra.mxu0 %v6353_v31 }
  0xfb   :  { %2781 = vmatprep.subr.bf16.mxu0 %v6358_v33  ;;  %v6407_v33 = vld [vmem:[#allocation10 + $0x220] ss:$16 sps:$4 sm:$0xff]  }
  0xfc   :  { %v6352_v58 = vld [vmem:[#allocation2 + $0x8] sm:$0xff]  }
  0xfd   :  { %6304 = vmatmul.mubr.msk.bf16.vlgmr.msra.gmra.mxu1 %vm498_vm1, %v6352_v58 }
  0xfe   :  { %2782 = vmatpush1.bf16.msra.mxu0 %v6356_v34  ;;  %2823 = vmatpush1.bf16.msra.mxu1 %v6371_v36 }
  0xff   :  { %2783 = vmatprep.subr.bf16.mxu0 %v6361_v35  ;;  %2824 = vmatprep.subr.bf16.mxu1 %v6379_v38 }
 0x101   :  { %5665 = vmatmul.mubr.msk.bf16.gmra.mxu0 %vm498_vm1, %v6352_v58  ;;  %v6368_v58 = vld [vmem:[#allocation10 + $0x40] ss:$16 sps:$4 sm:$0xff]   ;;  %vm7873_vm1 = vmor %vm1506_vm0, %vm1505_vm15  ;;  %vm1271_vm15 = vcmask 1043712   ;;  %vm1273_vm0 = vcmask 523268  }
 0x102   :  { %2784 = vmatpush1.bf16.msra.mxu0 %v6359_v39  ;;  %2825 = vmatpush1.bf16.msra.mxu1 %v6377_v40 }
 0x103   :  { %2785 = vmatprep.subr.bf16.mxu0 %v6364_v41  ;;  %2826 = vmatprep.subr.bf16.mxu1 %v6385_v42 }
 0x106   :  { %2786 = vmatpush1.bf16.msra.mxu0 %v6362_v44  ;;  %2827 = vmatpush1.bf16.msra.mxu1 %v6383_v45 }
 0x107   :  { %2787 = vmatprep.subr.bf16.mxu0 %v6367_v46  ;;  %2828 = vmatprep.subr.bf16.mxu1 %v6391_v47 }
 0x10a   :  { %2788 = vmatpush1.bf16.msra.mxu0 %v6365_v49  ;;  %2829 = vmatpush1.bf16.msra.mxu1 %v6389_v50 }
 0x10b   :  { %2789 = vmatprep.subr.bf16.mxu0 %v6370_v52  ;;  %2830 = vmatprep.subr.bf16.mxu1 %v6397_v53  ;;  %v6394_v53 = vld [vmem:[#allocation10 + $0x1c4] ss:$16 sps:$4 sm:$0xff]  }
 0x10e   :  { %2790 = vmatpush1.bf16.msra.mxu0 %v6368_v58  ;;  %2831 = vmatpush1.bf16.msra.mxu1 %v6395_v59 }
 0x1b9   :  { %v7489_v2 = vpop.f32.mrf.mxu0 }
 0x1ba   :  { %v540_v56 = vadd.f32 %v7489_v2, %v396_v48  ;;  %v6401_v2 = vld [vmem:[#allocation10 + $0x240] ss:$16 sps:$4 sm:$0xff]  }
 0x1bb   :  { %v541_v3 = vpop.f32.mrf.mxu0 }
 0x1bc   :  { %v7493_v5 = vadd.f32 %v541_v3, %v400_v1  ;;  %v6376_v3 = vld [vmem:[#allocation10 + $0x24] ss:$16 sps:$4 sm:$0xff]  }
 0x1bd   :  { %v7495_v6 = vpop.f32.mrf.mxu0  ;;  %v6305_v8 = vpop.f32.mrf.mxu1  ;;  %2791 = vmatprep.subr.bf16.mxu0 %v6376_v3 }
 0x1be   :  { %v608_v7 = vmax.f32 %v7493_v5, 0.0  ;;  %v601_v9 = vadd.f32 %v6305_v8, %v404_v4  ;;  %v676_v8 = vunpack.c.0.s8 %v675_v55 }
 0x1bf   :  { %v545_v10 = vpop.f32.mrf.mxu0  ;;  %v592_v12 = vpop.f32.mrf.mxu1 }
 0x1c0   :  { %v7498_v11 = vadd.f32 %v545_v10, %v400_v1  ;;  %627 = vrot.lane.b32.xlu0 %v608_v7, %s7267_s19  ;;  %v615_v13 = vmax.f32 %v601_v9, 0.0  ;;  %v593_v14 = vadd.f32 %v592_v12, %v404_v4  ;;  %v607_v9 = vmax.f32 %v540_v56, 0.0  ;;  %v6374_v12 = vld [vmem:[#allocation10 + $0x20] ss:$16 sps:$4 sm:$0xff]  }
 0x1c1   :  { %v7503_v15 = vpop.f32.mrf.mxu0  ;;  %v6306_v17 = vpop.f32.mrf.mxu1  ;;  %2792 = vmatpush1.bf16.msra.mxu0 %v6374_v12 }
 0x1c2   :  { %v611_v16 = vmax.f32 %v7498_v11, 0.0  ;;  %637 = vrot.lane.b32.xlu1 %v615_v13, %s7267_s19  ;;  %v609_v22 = vmax.f32 %v593_v14, 0.0  ;;  %v604_v27 = vadd.f32 %v6306_v17, %v404_v4  ;;  %v550_v62 = vadd.f32 %v7503_v15, %v396_v48 }
 0x1c3   :  { %v551_v18 = vpop.f32.mrf.mxu0  ;;  %v595_v21 = vpop.f32.mrf.mxu1  ;;  %v544_v13 = vadd.f32 %v7495_v6, %v396_v48  ;;  %v6409_v6 = vld [vmem:[#allocation10 + $0x224] ss:$16 sps:$4 sm:$0xff]  }
 0x1c4   :  { %v7507_v20 = vadd.f32 %v551_v18, %v400_v1  ;;  %631 = vrot.lane.b32.xlu0 %v611_v16, %s7267_s19  ;;  %v596_v23 = vadd.f32 %v595_v21, %v404_v4  ;;  %v618_v30 = vmax.f32 %v604_v27, 0.0  ;;  %v6403_v4 = vld [vmem:[#allocation10 + $0x244] ss:$16 sps:$4 sm:$0xff]   ;;  %v613_v14 = vmax.f32 %v550_v62, 0.0 }
 0x1c5   :  { %v7512_v24 = vpop.f32.mrf.mxu0  ;;  %v6382_v21 = vld [vmem:[#allocation10 + $0x4] ss:$16 sps:$4 sm:$0xff]   ;;  %2832 = vmatprep.subr.bf16.mxu1 %v6403_v4  ;;  %v610_v34 = vmax.f32 %v544_v13, 0.0 }
 0x1c6   :  { %v614_v19 = vmax.f32 %v7507_v20, 0.0  ;;  %629 = vrot.lane.b32.xlu1 %v609_v22, %s7267_s19  ;;  %v612_v28 = vmax.f32 %v596_v23, 0.0  ;;  %v7542_v22 = vsub.s32 %v676_v8, %v7477_v60  ;;  %v7545_v23 = vadd.f32 %v7512_v24, %v396_v48  ;;  %2833 = vmatpush1.bf16.msra.mxu1 %v6401_v2  ;;  %v6386_v48 = vld [vmem:[#allocation10 + $0x1e0] ss:$16 sps:$4 sm:$0xff]   ;;  %v6400_v13 = vld [vmem:[#allocation10 + $0x1a4] ss:$16 sps:$4 sm:$0xff]  }
 0x1c7   :  { %v555_v25 = vpop.f32.mrf.mxu0  ;;  %2793 = vmatprep.subr.bf16.mxu0 %v6382_v21  ;;  %2834 = vmatprep.subr.bf16.mxu1 %v6409_v6  ;;  %v6392_v8 = vld [vmem:[#allocation10 + $0x1c0] ss:$16 sps:$4 sm:$0xff]  }
 0x1c8   :  { %v7516_v26 = vadd.f32 %v555_v25, %v400_v1  ;;  %635 = vrot.lane.b32.xlu0 %v614_v19, %s7267_s19  ;;  %v616_v38 = vmax.f32 %v7545_v23, 0.0  ;;  %2794 = vmatpush1.bf16.msra.mxu0 %v6380_v32 }
 0x1c9   :  { %2795 = vmatprep.subr.bf16.mxu0 %v6388_v37 }
 0x1ca   :  { %v617_v29 = vmax.f32 %v7516_v26, 0.0  ;;  %633 = vrot.lane.b32.xlu1 %v612_v28, %s7267_s19  ;;  %2835 = vmatpush1.bf16.msra.mxu1 %v6407_v33 }
 0x1cc   :  { %639 = vrot.lane.b32.xlu0 %v617_v29, %s7267_s19  ;;  %2796 = vmatpush2.bf16.msra.mxu0 %v6386_v48 }
 0x1cd   :  { %2797 = vmatprep.subr.bf16.mxu0 %v6394_v53 }
 0x1ce   :  { %641 = vrot.lane.b32.xlu1 %v618_v30, %s7267_s19 }
 0x1d0   :  { %2798 = vmatpush2.bf16.msra.mxu0 %v6392_v8 }
 0x1d1   :  { %2799 = vmatprep.subr.bf16.mxu0 %v6400_v13 }
 0x232   :  { %v628_v51 = vpop.permute.xlu0 %627 }
 0x234   :  { %v638_v57 = vpop.permute.xlu1 %637 }
 0x235   :  { %v661_v28 = vmax.f32 %v614_v19, %v638_v57 }
 0x236   :  { %v632_v1 = vpop.permute.xlu0 %631 }
 0x238   :  { %v630_v10 = vpop.permute.xlu1 %629 }
 0x239   :  { %v644_v17 = vsel %vm643_vm6, %v628_v51, %v630_v10  ;;  %v657_v15 = vmax.f32 %v608_v7, %v630_v10 }
 0x23a   :  { %v636_v18 = vpop.permute.xlu0 %635  ;;  %v656_v25 = vmax.f32 %v607_v9, %v644_v17 }
 0x23b   :  { %v646_v27 = vsel %vm643_vm6, %v636_v18, %v638_v57 }
 0x23c   :  { %v660_v30 = vmax.f32 %v613_v14, %v646_v27  ;;  %v672_v5 = vcombine.low %v656_v25, %v657_v15  ;;  %v673_v7 = vcombine.high %v656_v25, %v657_v15  ;;  %v634_v31 = vpop.permute.xlu1 %633 }
 0x23d   :  { %v645_v24 = vsel %vm643_vm6, %v632_v1, %v634_v31  ;;  %v7560_v42 = vmax.f32 %v611_v16, %v634_v31  ;;  %v6398_v31 = vld [vmem:[#allocation10 + $0x1a0] ss:$16 sps:$4 sm:$0xff]  }
 0x23e   :  { %v708_v35 = vcombine.low %v660_v30, %v661_v28  ;;  %v709_v36 = vcombine.high %v660_v30, %v661_v28  ;;  %v680_v20 = vrot.slane %v672_v5, %v7542_v22  ;;  %v687_v19 = vrot.slane %v673_v7, %v7542_v22  ;;  %2800 = vmatpush2.bf16.msra.mxu0 %v6398_v31 }
 0x23f   :  { %v7556_v41 = vmax.f32 %v610_v34, %v645_v24 }
 0x240   :  { %v716_v39 = vrot.slane %v708_v35, %v7542_v22  ;;  %v723_v40 = vrot.slane %v709_v36, %v7542_v22  ;;  %v688_v44 = vcombine.high %v680_v20, %v680_v20  ;;  %v689_v45 = vcombine.high %v687_v19, %v687_v19  ;;  %v6406_v36 = vld [vmem:[#allocation10 + $0x184] ss:$16 sps:$4 sm:$0xff]  }
 0x241   :  { %v5668_v46 = vrot.slane %v680_v20, 9  ;;  %v5670_v47 = vrot.slane %v687_v19, 9  ;;  %2801 = vmatprep.subr.bf16.mxu0 %v6406_v36  ;;  %v642_v36 = vpop.permute.xlu1 %641 }
 0x242   :  { %v724_v49 = vcombine.high %v716_v39, %v716_v39  ;;  %v725_v50 = vcombine.high %v723_v40, %v723_v40  ;;  %v5676_v51 = vrot.slane %v716_v39, 9  ;;  %v5678_v52 = vrot.slane %v723_v40, 9 }
 0x243   :  { %v5669_v54 = vrot.slane %v688_v44, 9  ;;  %v5671_v55 = vrot.slane %v689_v45, 9  ;;  %v808_v56 = vmax.f32 %v680_v20, %v5668_v46  ;;  %v810_v57 = vmax.f32 %v687_v19, %v5670_v47 }
 0x244   :  { %v5677_v11 = vrot.slane %v724_v49, 9  ;;  %v5679_v16 = vrot.slane %v725_v50, 9  ;;  %v7562_v58 = vmax.f32 %v716_v39, %v5676_v51  ;;  %v7564_v59 = vmax.f32 %v723_v40, %v5678_v52 }
 0x245   :  { %v809_v62 = vmax.f32 %v688_v44, %v5669_v54  ;;  %v811_v1 = vmax.f32 %v689_v45, %v5671_v55  ;;  %v843_v3 = vrot.slane %v808_v56, %v7528_v43  ;;  %v847_v4 = vrot.slane %v808_v56, %v7485_v63 }
 0x246   :  { %v859_v9 = vrot.slane %v810_v57, %v7528_v43  ;;  %v863_v10 = vrot.slane %v810_v57, %v7485_v63  ;;  %v817_v12 = vmax.f32 %v724_v49, %v5677_v11  ;;  %v819_v2 = vmax.f32 %v725_v50, %v5679_v16  ;;  %v6404_v50 = vld [vmem:[#allocation10 + $0x180] ss:$16 sps:$4 sm:$0xff]  }
 0x247   :  { %v851_v14 = vrot.slane %v809_v62, %v7528_v43  ;;  %v855_v17 = vrot.slane %v809_v62, %v7485_v63  ;;  %v867_v15 = vrot.slane %v811_v1, %v7528_v43  ;;  %v871_v18 = vrot.slane %v811_v1, %v7485_v63  ;;  %2802 = vmatpush2.bf16.msra.mxu0 %v6404_v50  ;;  %v640_v50 = vpop.permute.xlu0 %639 }
 0x248   :  { %v6226_v21 = vpack.c.bf16 %v847_v4, %v843_v3  ;;  %v6228_v25 = vpack.c.bf16 %v863_v10, %v859_v9  ;;  %v907_v27 = vrot.slane %v7562_v58, %v7528_v43  ;;  %v911_v6 = vrot.slane %v7562_v58, %v7485_v63 }
 0x249   :  { %v6227_v28 = vpack.c.bf16 %v855_v17, %v851_v14  ;;  %v6229_v30 = vpack.c.bf16 %v871_v18, %v867_v15  ;;  %v915_v5 = vrot.slane %v817_v12, %v7528_v43  ;;  %v919_v7 = vrot.slane %v817_v12, %v7485_v63 }
 0x24a   :  { %v7580_v32 = vunpack.c.l.b16 %v6226_v21  ;;  %v7582_v33 = vunpack.c.h.b16 %v6226_v21  ;;  %v7584_v34 = vunpack.c.l.b16 %v6228_v25  ;;  %v7586_v35 = vunpack.c.h.b16 %v6228_v25 }
 0x24b   :  { %v7588_v24 = vunpack.c.l.b16 %v6227_v28  ;;  %v7590_v37 = vunpack.c.h.b16 %v6227_v28  ;;  %v7592_v20 = vunpack.c.l.b16 %v6229_v30  ;;  %v7594_v19 = vunpack.c.h.b16 %v6229_v30 }
 0x24c   :  { %v1121_v39 = vrot.slane %v7580_v32, 6  ;;  %v1125_v40 = vrot.slane %v7584_v34, 4  ;;  %v1137_v44 = vrot.slane %v7582_v33, 6  ;;  %v1140_v45 = vrot.slane %v7586_v35, 4 }
 0x24d   :  { %v1122_v46 = vrot.slane %v7588_v24, 5  ;;  %v1128_v47 = vrot.slane %v7592_v20, 3  ;;  %v1138_v48 = vrot.slane %v7590_v37, 5  ;;  %v1142_v49 = vrot.slane %v7594_v19, 3 }
 0x24e   :  { %v1461_v51 = vrot.slane %v7592_v20, 7  ;;  %v1471_v52 = vrot.slane %v7594_v19, 7  ;;  %v923_v53 = vrot.slane %v7564_v59, %v7528_v43  ;;  %v927_v54 = vrot.slane %v7564_v59, %v7485_v63 }
 0x24f   :  { %v1124_v55 = vsel %vm8217_vm4, %v1122_v46, %v1121_v39  ;;  %v1139_v56 = vsel %vm8217_vm4, %v1138_v48, %v1137_v44  ;;  %v931_v57 = vrot.slane %v819_v2, %v7528_v43  ;;  %v935_v11 = vrot.slane %v819_v2, %v7485_v63 }
 0x250   :  { %v1127_v16 = vsel %vm145_vm14, %v1125_v40, %v1124_v55  ;;  %v1141_v58 = vsel %vm145_vm14, %v1140_v45, %v1139_v56  ;;  %v7618_v62 = vsel %vm1298_vm9, %v1461_v51, %v7584_v34  ;;  %v7622_v59 = vsel %vm1298_vm9, %v1471_v52, %v7586_v35 }
 0x251   :  { %v7625_v1 = vsel %vm1129_vm8, %v1128_v47, %v1127_v16  ;;  %v7628_v3 = vsel %vm1129_vm8, %v1142_v49, %v1141_v58  ;;  %v6232_v4 = vpack.c.bf16 %v911_v6, %v907_v27  ;;  %v6233_v8 = vpack.c.bf16 %v919_v7, %v915_v5 }
 0x252   :  { %v6234_v9 = vpack.c.bf16 %v927_v54, %v923_v53  ;;  %v6235_v10 = vpack.c.bf16 %v935_v11, %v931_v57  ;;  %v690_v12 = vcombine.low %v7556_v41, %v7560_v42  ;;  %v691_v2 = vcombine.high %v7556_v41, %v7560_v42 }
 0x253   :  { %v7634_v13 = vunpack.c.l.b16 %v6232_v4  ;;  %v7636_v14 = vunpack.c.h.b16 %v6232_v4  ;;  %v7638_v17 = vunpack.c.l.b16 %v6233_v8  ;;  %v7640_v15 = vunpack.c.h.b16 %v6233_v8 }
 0x254   :  { %v7642_v18 = vunpack.c.l.b16 %v6234_v9  ;;  %v7644_v21 = vunpack.c.h.b16 %v6234_v9  ;;  %v7646_v25 = vunpack.c.l.b16 %v6235_v10  ;;  %v7648_v27 = vunpack.c.h.b16 %v6235_v10 }
 0x255   :  { %v1148_v6 = vrot.slane %v7634_v13, 6  ;;  %v1149_v41 = vrot.slane %v7638_v17, 5  ;;  %v1159_v42 = vrot.slane %v7636_v14, 6  ;;  %v1160_v28 = vrot.slane %v7640_v15, 5 }
 0x256   :  { %v1151_v30 = vrot.slane %v7642_v18, 4  ;;  %v1153_v5 = vrot.slane %v7646_v25, 3  ;;  %v1162_v7 = vrot.slane %v7644_v21, 4  ;;  %v1164_v31 = vrot.slane %v7648_v27, 3 }
 0x257   :  { %v1150_v39 = vsel %vm8217_vm4, %v1149_v41, %v1148_v6  ;;  %v1161_v40 = vsel %vm8217_vm4, %v1160_v28, %v1159_v42  ;;  %v698_v48 = vrot.slane %v690_v12, %v7542_v22  ;;  %v705_v49 = vrot.slane %v691_v2, %v7542_v22 }
 0x258   :  { %v1152_v46 = vsel %vm145_vm14, %v1151_v30, %v1150_v39  ;;  %v1163_v47 = vsel %vm145_vm14, %v1162_v7, %v1161_v40  ;;  %v647_v53 = vsel %vm643_vm6, %v640_v50, %v642_v36  ;;  %v663_v54 = vmax.f32 %v617_v29, %v642_v36 }
 0x259   :  { %v7667_v51 = vsel %vm1129_vm8, %v1153_v5, %v1152_v46  ;;  %v7670_v52 = vsel %vm1129_vm8, %v1164_v31, %v1163_v47  ;;  %v706_v55 = vcombine.high %v698_v48, %v698_v48  ;;  %v707_v56 = vcombine.high %v705_v49, %v705_v49 }
 0x25a   :  { %v5672_v57 = vrot.slane %v698_v48, 9  ;;  %v5674_v11 = vrot.slane %v705_v49, 9  ;;  %v662_v16 = vmax.f32 %v616_v38, %v647_v53  ;;  %v1205_v58 = vrot.slane %v7580_v32, 7 }
 0x25b   :  { %v1206_v4 = vrot.slane %v7588_v24, 6  ;;  %v1209_v8 = vrot.slane %v7584_v34, 5  ;;  %v5673_v9 = vrot.slane %v706_v55, 9  ;;  %v5675_v10 = vrot.slane %v707_v56, 9 }
 0x25c   :  { %v812_v12 = vmax.f32 %v698_v48, %v5672_v57  ;;  %v814_v2 = vmax.f32 %v705_v49, %v5674_v11  ;;  %v726_v6 = vcombine.low %v662_v16, %v663_v54  ;;  %v727_v26 = vcombine.high %v662_v16, %v663_v54 }
 0x25d   :  { %v1208_v29 = vsel %vm8219_vm11, %v1206_v4, %v1205_v58  ;;  %v1211_v41 = vrot.slane %v7592_v20, 4  ;;  %v813_v42 = vmax.f32 %v706_v55, %v5673_v9  ;;  %v7682_v28 = vmax.f32 %v707_v56, %v5675_v10 }
 0x25e   :  { %v875_v23 = vrot.slane %v812_v12, %v7528_v43  ;;  %v879_v38 = vrot.slane %v812_v12, %v7485_v63  ;;  %v891_v30 = vrot.slane %v814_v2, %v7528_v43  ;;  %v895_v5 = vrot.slane %v814_v2, %v7485_v63 }
 0x25f   :  { %v734_v7 = vrot.slane %v726_v6, %v7542_v22  ;;  %v741_v31 = vrot.slane %v727_v26, %v7542_v22  ;;  %v883_v36 = vrot.slane %v813_v42, %v7528_v43  ;;  %v887_v39 = vrot.slane %v813_v42, %v7485_v63 }
 0x260   :  { %v6230_v47 = vpack.c.bf16 %v879_v38, %v875_v23  ;;  %v6238_v48 = vpack.c.bf16 %v895_v5, %v891_v30  ;;  %v1210_v56 = vsel %vm8217_vm4, %v1209_v8, %v1208_v29  ;;  %v1222_v6 = vrot.slane %v7586_v35, 5 }
 0x261   :  { %v742_v49 = vcombine.high %v734_v7, %v734_v7  ;;  %v743_v50 = vcombine.high %v741_v31, %v741_v31  ;;  %v6231_v53 = vpack.c.bf16 %v887_v39, %v883_v36  ;;  %v5680_v54 = vrot.slane %v734_v7, 9 }
 0x262   :  { %v5682_v55 = vrot.slane %v741_v31, 9  ;;  %v7697_v57 = vunpack.c.l.b16 %v6230_v47  ;;  %v7699_v11 = vunpack.c.h.b16 %v6230_v47  ;;  %v7701_v16 = vunpack.c.l.b16 %v6238_v48 }
 0x263   :  { %v7703_v58 = vunpack.c.h.b16 %v6238_v48  ;;  %v7705_v4 = vunpack.c.l.b16 %v6231_v53  ;;  %v7707_v9 = vunpack.c.h.b16 %v6231_v53  ;;  %v5681_v10 = vrot.slane %v742_v49, 9 }
 0x264   :  { %v5683_v12 = vrot.slane %v743_v50, 9  ;;  %v820_v30 = vmax.f32 %v734_v7, %v5680_v54  ;;  %v822_v36 = vmax.f32 %v741_v31, %v5682_v55  ;;  %v1212_v47 = vsel %vm145_vm14, %v1211_v41, %v1210_v56 }
 0x265   :  { %v821_v5 = vmax.f32 %v742_v49, %v5681_v10  ;;  %v1213_v48 = vrot.slane %v7697_v57, 3  ;;  %v1215_v53 = vrot.slane %v7705_v4, 2  ;;  %v1217_v0 = vrot.slane %v7701_v16, 1 }
 0x266   :  { %v7717_v39 = vmax.f32 %v743_v50, %v5683_v12  ;;  %v939_v29 = vrot.slane %v820_v30, %v7528_v43  ;;  %v943_v2 = vrot.slane %v820_v30, %v7485_v63  ;;  %v955_v31 = vrot.slane %v822_v36, %v7528_v43  ;;  %v6415_v50 = vld [vmem:[#allocation10 + $0x204] ss:$16 sps:$4 sm:$0xff]  }
 0x267   :  { %v947_v42 = vrot.slane %v821_v5, %v7528_v43  ;;  %v951_v7 = vrot.slane %v821_v5, %v7485_v63  ;;  %v959_v49 = vrot.slane %v822_v36, %v7485_v63  ;;  %v1214_v56 = vsel %vm1129_vm8, %v1213_v48, %v1212_v47  ;;  %2836 = vmatprep.subr.bf16.mxu1 %v6415_v50 }
 0x268   :  { %v6236_v54 = vpack.c.bf16 %v943_v2, %v939_v29  ;;  %v1219_v10 = vrot.slane %v7582_v33, 7  ;;  %v1216_v30 = vsel %vm8218_vm12, %v1215_v53, %v1214_v56  ;;  %v1220_v5 = vrot.slane %v7590_v37, 6  ;;  %v6412_v53 = vld [vmem:[#allocation10 + $0x164] ss:$16 sps:$4 sm:$0xff]  }
 0x269   :  { %v6237_v55 = vpack.c.bf16 %v951_v7, %v947_v42  ;;  %v6239_v12 = vpack.c.bf16 %v959_v49, %v955_v31  ;;  %v1218_v42 = vsel %vm1135_vm13, %v1217_v0, %v1216_v30  ;;  %v1226_v30 = vrot.slane %v7699_v11, 3  ;;  %2803 = vmatprep.subr.bf16.mxu0 %v6412_v53 }
 0x26a   :  { %v7738_v36 = vunpack.c.l.b16 %v6236_v54  ;;  %v7740_v45 = vunpack.c.h.b16 %v6236_v54  ;;  %v1221_v47 = vsel %vm8219_vm11, %v1220_v5, %v1219_v10  ;;  %v1224_v10 = vrot.slane %v7594_v19, 4 }
 0x26b   :  { %v7742_v44 = vunpack.c.l.b16 %v6237_v55  ;;  %v7744_v38 = vunpack.c.h.b16 %v6237_v55  ;;  %v7746_v2 = vunpack.c.l.b16 %v6239_v12  ;;  %v7748_v29 = vunpack.c.h.b16 %v6239_v12  ;;  %v6410_v12 = vld [vmem:[#allocation10 + $0x160] ss:$16 sps:$4 sm:$0xff]  }
 0x26c   :  { %v1223_v0 = vsel %vm8217_vm4, %v1222_v6, %v1221_v47  ;;  %v1228_v5 = vrot.slane %v7707_v9, 2  ;;  %v1230_v31 = vrot.slane %v7703_v58, 1  ;;  %v1232_v7 = vrot.slane %v7634_v13, 7  ;;  %v6413_v55 = vld [vmem:[#allocation10 + $0x200] ss:$16 sps:$4 sm:$0xff]   ;;  %2804 = vmatpush2.bf16.msra.mxu0 %v6410_v12 }
 0x26d   :  { %v1233_v48 = vrot.slane %v7638_v17, 6  ;;  %v1235_v54 = vrot.slane %v7642_v18, 5  ;;  %v1225_v56 = vsel %vm145_vm14, %v1224_v10, %v1223_v0  ;;  %v1237_v6 = vrot.slane %v7646_v25, 4  ;;  %2837 = vmatpush1.bf16.msra.mxu1 %v6413_v55 }
 0x26e   :  { %v1239_v47 = vrot.slane %v7738_v36, 3  ;;  %v1241_v49 = vrot.slane %v7742_v44, 2  ;;  %v1227_v41 = vsel %vm1129_vm8, %v1226_v30, %v1225_v56  ;;  %v1243_v23 = vrot.slane %v7746_v2, 1 }
 0x26f   :  { %v1234_v26 = vsel %vm8219_vm11, %v1233_v48, %v1232_v7  ;;  %v1245_v8 = vrot.slane %v7636_v14, 7  ;;  %v1229_v46 = vsel %vm8218_vm12, %v1228_v5, %v1227_v41  ;;  %v1246_v10 = vrot.slane %v7640_v15, 6 }
 0x270   :  { %v1236_v0 = vsel %vm8217_vm4, %v1235_v54, %v1234_v26  ;;  %v1248_v40 = vrot.slane %v7644_v21, 5  ;;  %v1231_v53 = vsel %vm1135_vm13, %v1230_v31, %v1229_v46  ;;  %v1250_v48 = vrot.slane %v7648_v27, 4 }
 0x271   :  { %v1238_v56 = vsel %vm145_vm14, %v1237_v6, %v1236_v0  ;;  %v1252_v7 = vrot.slane %v7740_v45, 3  ;;  %v1258_v30 = vpack.c.b16 %v1231_v53, %v1218_v42  ;;  %v1247_v41 = vsel %vm8219_vm11, %v1246_v10, %v1245_v8 }
 0x272   :  { %v1240_v12 = vsel %vm1129_vm8, %v1239_v47, %v1238_v56  ;;  %v1254_v26 = vrot.slane %v7744_v38, 2  ;;  %v1249_v50 = vsel %vm8217_vm4, %v1248_v40, %v1247_v41  ;;  %v1256_v46 = vrot.slane %v7748_v29, 1 }
 0x273   :  { %v1242_v54 = vsel %vm8218_vm12, %v1241_v49, %v1240_v12  ;;  %v8236_v31 = vrot.slane %v7682_v28, %v7528_v43  ;;  %v8237_v5 = vrot.slane %v7682_v28, %v7485_v63  ;;  %1260 = vrot.lane.b32.xlu0 %v1258_v30, %s7265_s5  ;;  %v1251_v8 = vsel %vm145_vm14, %v1250_v48, %v1249_v50 }
 0x274   :  { %v1244_v42 = vsel %vm1135_vm13, %v1243_v23, %v1242_v54  ;;  %v1297_v6 = vrot.slane %v7588_v24, 7  ;;  %v1300_v49 = vrot.slane %v7584_v34, 6  ;;  %v1253_v40 = vsel %vm1129_vm8, %v1252_v7, %v1251_v8 }
 0x275   :  { %v6240_v55 = vpack.c.bf16 %v8237_v5, %v8236_v31  ;;  %v1302_v10 = vrot.slane %v7592_v20, 5  ;;  %v1255_v28 = vsel %vm8218_vm12, %v1254_v26, %v1253_v40  ;;  %v1304_v23 = vrot.slane %v7697_v57, 4 }
 0x276   :  { %v1299_v53 = vsel %vm1298_vm9, %v1297_v6, %v7580_v32  ;;  %v1306_v56 = vrot.slane %v7705_v4, 3  ;;  %v1257_v48 = vsel %vm1135_vm13, %v1256_v46, %v1255_v28  ;;  %v1308_v30 = vrot.slane %v7701_v16, 2 }
 0x277   :  { %v7802_v47 = vunpack.c.l.b16 %v6240_v55  ;;  %v7804_v0 = vunpack.c.h.b16 %v6240_v55  ;;  %v1301_v7 = vsel %vm8219_vm11, %v1300_v49, %v1299_v53  ;;  %v1259_v41 = vpack.c.b16 %v1257_v48, %v1244_v42 }
 0x278   :  { %v1303_v26 = vsel %vm8217_vm4, %v1302_v10, %v1301_v7  ;;  %v1312_v54 = vrot.slane %v7590_v37, 7  ;;  %v1314_v32 = vrot.slane %v7586_v35, 6  ;;  %v1316_v31 = vrot.slane %v7594_v19, 5 }
 0x279   :  { %v1310_v12 = vrot.slane %v7802_v47, 1  ;;  %v1305_v50 = vsel %vm145_vm14, %v1304_v23, %v1303_v26  ;;  %v1318_v5 = vrot.slane %v7699_v11, 4  ;;  %v1320_v46 = vrot.slane %v7707_v9, 3  ;;  %1262 = vrot.lane.b32.xlu1 %v1259_v41, %s7265_s5 }
 0x27a   :  { %v1307_v55 = vsel %vm1129_vm8, %v1306_v56, %v1305_v50  ;;  %v1313_v42 = vsel %vm1298_vm9, %v1312_v54, %v7582_v33  ;;  %v1322_v8 = vrot.slane %v7703_v58, 2  ;;  %v1324_v6 = vrot.slane %v7804_v0, 1 }
 0x27b   :  { %v1309_v49 = vsel %vm8218_vm12, %v1308_v30, %v1307_v55  ;;  %v1315_v40 = vsel %vm8219_vm11, %v1314_v32, %v1313_v42  ;;  %v8238_v10 = vrot.slane %v7697_v57, 6  ;;  %v1465_v53 = vrot.slane %v7705_v4, 5 }
 0x27c   :  { %v1311_v23 = vsel %vm1135_vm13, %v1310_v12, %v1309_v49  ;;  %v1317_v56 = vsel %vm8217_vm4, %v1316_v31, %v1315_v40  ;;  %v1469_v33 = vrot.slane %v7802_v47, 3  ;;  %v8239_v48 = vrot.slane %v7699_v11, 6 }
 0x27d   :  { %v1464_v28 = vsel %vm8219_vm11, %v8238_v10, %v7618_v62  ;;  %v1319_v30 = vsel %vm145_vm14, %v1318_v5, %v1317_v56  ;;  %v1475_v26 = vrot.slane %v7707_v9, 5  ;;  %v1479_v62 = vrot.slane %v7804_v0, 3 }
 0x27e   :  { %v1474_v7 = vsel %vm8219_vm11, %v8239_v48, %v7622_v59  ;;  %v1466_v41 = vsel %vm8217_vm4, %v1465_v53, %v1464_v28  ;;  %v1321_v54 = vsel %vm1129_vm8, %v1320_v46, %v1319_v30  ;;  %v8240_v12 = vrot.slane %v7701_v16, 4 }
 0x27f   :  { %v8241_v50 = vrot.slane %v7717_v39, %v7528_v43  ;;  %v8242_v59 = vrot.slane %v7717_v39, %v7485_v63  ;;  %v1326_v5 = vrot.slane %v7638_v17, 7  ;;  %v1323_v55 = vsel %vm8218_vm12, %v1322_v8, %v1321_v54  ;;  %v6424_v8 = vld [vmem:[#allocation10 + $0x124] ss:$16 sps:$4 sm:$0xff]  }
 0x280   :  { %v1468_v32 = vsel %vm145_vm14, %v8240_v12, %v1466_v41  ;;  %v1476_v49 = vsel %vm8217_vm4, %v1475_v26, %v1474_v7  ;;  %v1328_v46 = vrot.slane %v7642_v18, 6  ;;  %v1325_v40 = vsel %vm1135_vm13, %v1324_v6, %v1323_v55  ;;  %v6416_v26 = vld [vmem:[#allocation10 + $0x140] ss:$16 sps:$4 sm:$0xff]  }
 0x281   :  { %v6241_v31 = vpack.c.bf16 %v8242_v59, %v8241_v50  ;;  %v1470_v42 = vsel %vm1129_vm8, %v1469_v33, %v1468_v32  ;;  %v8243_v10 = vrot.slane %v7703_v58, 4  ;;  %v1354_v56 = vpack.c.b16 %v1325_v40, %v1311_v23  ;;  %v6419_v50 = vld [vmem:[#allocation10 + $0x3e0] ss:$16 sps:$4 sm:$0xff]  }
 0x282   :  { %v1327_v6 = vsel %vm1298_vm9, %v1326_v5, %v7634_v13  ;;  %v1330_v33 = vrot.slane %v7646_v25, 5  ;;  %v1332_v41 = vrot.slane %v7738_v36, 4  ;;  %v1334_v23 = vrot.slane %v7742_v44, 3 }
 0x283   :  { %v1478_v28 = vsel %vm145_vm14, %v8243_v10, %v1476_v49  ;;  %v7866_v53 = vunpack.c.l.b16 %v6241_v31  ;;  %v7868_v39 = vunpack.c.h.b16 %v6241_v31  ;;  %v1329_v30 = vsel %vm8219_vm11, %v1328_v46, %v1327_v6  ;;  %1356 = vrot.lane.b32.xlu0 %v1354_v56, %s7262_s2 }
 0x284   :  { %v1480_v48 = vsel %vm1129_vm8, %v1479_v62, %v1478_v28  ;;  %v6418_v62 = vld [vmem:[#allocation10 + $0x144] ss:$16 sps:$4 sm:$0xff]   ;;  %v1331_v54 = vsel %vm8217_vm4, %v1330_v33, %v1329_v30  ;;  %v1336_v12 = vrot.slane %v7746_v2, 2  ;;  %v1340_v13 = vrot.slane %v7640_v15, 7 }
 0x285   :  { %v1501_v7 = vpack.c.b16 %v1480_v48, %v1470_v42  ;;  %v1338_v32 = vrot.slane %v7866_v53, 1  ;;  %v1333_v59 = vsel %vm145_vm14, %v1332_v41, %v1331_v54  ;;  %v1342_v31 = vrot.slane %v7644_v21, 6  ;;  %2805 = vmatprep.subr.bf16.mxu0 %v6418_v62  ;;  %v6421_v42 = vld [vmem:[#allocation10 + $0x3e4] ss:$16 sps:$4 sm:$0xff]  }
 0x286   :  { %v1344_v5 = vrot.slane %v7648_v27, 5  ;;  %v1346_v55 = vrot.slane %v7740_v45, 4  ;;  %v1335_v49 = vsel %vm1129_vm8, %v1334_v23, %v1333_v59  ;;  %v1341_v46 = vsel %vm1298_vm9, %v1340_v13, %v7636_v14  ;;  %2806 = vmatpush2.bf16.msra.mxu0 %v6416_v26  ;;  %2838 = vmatprep.subr.bf16.mxu1 %v6421_v42 }
 0x287   :  { %1508 = vst.msk [vmem:[#allocation3 + $0x14] sm:$0x77] %vm7873_vm1, %v1501_v7  ;;  %v1348_v40 = vrot.slane %v7744_v38, 3  ;;  %v1350_v10 = vrot.slane %v7748_v29, 2  ;;  %v1337_v28 = vsel %vm8218_vm12, %v1336_v12, %v1335_v49  ;;  %v1343_v56 = vsel %vm8219_vm11, %v1342_v31, %v1341_v46  ;;  %2839 = vmatpush2.bf16.msra.mxu1 %v6419_v50  ;;  %2807 = vmatprep.subr.bf16.mxu0 %v6424_v8 }
 0x288   :  { %v1352_v48 = vrot.slane %v7868_v39, 1  ;;  %v8246_v6 = vrot.slane %v7646_v25, 7  ;;  %v1339_v7 = vsel %vm1135_vm13, %v1338_v32, %v1337_v28  ;;  %v1345_v14 = vsel %vm8217_vm4, %v1344_v5, %v1343_v56 }
 0x289   :  { %v8247_v30 = vrot.slane %v7738_v36, 6  ;;  %v1485_v23 = vrot.slane %v7742_v44, 5  ;;  %v1347_v26 = vsel %vm145_vm14, %v1346_v55, %v1345_v14  ;;  %v1489_v62 = vrot.slane %v7866_v53, 3 }
 0x28a   :  { %v1482_v33 = vsel %vm1298_vm9, %v8246_v6, %v7642_v18  ;;  %v8248_v54 = vrot.slane %v7648_v27, 7  ;;  %v1495_v32 = vrot.slane %v7744_v38, 5  ;;  %v1349_v13 = vsel %vm1129_vm8, %v1348_v40, %v1347_v26 }
 0x28b   :  { %v1484_v41 = vsel %vm8219_vm11, %v8247_v30, %v1482_v33  ;;  %v8249_v31 = vrot.slane %v7740_v45, 6  ;;  %v1499_v50 = vrot.slane %v7868_v39, 3  ;;  %v1351_v55 = vsel %vm8218_vm12, %v1350_v10, %v1349_v13 }
 0x28c   :  { %v1492_v12 = vsel %vm1298_vm9, %v8248_v54, %v7644_v21  ;;  %v1486_v59 = vsel %vm8217_vm4, %v1485_v23, %v1484_v41  ;;  %v8250_v42 = vrot.slane %v7746_v2, 4  ;;  %v1384_v28 = vrot.slane %v7584_v34, 7 }
 0x28d   :  { %v1494_v5 = vsel %vm8219_vm11, %v8249_v31, %v1492_v12  ;;  %v1353_v40 = vsel %vm1135_vm13, %v1352_v48, %v1351_v55  ;;  %v8251_v6 = vrot.slane %v7748_v29, 4  ;;  %v1386_v14 = vrot.slane %v7592_v20, 6 }
 0x28e   :  { %v1488_v49 = vsel %vm145_vm14, %v8250_v42, %v1486_v59  ;;  %v1496_v46 = vsel %vm8217_vm4, %v1495_v32, %v1494_v5  ;;  %v1355_v30 = vpack.c.b16 %v1353_v40, %v1339_v7  ;;  %v1385_v41 = vsel %vm1298_vm9, %v1384_v28, %v7588_v24  ;;  %v6422_v59 = vld [vmem:[#allocation10 + $0x120] ss:$16 sps:$4 sm:$0xff]  }
 0x28f   :  { %v1490_v56 = vsel %vm1129_vm8, %v1489_v62, %v1488_v49  ;;  %v1498_v33 = vsel %vm145_vm14, %v8251_v6, %v1496_v46  ;;  %v1388_v23 = vrot.slane %v7697_v57, 5  ;;  %v1387_v34 = vsel %vm8219_vm11, %v1386_v14, %v1385_v41  ;;  %v6425_v5 = vld [vmem:[#allocation10 + $0x3c0] ss:$16 sps:$4 sm:$0xff]   ;;  %v6427_v49 = vld [vmem:[#allocation10 + $0x3c4] ss:$16 sps:$4 sm:$0xff]   ;;  %2808 = vmatpush2.bf16.msra.mxu0 %v6422_v59 }
 0x290   :  { %v1500_v10 = vsel %vm1129_vm8, %v1499_v50, %v1498_v33  ;;  %v1390_v48 = vrot.slane %v7705_v4, 4  ;;  %v1392_v62 = vrot.slane %v7701_v16, 3  ;;  %1358 = vrot.lane.b32.xlu1 %v1355_v30, %s7262_s2  ;;  %v1394_v20 = vrot.slane %v7802_v47, 2  ;;  %2840 = vmatprep.subr.bf16.mxu1 %v6427_v49  ;;  %v6458_v49 = vld [vmem:[#allocation10 + $0x320] ss:$16 sps:$4 sm:$0xff]  }
 0x291   :  { %v1502_v26 = vpack.c.b16 %v1500_v10, %v1490_v56  ;;  %v1389_v54 = vsel %vm8217_vm4, %v1388_v23, %v1387_v34  ;;  %v1396_v7 = vrot.slane %v7586_v35, 7  ;;  %v1398_v12 = vrot.slane %v7594_v19, 6  ;;  %2841 = vmatpush2.bf16.msra.mxu1 %v6425_v5  ;;  %v6430_v34 = vld [vmem:[#allocation10 + $0x104] ss:$16 sps:$4 sm:$0xff]  }
 0x292   :  { %v1391_v24 = vsel %vm145_vm14, %v1390_v48, %v1389_v54  ;;  %v1400_v32 = vrot.slane %v7699_v11, 5  ;;  %v1402_v16 = vrot.slane %v7707_v9, 4  ;;  %v1404_v13 = vrot.slane %v7703_v58, 3  ;;  %2809 = vmatprep.subr.bf16.mxu0 %v6430_v34  ;;  %v6524_v34 = vld [vmem:[#allocation10 + $0x544] ss:$16 sps:$4 sm:$0xff]  }
 0x293   :  { %1509 = vst.msk [vmem:[#allocation3 + $0x30] sm:$0x77] %vm7873_vm1, %v1502_v26  ;;  %v1393_v47 = vsel %vm1129_vm8, %v1392_v62, %v1391_v24  ;;  %v1397_v35 = vsel %vm1298_vm9, %v1396_v7, %v7590_v37  ;;  %v1406_v19 = vrot.slane %v7804_v0, 2  ;;  %v1408_v31 = vrot.slane %v7642_v18, 7  ;;  %v6431_v7 = vld [vmem:[#allocation10 + $0x3a0] ss:$16 sps:$4 sm:$0xff]  }
 0x294   :  { %v1395_v50 = vsel %vm8218_vm12, %v1394_v20, %v1393_v47  ;;  %v1399_v55 = vsel %vm8219_vm11, %v1398_v12, %v1397_v35  ;;  %v1410_v42 = vrot.slane %v7646_v25, 6  ;;  %v1412_v58 = vrot.slane %v7738_v36, 5  ;;  %v6433_v12 = vld [vmem:[#allocation10 + $0x3a4] ss:$16 sps:$4 sm:$0xff]  }
 0x295   :  { %v1401_v46 = vsel %vm8217_vm4, %v1400_v32, %v1399_v55  ;;  %v1409_v37 = vsel %vm1298_vm9, %v1408_v31, %v7638_v17  ;;  %v1414_v0 = vrot.slane %v7742_v44, 4  ;;  %v1416_v18 = vrot.slane %v7746_v2, 3  ;;  %2842 = vmatprep.subr.bf16.mxu1 %v6433_v12 }
 0x296   :  { %v1403_v28 = vsel %vm145_vm14, %v1402_v16, %v1401_v46  ;;  %v1411_v40 = vsel %vm8219_vm11, %v1410_v42, %v1409_v37  ;;  %v1418_v56 = vrot.slane %v7866_v53, 2  ;;  %v1420_v25 = vrot.slane %v7644_v21, 7  ;;  %2843 = vmatpush2.bf16.msra.mxu1 %v6431_v7  ;;  %v6452_v42 = vld [vmem:[#allocation10 + $0x340] ss:$16 sps:$4 sm:$0xff]   ;;  %v6466_v46 = vld [vmem:[#allocation10 + $0x304] ss:$16 sps:$4 sm:$0xff]  }
 0x297   :  { %v1405_v6 = vsel %vm1129_vm8, %v1404_v13, %v1403_v28  ;;  %v1413_v33 = vsel %vm8217_vm4, %v1412_v58, %v1411_v40  ;;  %v1422_v17 = vrot.slane %v7648_v27, 6  ;;  %v1424_v14 = vrot.slane %v7740_v45, 5  ;;  %v6428_v27 = vld [vmem:[#allocation10 + $0x100] ss:$16 sps:$4 sm:$0xff]   ;;  %v6439_v13 = vld [vmem:[#allocation10 + $0x4e4] ss:$16 sps:$4 sm:$0xff]  }
 0x298   :  { %v1407_v2 = vsel %vm8218_vm12, %v1406_v19, %v1405_v6  ;;  %v1415_v30 = vsel %vm145_vm14, %v1414_v0, %v1413_v33  ;;  %v1421_v53 = vsel %vm1298_vm9, %v1420_v25, %v7640_v15  ;;  %v1426_v21 = vrot.slane %v7744_v38, 4  ;;  %v6442_v19 = vld [vmem:[#allocation10 + $0x384] ss:$16 sps:$4 sm:$0xff]   ;;  %2810 = vmatpush2.bf16.msra.mxu0 %v6428_v27  ;;  %v6464_v37 = vld [vmem:[#allocation10 + $0x300] ss:$16 sps:$4 sm:$0xff]  }
 0x299   :  { %v1432_v10 = vpack.c.b16 %v1407_v2, %v1395_v50  ;;  %v1417_v41 = vsel %vm1129_vm8, %v1416_v18, %v1415_v30  ;;  %v1423_v23 = vsel %vm8219_vm11, %v1422_v17, %v1421_v53  ;;  %v1428_v26 = vrot.slane %v7748_v29, 3  ;;  %2865 = vmatprep.subr.bf16.mxu0 %v6439_v13  ;;  %2844 = vmatprep.subr.bf16.mxu1 %v6442_v19  ;;  %v6460_v58 = vld [vmem:[#allocation10 + $0x324] ss:$16 sps:$4 sm:$0xff]   ;;  %v6449_v7 = vld [vmem:[#allocation10 + $0x4a0] ss:$16 sps:$4 sm:$0xff]  }
 0x29a   :  { %v1419_v48 = vsel %vm8218_vm12, %v1418_v56, %v1417_v41  ;;  %v1425_v62 = vsel %vm8217_vm4, %v1424_v14, %v1423_v23  ;;  %v1430_v54 = vrot.slane %v7868_v39, 2  ;;  %v8252_v15 = vrot.slane %v7699_v11, 2  ;;  %v6478_v0 = vld [vmem:[#allocation10 + $0x624] ss:$16 sps:$4 sm:$0xff]   ;;  %v6461_v13 = vld [vmem:[#allocation10 + $0x460] ss:$16 sps:$4 sm:$0xff]  }
 0x29b   :  { %1434 = vrot.lane.b32.xlu0 %v1432_v10, %s7267_s19  ;;  %v1427_v24 = vsel %vm145_vm14, %v1426_v21, %v1425_v62  ;;  %v8253_v29 = vrot.slane %v7707_v9, 1  ;;  %v8254_v16 = vrot.slane %v7697_v57, 2  ;;  %v8255_v11 = vrot.slane %v7738_v36, 2  ;;  %vm8008_vm14 = vmor %vm1175_vm5, %vm1174_vm2  ;;  %v6437_v10 = vld [vmem:[#allocation10 + $0x4e0] ss:$16 sps:$4 sm:$0xff]  }
 0x29c   :  { %v1145_v20 = vsel %vm8218_vm12, %v8252_v15, %v7628_v3  ;;  %v1429_v59 = vsel %vm1129_vm8, %v1428_v26, %v1427_v24  ;;  %v8258_v9 = vrot.slane %v7705_v4, 1  ;;  %v8261_v5 = vrot.slane %v7744_v38, 1  ;;  %v6454_v38 = vld [vmem:[#allocation10 + $0x344] ss:$16 sps:$4 sm:$0xff]   ;;  %vm1272_vm2 = vmand %vm1271_vm15, %vm237_vm3  ;;  %v6443_v62 = vld [vmem:[#allocation10 + $0x4c0] ss:$16 sps:$4 sm:$0xff]  }
 0x29d   :  { %v1147_v32 = vsel %vm1135_vm13, %v8253_v29, %v1145_v20  ;;  %v1133_v39 = vsel %vm8218_vm12, %v8254_v16, %v7625_v1  ;;  %v1156_v3 = vsel %vm8218_vm12, %v8255_v11, %v7667_v51  ;;  %v8259_v1 = vrot.slane %v7740_v45, 2  ;;  %v6440_v45 = vld [vmem:[#allocation10 + $0x380] ss:$16 sps:$4 sm:$0xff]   ;;  %v6445_v27 = vld [vmem:[#allocation10 + $0x4c4] ss:$16 sps:$4 sm:$0xff]  }
 0x29e   :  { %v1136_v57 = vsel %vm1135_vm13, %v8258_v9, %v1133_v39  ;;  %v8260_v51 = vrot.slane %v7742_v44, 1  ;;  %v1431_v31 = vsel %vm8218_vm12, %v1430_v54, %v1429_v59  ;;  %v6448_v44 = vld [vmem:[#allocation10 + $0x364] ss:$16 sps:$4 sm:$0xff]   ;;  %2845 = vmatpush2.bf16.msra.mxu1 %v6440_v45  ;;  %vm1274_vm1 = vsmask.f32 7954 }
 0x29f   :  { %v1167_v36 = vsel %vm8218_vm12, %v8259_v1, %v7670_v52  ;;  %v1170_v8 = vpack.c.b16 %v1147_v32, %v1136_v57  ;;  %v1433_v50 = vpack.c.b16 %v1431_v31, %v1419_v48  ;;  %v6446_v52 = vld [vmem:[#allocation10 + $0x360] ss:$16 sps:$4 sm:$0xff]   ;;  %2846 = vmatprep.subr.bf16.mxu1 %v6448_v44  ;;  %vm1275_vm5 = vmand %vm1273_vm0, %vm1274_vm1  ;;  %vm1367_vm12 = vcmask 1043968   ;;  %v6451_v54 = vld [vmem:[#allocation10 + $0x4a4] ss:$16 sps:$4 sm:$0xff]  }
 0x2a0   :  { %v1158_v35 = vsel %vm1135_vm13, %v8260_v51, %v1156_v3  ;;  %v1169_v4 = vsel %vm1135_vm13, %v8261_v5, %v1167_v36  ;;  %vm1276_vm4 = vmor %vm1275_vm5, %vm1272_vm2  ;;  %vm1368_vm11 = vcmask 785412   ;;  %vm1362_vm3 = vcmask 523264   ;;  %v6457_v29 = vld [vmem:[#allocation10 + $0x484] ss:$16 sps:$4 sm:$0xff]   ;;  %v6455_v16 = vld [vmem:[#allocation10 + $0x480] ss:$16 sps:$4 sm:$0xff]  }
 0x2a1   :  { %v1171_v55 = vpack.c.b16 %v1169_v4, %v1158_v35  ;;  %1177 = vst.msk [vmem:[#allocation3] sm:$0xee] %vm8008_vm14, %v1170_v8  ;;  %1436 = vrot.lane.b32.xlu1 %v1433_v50, %s7267_s19  ;;  %vm8034_vm15 = vmor %vm1368_vm11, %vm1367_vm12  ;;  %vm1372_vm0 = vcmask 1044227   ;;  %vm1375_vm1 = vsmask.f32 7966  ;;  %vm1445_vm12 = vcmask 1044224  }
 0x2a2   :  { %2847 = vmatpush2.bf16.msra.mxu1 %v6446_v52  ;;  %vm8052_vm11 = vmand %vm1135_vm13, %vm1375_vm1  ;;  %vm1447_vm2 = vcmask 1047556   ;;  %vm1448_vm5 = vsmask.f32 7424  ;;  %v6463_v39 = vld [vmem:[#allocation10 + $0x464] ss:$16 sps:$4 sm:$0xff]  }
 0x2a3   :  { %1178 = vst.msk [vmem:[#allocation3 + $0x1c] sm:$0xee] %vm8008_vm14, %v1171_v55  ;;  %2848 = vmatprep.subr.bf16.mxu1 %v6454_v38  ;;  %vm1266_vm14 = vcmask 261120   ;;  %vm8074_vm1 = vmand %vm1447_vm2, %vm1448_vm5  ;;  %v6469_v59 = vld [vmem:[#allocation10 + $0x444] ss:$16 sps:$4 sm:$0xff]  }
 0x2a4   :  { %v6467_v51 = vld [vmem:[#allocation10 + $0x440] ss:$16 sps:$4 sm:$0xff]   ;;  %v6481_v19 = vld [vmem:[#allocation10 + $0x424] ss:$16 sps:$4 sm:$0xff]   ;;  %v6501_v48 = vld [vmem:[#allocation10 + $0xa8] ss:$16 sps:$4 sm:$0xff]  }
 0x2a5   :  { %v6479_v4 = vld [vmem:[#allocation10 + $0x420] ss:$16 sps:$4 sm:$0xff]   ;;  %v6487_v50 = vld [vmem:[#allocation10 + $0x404] ss:$16 sps:$4 sm:$0xff]   ;;  %v6527_v11 = vld [vmem:[#allocation10 + $0x2c] ss:$16 sps:$4 sm:$0xff]  }
 0x2a6   :  { %2849 = vmatpush2.bf16.msra.mxu1 %v6452_v42  ;;  %v6485_v44 = vld [vmem:[#allocation10 + $0x400] ss:$16 sps:$4 sm:$0xff]   ;;  %v6494_v38 = vld [vmem:[#allocation10 + $0x5e4] ss:$16 sps:$4 sm:$0xff]   ;;  %v6540_v3 = vld [vmem:[#allocation10 + $0x2e8] ss:$16 sps:$4 sm:$0xff]  }
 0x2a7   :  { %2850 = vmatprep.subr.bf16.mxu1 %v6460_v58  ;;  %v6492_v42 = vld [vmem:[#allocation10 + $0x5e0] ss:$16 sps:$4 sm:$0xff]   ;;  %v6500_v58 = vld [vmem:[#allocation10 + $0x5c4] ss:$16 sps:$4 sm:$0xff]  }
 0x2a8   :  { %v1277_v56 = vld [vmem:[#allocation3 + $0x4] sm:$0xff] }
 0x2a9   :  { %v6510_v53 = vld [vmem:[#allocation10 + $0x580] ss:$16 sps:$4 sm:$0xff]  }
 0x2aa   :  { %2851 = vmatpush2.bf16.msra.mxu1 %v6458_v49  ;;  %v1280_v14 = vld [vmem:[#allocation3 + $0x20] sm:$0xff] }
 0x2ab   :  { %2852 = vmatprep.subr.bf16.mxu1 %v6466_v46  ;;  %v8039_v23 = vld [vmem:[#allocation3] ss:$28 sps:$4 sm:$0xff]   ;;  %v6476_v49 = vld [vmem:[#allocation10 + $0x620] ss:$16 sps:$4 sm:$0xff]   ;;  %v6484_v46 = vld [vmem:[#allocation10 + $0x604] ss:$16 sps:$4 sm:$0xff]  }
 0x2ae   :  { %2853 = vmatpush2.bf16.msra.mxu1 %v6464_v37 }
 0x2af   :  { %2920 = vmatprep.subr.bf16.mxu1 %v6478_v0 }
 0x2e5   :  { %v1261_v18 = vpop.permute.xlu0 %1260 }
 0x2e6   :  { %v1264_v28 = vrot.slane %v1261_v18, 4 }
 0x2e8   :  { %v1267_v40 = vsel %vm1266_vm14, %v1264_v28, %v1261_v18  ;;  %v8103_v18 = vld [vmem:[#allocation3 + $0x14] ss:$28 sps:$4 sm:$0xff]  }
 0x2e9   :  { %v1278_v25 = vsel %vm1276_vm4, %v1267_v40, %v1277_v56  ;;  %v6498_v28 = vld [vmem:[#allocation10 + $0x5c0] ss:$16 sps:$4 sm:$0xff]   ;;  %v6506_v40 = vld [vmem:[#allocation10 + $0x5a4] ss:$16 sps:$4 sm:$0xff]  }
 0x2ea   :  { %1279 = vst [vmem:[#allocation3 + $0x4] sm:$0xff] %v1278_v25  ;;  %v6482_v56 = vld [vmem:[#allocation10 + $0x600] ss:$16 sps:$4 sm:$0xff]   ;;  %v8272_v25 = vmov 0  }
 0x2eb   :  { %v1263_v6 = vpop.permute.xlu1 %1262 }
 0x2ec   :  { %v1265_v33 = vrot.slane %v1263_v6, 4 }
 0x2ee   :  { %v1268_v17 = vsel %vm1266_vm14, %v1265_v33, %v1263_v6  ;;  %v6490_v6 = vld [vmem:[#allocation10 + $0xec] ss:$16 sps:$4 sm:$0xff]   ;;  %v6504_v33 = vld [vmem:[#allocation10 + $0x5a0] ss:$16 sps:$4 sm:$0xff]  }
 0x2ef   :  { %v1281_v2 = vsel %vm1276_vm4, %v1268_v17, %v1280_v14  ;;  %vm8046_vm4 = vmand %vm1372_vm0, %vm282_vm7  ;;  %v6512_v17 = vld [vmem:[#allocation10 + $0x584] ss:$16 sps:$4 sm:$0xff]   ;;  %v6488_v14 = vld [vmem:[#allocation10 + $0xe8] ss:$16 sps:$4 sm:$0xff]  }
 0x2f0   :  { %1282 = vst [vmem:[#allocation3 + $0x20] sm:$0xff] %v1281_v2  ;;  %vm1377_vm7 = vmor %vm8052_vm11, %vm8046_vm4  ;;  %v8109_v2 = vld [vmem:[#allocation3 + $0x18] ss:$28 sps:$4 sm:$0xff]  }
 0x2f1   :  { %vm8070_vm0 = vmand %vm1445_vm12, %vm321_vm10  ;;  %vm8273_vm10 = vcmask 1042434  }
 0x2f5   :  { %v1357_v30 = vpop.permute.xlu0 %1356 }
 0x2f6   :  { %v1360_v21 = vrot.slane %v1357_v30, 4 }
 0x2f7   :  { %v8041_v26 = vld [vmem:[#allocation3 + $0x4] ss:$28 sps:$4 sm:$0xff]  }
 0x2f8   :  { %v1363_v41 = vsel %vm1362_vm3, %v1360_v21, %v1357_v30  ;;  %2811 = vmatprep.mubr.bf16.mxu0 %v8041_v26  ;;  %v6497_v30 = vld [vmem:[#allocation10 + $0xcc] ss:$16 sps:$4 sm:$0xff]   ;;  %v6518_v21 = vld [vmem:[#allocation10 + $0x564] ss:$16 sps:$4 sm:$0xff]  }
 0x2f9   :  { %1370 = vst.msk [vmem:[#allocation3 + $0x8] sm:$0xff] %vm8034_vm15, %v1363_v41  ;;  %2812 = vmatmul.mubr.bf16.vlgmr.msra.gmra.mxu0 %v8039_v23  ;;  %v6503_v41 = vld [vmem:[#allocation10 + $0xac] ss:$16 sps:$4 sm:$0xff]  }
 0x2fa   :  { %2866 = vmatpush1.bf16.msra.mxu0 %v6437_v10  ;;  %2897 = vmatprep.mubr.bf16.mxu0 %v8103_v18  ;;  %v6495_v10 = vld [vmem:[#allocation10 + $0xc8] ss:$16 sps:$4 sm:$0xff]  }
 0x2fb   :  { %2867 = vmatprep.subr.bf16.mxu0 %v6445_v27  ;;  %v6516_v27 = vld [vmem:[#allocation10 + $0x560] ss:$16 sps:$4 sm:$0xff]  }
 0x2fe   :  { %2868 = vmatpush1.bf16.msra.mxu0 %v6443_v62  ;;  %v6509_v62 = vld [vmem:[#allocation10 + $0x8c] ss:$16 sps:$4 sm:$0xff]  }
 0x2ff   :  { %2869 = vmatprep.subr.bf16.mxu0 %v6451_v54  ;;  %v6522_v54 = vld [vmem:[#allocation10 + $0x540] ss:$16 sps:$4 sm:$0xff]  }
 0x300   :  { %v1378_v15 = vld [vmem:[#allocation3 + $0xc] sm:$0x88] }
 0x301   :  { %v1379_v12 = vsel %vm1377_vm7, 0, %v1378_v15  ;;  %v6530_v15 = vld [vmem:[#allocation10 + $0x524] ss:$16 sps:$4 sm:$0xff]  }
 0x302   :  { %v1359_v20 = vpop.permute.xlu1 %1358  ;;  %1380 = vst [vmem:[#allocation3 + $0xc] sm:$0x88] %v1379_v12  ;;  %2870 = vmatpush1.bf16.msra.mxu0 %v6449_v7  ;;  %v6515_v7 = vld [vmem:[#allocation10 + $0x6c] ss:$16 sps:$4 sm:$0xff]   ;;  %v6536_v12 = vld [vmem:[#allocation10 + $0x504] ss:$16 sps:$4 sm:$0xff]  }
 0x303   :  { %v1361_v24 = vrot.slane %v1359_v20, 4  ;;  %2871 = vmatprep.subr.bf16.mxu0 %v6457_v29  ;;  %v6521_v29 = vld [vmem:[#allocation10 + $0x4c] ss:$16 sps:$4 sm:$0xff]  }
 0x305   :  { %v1364_v32 = vsel %vm1362_vm3, %v1361_v24, %v1359_v20  ;;  %vm1450_vm3 = vmor %vm8074_vm1, %vm8070_vm0  ;;  %v6507_v20 = vld [vmem:[#allocation10 + $0x88] ss:$16 sps:$4 sm:$0xff]  }
 0x306   :  { %1371 = vst.msk [vmem:[#allocation3 + $0x24] sm:$0xff] %vm8034_vm15, %v1364_v32  ;;  %2872 = vmatpush1.bf16.msra.mxu0 %v6455_v16  ;;  %v6513_v24 = vld [vmem:[#allocation10 + $0x68] ss:$16 sps:$4 sm:$0xff]   ;;  %v6534_v32 = vld [vmem:[#allocation10 + $0x500] ss:$16 sps:$4 sm:$0xff]   ;;  %vm8276_vm15 = vmmov %vm8273_vm10 }
 0x307   :  { %2873 = vmatprep.subr.bf16.mxu0 %v6463_v39  ;;  %v6542_v16 = vld [vmem:[#allocation10 + $0x2ec] ss:$16 sps:$4 sm:$0xff]   ;;  %v6519_v39 = vld [vmem:[#allocation10 + $0x48] ss:$16 sps:$4 sm:$0xff]  }
 0x309   :  { %v1451_v1 = vld [vmem:[#allocation3 + $0xc] sm:$0xff] }
 0x30a   :  { %2874 = vmatpush1.bf16.msra.mxu0 %v6461_v13 }
 0x30b   :  { %2875 = vmatprep.subr.bf16.mxu0 %v6469_v59  ;;  %v6548_v59 = vld [vmem:[#allocation10 + $0x2cc] ss:$16 sps:$4 sm:$0xff]  }
 0x30d   :  { %v1435_v47 = vpop.permute.xlu0 %1434  ;;  %v1381_v9 = vld [vmem:[#allocation3 + $0x28] sm:$0x88] }
 0x30e   :  { %v1438_v57 = vrot.slane %v1435_v47, 4  ;;  %v1382_v36 = vsel %vm1377_vm7, 0, %v1381_v9  ;;  %2876 = vmatpush1.bf16.msra.mxu0 %v6467_v51  ;;  %v8099_v37 = vld [vmem:[#allocation3 + $0x8] ss:$28 sps:$4 sm:$0xff]   ;;  %v6533_v9 = vld [vmem:[#allocation10 + $0xc] ss:$16 sps:$4 sm:$0xff]  }
 0x30f   :  { %1383 = vst [vmem:[#allocation3 + $0x28] sm:$0x88] %v1382_v36  ;;  %2877 = vmatprep.subr.bf16.mxu0 %v6481_v19  ;;  %v6531_v36 = vld [vmem:[#allocation10 + $0x8] ss:$16 sps:$4 sm:$0xff]   ;;  %v6539_v51 = vld [vmem:[#allocation10 + $0x1ec] ss:$16 sps:$4 sm:$0xff]  }
 0x310   :  { %v1441_v35 = vsel %vm643_vm6, %v1438_v57, %v1435_v47  ;;  %v6525_v47 = vld [vmem:[#allocation10 + $0x28] ss:$16 sps:$4 sm:$0xff]   ;;  %v6560_v19 = vld [vmem:[#allocation10 + $0x28c] ss:$16 sps:$4 sm:$0xff]  }
 0x311   :  { %v1452_v31 = vsel %vm1450_vm3, %v1441_v35, %v1451_v1  ;;  %v6546_v57 = vld [vmem:[#allocation10 + $0x2c8] ss:$16 sps:$4 sm:$0xff]   ;;  %v6554_v1 = vld [vmem:[#allocation10 + $0x2ac] ss:$16 sps:$4 sm:$0xff]  }
 0x312   :  { %1453 = vst [vmem:[#allocation3 + $0xc] sm:$0xff] %v1452_v31  ;;  %2878 = vmatpush1.bf16.msra.mxu0 %v6479_v4  ;;  %v6552_v35 = vld [vmem:[#allocation10 + $0x2a8] ss:$16 sps:$4 sm:$0xff]   ;;  %v6566_v4 = vld [vmem:[#allocation10 + $0x26c] ss:$16 sps:$4 sm:$0xff]  }
 0x313   :  { %v1437_v8 = vpop.permute.xlu1 %1436  ;;  %2879 = vmatprep.subr.bf16.mxu0 %v6487_v50  ;;  %v6537_v31 = vld [vmem:[#allocation10 + $0x1e8] ss:$16 sps:$4 sm:$0xff]  }
 0x314   :  { %v1439_v5 = vrot.slane %v1437_v8, 4  ;;  %v6543_v50 = vld [vmem:[#allocation10 + $0x1c8] ss:$16 sps:$4 sm:$0xff]  }
 0x316   :  { %v1442_v55 = vsel %vm643_vm6, %v1439_v5, %v1437_v8  ;;  %v1454_v45 = vld [vmem:[#allocation3 + $0x28] sm:$0xff]  ;;  %2880 = vmatpush1.bf16.msra.mxu0 %v6485_v44  ;;  %v6545_v8 = vld [vmem:[#allocation10 + $0x1cc] ss:$16 sps:$4 sm:$0xff]   ;;  %vm8274_vm6 = vcmask 1046534  }
 0x317   :  { %v1455_v52 = vsel %vm1450_vm3, %v1442_v55, %v1454_v45  ;;  %2881 = vmatprep.subr.bf16.mxu0 %v6494_v38  ;;  %v6558_v5 = vld [vmem:[#allocation10 + $0x288] ss:$16 sps:$4 sm:$0xff]   ;;  %v6551_v55 = vld [vmem:[#allocation10 + $0x1ac] ss:$16 sps:$4 sm:$0xff]   ;;  %vm8277_vm4 = vmmov %vm8274_vm6 }
 0x318   :  { %1456 = vst [vmem:[#allocation3 + $0x28] sm:$0xff] %v1455_v52  ;;  %v6564_v45 = vld [vmem:[#allocation10 + $0x268] ss:$16 sps:$4 sm:$0xff]   ;;  %v6572_v44 = vld [vmem:[#allocation10 + $0x24c] ss:$16 sps:$4 sm:$0xff]  }
 0x319   :  { %v6549_v52 = vld [vmem:[#allocation10 + $0x1a8] ss:$16 sps:$4 sm:$0xff]   ;;  %v6557_v38 = vld [vmem:[#allocation10 + $0x18c] ss:$16 sps:$4 sm:$0xff]  }
 0x31a   :  { %2882 = vmatpush2.bf16.msra.mxu0 %v6492_v42  ;;  %v6570_v42 = vld [vmem:[#allocation10 + $0x248] ss:$16 sps:$4 sm:$0xff]  }
 0x31b   :  { %2883 = vmatprep.subr.bf16.mxu0 %v6500_v58  ;;  %v6578_v58 = vld [vmem:[#allocation10 + $0x22c] ss:$16 sps:$4 sm:$0xff]  }
 0x31e   :  { %2884 = vmatpush2.bf16.msra.mxu0 %v6498_v28  ;;  %v6584_v28 = vld [vmem:[#allocation10 + $0x20c] ss:$16 sps:$4 sm:$0xff]  }
 0x31f   :  { %v8101_v0 = vld [vmem:[#allocation3 + $0xc] ss:$28 sps:$4 sm:$0xff]   ;;  %2885 = vmatprep.subr.bf16.mxu0 %v6506_v40 }
 0x320   :  { %2854 = vmatprep.mubr.bf16.mxu1 %v8101_v0  ;;  %v8114_v13 = vld [vmem:[#allocation3 + $0x10] ss:$28 sps:$4 sm:$0xff]  }
 0x321   :  { %2855 = vmatmul.mubr.bf16.vlgmr.msra.gmra.mxu1 %v8099_v37  ;;  %v6561_v40 = vld [vmem:[#allocation10 + $0x168] ss:$16 sps:$4 sm:$0xff]  }
 0x322   :  { %2921 = vmatpush1.bf16.msra.mxu1 %v6476_v49  ;;  %2940 = vmatprep.mubr.bf16.mxu1 %v8272_v25  ;;  %v6555_v49 = vld [vmem:[#allocation10 + $0x188] ss:$16 sps:$4 sm:$0xff]  }
 0x323   :  { %2922 = vmatprep.subr.bf16.mxu1 %v6484_v46  ;;  %2886 = vmatpush2.bf16.msra.mxu0 %v6504_v33  ;;  %v6563_v46 = vld [vmem:[#allocation10 + $0x16c] ss:$16 sps:$4 sm:$0xff]  }
 0x324   :  { %2887 = vmatprep.subr.bf16.mxu0 %v6512_v17  ;;  %v6590_v33 = vld [vmem:[#allocation10 + $0x3ec] ss:$16 sps:$4 sm:$0xff]   ;;  %v6567_v17 = vld [vmem:[#allocation10 + $0x148] ss:$16 sps:$4 sm:$0xff]  }
 0x326   :  { %2923 = vmatpush1.bf16.msra.mxu1 %v6482_v56  ;;  %v6569_v56 = vld [vmem:[#allocation10 + $0x14c] ss:$16 sps:$4 sm:$0xff]  }
 0x327   :  { %2951 = vmatprep.subr.bf16.mxu1 %v6490_v6  ;;  %2888 = vmatpush2.bf16.msra.mxu0 %v6510_v53  ;;  %v6582_v6 = vld [vmem:[#allocation10 + $0x208] ss:$16 sps:$4 sm:$0xff]   ;;  %v6596_v53 = vld [vmem:[#allocation10 + $0x3cc] ss:$16 sps:$4 sm:$0xff]  }
 0x328   :  { %2889 = vmatprep.subr.bf16.mxu0 %v6518_v21  ;;  %v6573_v21 = vld [vmem:[#allocation10 + $0x128] ss:$16 sps:$4 sm:$0xff]  }
 0x329   :  { %5907 = vmatmul.mubr.msk.bf16.vlgmr.msra.gmra.mxu1 %vm1266_vm14, %v8109_v2 }
 0x32a   :  { %2952 = vmatpush1.bf16.msra.mxu1 %v6488_v14  ;;  %2983 = vmatprep.mubr.bf16.mxu1 %v8041_v26  ;;  %v6528_v26 = vld [vmem:[#allocation10 + $0x520] ss:$16 sps:$4 sm:$0xff]   ;;  %v6575_v14 = vld [vmem:[#allocation10 + $0x12c] ss:$16 sps:$4 sm:$0xff]  }
 0x32b   :  { %2953 = vmatprep.subr.bf16.mxu1 %v6497_v30  ;;  %2890 = vmatpush2.bf16.msra.mxu0 %v6516_v27  ;;  %v6588_v30 = vld [vmem:[#allocation10 + $0x3e8] ss:$16 sps:$4 sm:$0xff]   ;;  %v6602_v27 = vld [vmem:[#allocation10 + $0x3ac] ss:$16 sps:$4 sm:$0xff]  }
 0x32c   :  { %2891 = vmatprep.subr.bf16.mxu0 %v6524_v34  ;;  %v6579_v34 = vld [vmem:[#allocation10 + $0x108] ss:$16 sps:$4 sm:$0xff]  }
 0x32e   :  { %2954 = vmatpush1.bf16.msra.mxu1 %v6495_v10  ;;  %v6581_v10 = vld [vmem:[#allocation10 + $0x10c] ss:$16 sps:$4 sm:$0xff]  }
 0x32f   :  { %2955 = vmatprep.subr.bf16.mxu1 %v6503_v41  ;;  %2892 = vmatpush2.bf16.msra.mxu0 %v6522_v54  ;;  %v6594_v41 = vld [vmem:[#allocation10 + $0x3c8] ss:$16 sps:$4 sm:$0xff]   ;;  %v6608_v54 = vld [vmem:[#allocation10 + $0x38c] ss:$16 sps:$4 sm:$0xff]  }
 0x330   :  { %2893 = vmatprep.subr.bf16.mxu0 %v6530_v15  ;;  %v6585_v15 = vld [vmem:[#allocation10 + $0x4e8] ss:$16 sps:$4 sm:$0xff]  }
 0x332   :  { %2956 = vmatpush1.bf16.msra.mxu1 %v6501_v48  ;;  %v6587_v48 = vld [vmem:[#allocation10 + $0x4ec] ss:$16 sps:$4 sm:$0xff]  }
 0x333   :  { %2957 = vmatprep.subr.bf16.mxu1 %v6509_v62  ;;  %2894 = vmatpush2.bf16.msra.mxu0 %v6528_v26  ;;  %v6600_v62 = vld [vmem:[#allocation10 + $0x3a8] ss:$16 sps:$4 sm:$0xff]   ;;  %v6614_v26 = vld [vmem:[#allocation10 + $0x36c] ss:$16 sps:$4 sm:$0xff]  }
 0x334   :  { %2895 = vmatprep.subr.bf16.mxu0 %v6536_v12  ;;  %v6591_v12 = vld [vmem:[#allocation10 + $0x4c8] ss:$16 sps:$4 sm:$0xff]  }
 0x336   :  { %2958 = vmatpush1.bf16.msra.mxu1 %v6507_v20  ;;  %v6593_v20 = vld [vmem:[#allocation10 + $0x4cc] ss:$16 sps:$4 sm:$0xff]  }
 0x337   :  { %2959 = vmatprep.subr.bf16.mxu1 %v6515_v7  ;;  %2896 = vmatpush2.bf16.msra.mxu0 %v6534_v32  ;;  %v6606_v7 = vld [vmem:[#allocation10 + $0x388] ss:$16 sps:$4 sm:$0xff]   ;;  %v6620_v32 = vld [vmem:[#allocation10 + $0x34c] ss:$16 sps:$4 sm:$0xff]  }
 0x338   :  { %2994 = vmatprep.subr.bf16.mxu0 %v6542_v16  ;;  %v6597_v16 = vld [vmem:[#allocation10 + $0x4a8] ss:$16 sps:$4 sm:$0xff]  }
 0x33a   :  { %2960 = vmatpush1.bf16.msra.mxu1 %v6513_v24  ;;  %2898 = vmatmul.mubr.bf16.vlgmr.msra.gmra.mxu0 %v8114_v13  ;;  %v6599_v24 = vld [vmem:[#allocation10 + $0x4ac] ss:$16 sps:$4 sm:$0xff]  }
 0x33b   :  { %2961 = vmatprep.subr.bf16.mxu1 %v6521_v29  ;;  %2995 = vmatpush1.bf16.msra.mxu0 %v6540_v3  ;;  %v6612_v29 = vld [vmem:[#allocation10 + $0x368] ss:$16 sps:$4 sm:$0xff]   ;;  %v6626_v3 = vld [vmem:[#allocation10 + $0x32c] ss:$16 sps:$4 sm:$0xff]  }
 0x33c   :  { %3026 = vmatprep.mubr.bf16.mxu0 %v8101_v0  ;;  %2996 = vmatprep.subr.bf16.mxu0 %v6548_v59  ;;  %v6576_v0 = vld [vmem:[#allocation10 + $0x228] ss:$16 sps:$4 sm:$0xff]   ;;  %v6611_v59 = vld [vmem:[#allocation10 + $0x46c] ss:$16 sps:$4 sm:$0xff]  }
 0x33e   :  { %2962 = vmatpush1.bf16.msra.mxu1 %v6519_v39  ;;  %v6605_v39 = vld [vmem:[#allocation10 + $0x48c] ss:$16 sps:$4 sm:$0xff]  }
 0x33f   :  { %2963 = vmatprep.subr.bf16.mxu1 %v6527_v11  ;;  %2997 = vmatpush1.bf16.msra.mxu0 %v6546_v57  ;;  %v6618_v11 = vld [vmem:[#allocation10 + $0x348] ss:$16 sps:$4 sm:$0xff]   ;;  %v6617_v57 = vld [vmem:[#allocation10 + $0x44c] ss:$16 sps:$4 sm:$0xff]  }
 0x340   :  { %2998 = vmatprep.subr.bf16.mxu0 %v6554_v1  ;;  %v6630_v1 = vld [vmem:[#allocation10 + $0x308] ss:$16 sps:$4 sm:$0xff]  }
 0x342   :  { %2964 = vmatpush1.bf16.msra.mxu1 %v6525_v47  ;;  %v6632_v47 = vld [vmem:[#allocation10 + $0x30c] ss:$16 sps:$4 sm:$0xff]  }
 0x343   :  { %2965 = vmatprep.subr.bf16.mxu1 %v6533_v9  ;;  %2999 = vmatpush1.bf16.msra.mxu0 %v6552_v35  ;;  %v6609_v9 = vld [vmem:[#allocation10 + $0x468] ss:$16 sps:$4 sm:$0xff]   ;;  %v6623_v35 = vld [vmem:[#allocation10 + $0x42c] ss:$16 sps:$4 sm:$0xff]  }
 0x344   :  { %3000 = vmatprep.subr.bf16.mxu0 %v6560_v19  ;;  %v6636_v19 = vld [vmem:[#allocation10 + $0x628] ss:$16 sps:$4 sm:$0xff]  }
 0x346   :  { %2966 = vmatpush1.bf16.msra.mxu1 %v6531_v36  ;;  %v6638_v36 = vld [vmem:[#allocation10 + $0x62c] ss:$16 sps:$4 sm:$0xff]  }
 0x347   :  { %2967 = vmatprep.subr.bf16.mxu1 %v6539_v51  ;;  %3001 = vmatpush1.bf16.msra.mxu0 %v6558_v5  ;;  %v6615_v51 = vld [vmem:[#allocation10 + $0x448] ss:$16 sps:$4 sm:$0xff]   ;;  %v6629_v5 = vld [vmem:[#allocation10 + $0x40c] ss:$16 sps:$4 sm:$0xff]  }
 0x348   :  { %3002 = vmatprep.subr.bf16.mxu0 %v6566_v4  ;;  %v6642_v4 = vld [vmem:[#allocation10 + $0x608] ss:$16 sps:$4 sm:$0xff]  }
 0x34a   :  { %2968 = vmatpush2.bf16.msra.mxu1 %v6537_v31  ;;  %v6644_v31 = vld [vmem:[#allocation10 + $0x60c] ss:$16 sps:$4 sm:$0xff]  }
 0x34b   :  { %2969 = vmatprep.subr.bf16.mxu1 %v6545_v8  ;;  %3003 = vmatpush1.bf16.msra.mxu0 %v6564_v45  ;;  %v6621_v8 = vld [vmem:[#allocation10 + $0x428] ss:$16 sps:$4 sm:$0xff]  }
 0x34c   :  { %3004 = vmatprep.subr.bf16.mxu0 %v6572_v44  ;;  %v6633_v45 = vld [vmem:[#allocation10 + $0x5e8] ss:$16 sps:$4 sm:$0xff]   ;;  %v6641_v44 = vld [vmem:[#allocation10 + $0x5cc] ss:$16 sps:$4 sm:$0xff]  }
 0x34e   :  { %2970 = vmatpush2.bf16.msra.mxu1 %v6543_v50  ;;  %v6627_v50 = vld [vmem:[#allocation10 + $0x408] ss:$16 sps:$4 sm:$0xff]  }
 0x34f   :  { %2971 = vmatprep.subr.bf16.mxu1 %v6551_v55  ;;  %3005 = vmatpush1.bf16.msra.mxu0 %v6570_v42  ;;  %v6635_v55 = vld [vmem:[#allocation10 + $0x5ec] ss:$16 sps:$4 sm:$0xff]   ;;  %v6648_v42 = vld [vmem:[#allocation10 + $0x588] ss:$16 sps:$4 sm:$0xff]  }
 0x350   :  { %3006 = vmatprep.subr.bf16.mxu0 %v6578_v58  ;;  %v6653_v58 = vld [vmem:[#allocation10 + $0x56c] ss:$16 sps:$4 sm:$0xff]  }
 0x352   :  { %2972 = vmatpush2.bf16.msra.mxu1 %v6549_v52  ;;  %v6647_v52 = vld [vmem:[#allocation10 + $0x5ac] ss:$16 sps:$4 sm:$0xff]  }
 0x353   :  { %2973 = vmatprep.subr.bf16.mxu1 %v6557_v38  ;;  %3007 = vmatpush1.bf16.msra.mxu0 %v6576_v0  ;;  %v6645_v38 = vld [vmem:[#allocation10 + $0x5a8] ss:$16 sps:$4 sm:$0xff]   ;;  %v6659_v0 = vld [vmem:[#allocation10 + $0x52c] ss:$16 sps:$4 sm:$0xff]  }
 0x354   :  { %3008 = vmatprep.subr.bf16.mxu0 %v6584_v28  ;;  %v6657_v28 = vld [vmem:[#allocation10 + $0x528] ss:$16 sps:$4 sm:$0xff]  }
 0x356   :  { %2974 = vmatpush2.bf16.msra.mxu1 %v6555_v49  ;;  %v6651_v49 = vld [vmem:[#allocation10 + $0x568] ss:$16 sps:$4 sm:$0xff]  }
 0x357   :  { %2975 = vmatprep.subr.bf16.mxu1 %v6563_v46  ;;  %3009 = vmatpush1.bf16.msra.mxu0 %v6582_v6  ;;  %v6656_v46 = vld [vmem:[#allocation10 + $0x54c] ss:$16 sps:$4 sm:$0xff]   ;;  %v6663_v6 = vld [vmem:[#allocation12 + $0xe0] ss:$16 sps:$4 sm:$0xff]  }
 0x358   :  { %3010 = vmatprep.subr.bf16.mxu0 %v6590_v33  ;;  %v6665_v33 = vld [vmem:[#allocation12 + $0xe4] ss:$16 sps:$4 sm:$0xff]  }
 0x35a   :  { %2976 = vmatpush2.bf16.msra.mxu1 %v6561_v40  ;;  %v6662_v40 = vld [vmem:[#allocation10 + $0x50c] ss:$16 sps:$4 sm:$0xff]  }
 0x35b   :  { %2977 = vmatprep.subr.bf16.mxu1 %v6569_v56  ;;  %3011 = vmatpush2.bf16.msra.mxu0 %v6588_v30  ;;  %v6660_v56 = vld [vmem:[#allocation10 + $0x508] ss:$16 sps:$4 sm:$0xff]   ;;  %v6669_v30 = vld [vmem:[#allocation12 + $0xc0] ss:$16 sps:$4 sm:$0xff]  }
 0x35c   :  { %3012 = vmatprep.subr.bf16.mxu0 %v6596_v53  ;;  %v6671_v53 = vld [vmem:[#allocation12 + $0xc4] ss:$16 sps:$4 sm:$0xff]  }
 0x35e   :  { %2978 = vmatpush2.bf16.msra.mxu1 %v6567_v17  ;;  %v6666_v17 = vld [vmem:[#allocation12 + $0x2e0] ss:$16 sps:$4 sm:$0xff]  }
 0x35f   :  { %2979 = vmatprep.subr.bf16.mxu1 %v6575_v14  ;;  %3013 = vmatpush2.bf16.msra.mxu0 %v6594_v41  ;;  %v6668_v14 = vld [vmem:[#allocation12 + $0x2e4] ss:$16 sps:$4 sm:$0xff]  }
 0x360   :  { %3014 = vmatprep.subr.bf16.mxu0 %v6602_v27  ;;  %v6677_v41 = vld [vmem:[#allocation12 + $0xa4] ss:$16 sps:$4 sm:$0xff]  }
 0x361   :  { %v6680_v27 = vld [vmem:[#allocation12 + $0x2a4] ss:$16 sps:$4 sm:$0xff]  }
 0x362   :  { %2980 = vmatpush2.bf16.msra.mxu1 %v6573_v21  ;;  %v6672_v21 = vld [vmem:[#allocation12 + $0x2c0] ss:$16 sps:$4 sm:$0xff]  }
 0x363   :  { %2981 = vmatprep.subr.bf16.mxu1 %v6581_v10  ;;  %3015 = vmatpush2.bf16.msra.mxu0 %v6600_v62  ;;  %v6674_v10 = vld [vmem:[#allocation12 + $0x2c4] ss:$16 sps:$4 sm:$0xff]  }
 0x364   :  { %3016 = vmatprep.subr.bf16.mxu0 %v6608_v54  ;;  %v6686_v62 = vld [vmem:[#allocation12 + $0x284] ss:$16 sps:$4 sm:$0xff]   ;;  %v6681_v54 = vld [vmem:[#allocation12 + $0x80] ss:$16 sps:$4 sm:$0xff]  }
 0x366   :  { %2982 = vmatpush2.bf16.msra.mxu1 %v6579_v34  ;;  %v6675_v34 = vld [vmem:[#allocation12 + $0xa0] ss:$16 sps:$4 sm:$0xff]  }
 0x367   :  { %3037 = vmatprep.subr.bf16.mxu1 %v6587_v48  ;;  %3017 = vmatpush2.bf16.msra.mxu0 %v6606_v7  ;;  %v6678_v48 = vld [vmem:[#allocation12 + $0x2a0] ss:$16 sps:$4 sm:$0xff]   ;;  %v6692_v7 = vld [vmem:[#allocation12 + $0x264] ss:$16 sps:$4 sm:$0xff]  }
 0x368   :  { %3018 = vmatprep.subr.bf16.mxu0 %v6614_v26  ;;  %v6687_v26 = vld [vmem:[#allocation12 + $0x60] ss:$16 sps:$4 sm:$0xff]  }
 0x369   :  { %2984 = vmatmul.mubr.bf16.vlgmr.msra.gmra.mxu1 %v8039_v23  ;;  %v6603_v23 = vld [vmem:[#allocation10 + $0x488] ss:$16 sps:$4 sm:$0xff]  }
 0x36a   :  { %3038 = vmatpush1.bf16.msra.mxu1 %v6585_v15  ;;  %3069 = vmatprep.mubr.bf16.mxu1 %v8103_v18  ;;  %v6624_v18 = vld [vmem:[#allocation10 + $0x328] ss:$16 sps:$4 sm:$0xff]   ;;  %v6689_v15 = vld [vmem:[#allocation12 + $0x64] ss:$16 sps:$4 sm:$0xff]  }
 0x36b   :  { %3039 = vmatprep.subr.bf16.mxu1 %v6593_v20  ;;  %3019 = vmatpush2.bf16.msra.mxu0 %v6612_v29  ;;  %v6684_v20 = vld [vmem:[#allocation12 + $0x280] ss:$16 sps:$4 sm:$0xff]   ;;  %v6695_v29 = vld [vmem:[#allocation12 + $0x44] ss:$16 sps:$4 sm:$0xff]  }
 0x36c   :  { %3020 = vmatprep.subr.bf16.mxu0 %v6620_v32  ;;  %v6698_v32 = vld [vmem:[#allocation12 + $0x244] ss:$16 sps:$4 sm:$0xff]  }
 0x36e   :  { %3040 = vmatpush1.bf16.msra.mxu1 %v6591_v12  ;;  %v6690_v12 = vld [vmem:[#allocation12 + $0x260] ss:$16 sps:$4 sm:$0xff]  }
 0x36f   :  { %3041 = vmatprep.subr.bf16.mxu1 %v6599_v24  ;;  %3021 = vmatpush2.bf16.msra.mxu0 %v6618_v11  ;;  %v6693_v24 = vld [vmem:[#allocation12 + $0x40] ss:$16 sps:$4 sm:$0xff]   ;;  %v6701_v11 = vld [vmem:[#allocation12 + $0x24] ss:$16 sps:$4 sm:$0xff]  }
 0x370   :  { %3022 = vmatprep.subr.bf16.mxu0 %v6626_v3  ;;  %v6704_v3 = vld [vmem:[#allocation12 + $0x224] ss:$16 sps:$4 sm:$0xff]  }
 0x372   :  { %3042 = vmatpush1.bf16.msra.mxu1 %v6597_v16  ;;  %v6696_v16 = vld [vmem:[#allocation12 + $0x240] ss:$16 sps:$4 sm:$0xff]  }
 0x373   :  { %3043 = vmatprep.subr.bf16.mxu1 %v6605_v39  ;;  %3023 = vmatpush2.bf16.msra.mxu0 %v6624_v18  ;;  %v6699_v39 = vld [vmem:[#allocation12 + $0x20] ss:$16 sps:$4 sm:$0xff]   ;;  %v6707_v18 = vld [vmem:[#allocation12 + $0x4] ss:$16 sps:$4 sm:$0xff]  }
 0x374   :  { %3024 = vmatprep.subr.bf16.mxu0 %v6632_v47  ;;  %v6708_v47 = vld [vmem:[#allocation12 + $0x200] ss:$16 sps:$4 sm:$0xff]  }
 0x376   :  { %3044 = vmatpush1.bf16.msra.mxu1 %v6603_v23  ;;  %v6702_v23 = vld [vmem:[#allocation12 + $0x220] ss:$16 sps:$4 sm:$0xff]  }
 0x377   :  { %3045 = vmatprep.subr.bf16.mxu1 %v6611_v59  ;;  %3025 = vmatpush2.bf16.msra.mxu0 %v6630_v1  ;;  %v6705_v59 = vld [vmem:[#allocation12] ss:$16 sps:$4 sm:$0xff]  }
 0x378   :  { %3092 = vmatprep.subr.bf16.mxu0 %v6638_v36  ;;  %v6711_v1 = vld [vmem:[#allocation12 + $0x1e0] ss:$16 sps:$4 sm:$0xff]   ;;  %v6716_v36 = vld [vmem:[#allocation12 + $0x3e4] ss:$16 sps:$4 sm:$0xff]  }
 0x37a   :  { %3046 = vmatpush1.bf16.msra.mxu1 %v6609_v9  ;;  %3027 = vmatmul.mubr.bf16.vlgmr.msra.gmra.mxu0 %v8099_v37  ;;  %v6639_v37 = vld [vmem:[#allocation10 + $0x5c8] ss:$16 sps:$4 sm:$0xff]   ;;  %v6710_v9 = vld [vmem:[#allocation12 + $0x204] ss:$16 sps:$4 sm:$0xff]  }
 0x37b   :  { %3047 = vmatprep.subr.bf16.mxu1 %v6617_v57  ;;  %3093 = vmatpush1.bf16.msra.mxu0 %v6636_v19  ;;  %v6713_v57 = vld [vmem:[#allocation12 + $0x1e4] ss:$16 sps:$4 sm:$0xff]  }
 0x37c   :  { %3094 = vmatprep.subr.bf16.mxu0 %v6644_v31  ;;  %3112 = vmatprep.mubr.bf16.mxu0 %v8272_v25  ;;  %v6650_v25 = vld [vmem:[#allocation10 + $0x58c] ss:$16 sps:$4 sm:$0xff]   ;;  %v6722_v19 = vld [vmem:[#allocation12 + $0x3c4] ss:$16 sps:$4 sm:$0xff]   ;;  %v6717_v31 = vld [vmem:[#allocation12 + $0x1c0] ss:$16 sps:$4 sm:$0xff]  }
 0x37e   :  { %3048 = vmatpush1.bf16.msra.mxu1 %v6615_v51  ;;  %v6719_v51 = vld [vmem:[#allocation12 + $0x1c4] ss:$16 sps:$4 sm:$0xff]  }
 0x37f   :  { %3049 = vmatprep.subr.bf16.mxu1 %v6623_v35  ;;  %3095 = vmatpush1.bf16.msra.mxu0 %v6642_v4  ;;  %v6714_v35 = vld [vmem:[#allocation12 + $0x3e0] ss:$16 sps:$4 sm:$0xff]   ;;  %v6728_v4 = vld [vmem:[#allocation12 + $0x3a4] ss:$16 sps:$4 sm:$0xff]  }
 0x380   :  { %4933 = vmatprep.subr.bf16.mxu0 %v6665_v33  ;;  %v6750_v33 = vld [vmem:[#allocation12 + $0x320] ss:$16 sps:$4 sm:$0xff]  }
 0x382   :  { %3050 = vmatpush1.bf16.msra.mxu1 %v6621_v8  ;;  %5908 = vmatmul.mubr.msk.bf16.vlgmr.msra.gmra.mxu0 %vm1266_vm14, %v8109_v2  ;;  %v6654_v2 = vld [vmem:[#allocation10 + $0x548] ss:$16 sps:$4 sm:$0xff]   ;;  %v6725_v8 = vld [vmem:[#allocation12 + $0x1a4] ss:$16 sps:$4 sm:$0xff]   ;;  %vm8275_vm14 = vcmask 1043459  }
 0x383   :  { %3051 = vmatprep.subr.bf16.mxu1 %v6629_v5  ;;  %4934 = vmatpush1.bf16.msra.mxu0 %v6663_v6  ;;  %v6720_v5 = vld [vmem:[#allocation12 + $0x3c0] ss:$16 sps:$4 sm:$0xff]   ;;  %v6755_v6 = vld [vmem:[#allocation12 + $0x104] ss:$16 sps:$4 sm:$0xff]   ;;  %vm8278_vm11 = vmmov %vm8275_vm14 }
 0x384   :  { %4935 = vmatprep.subr.bf16.mxu0 %v6671_v53  ;;  %v6756_v53 = vld [vmem:[#allocation12 + $0x300] ss:$16 sps:$4 sm:$0xff]  }
 0x386   :  { %3052 = vmatpush1.bf16.msra.mxu1 %v6627_v50  ;;  %v6723_v50 = vld [vmem:[#allocation12 + $0x1a0] ss:$16 sps:$4 sm:$0xff]  }
 0x387   :  { %3053 = vmatprep.subr.bf16.mxu1 %v6635_v55  ;;  %4936 = vmatpush1.bf16.msra.mxu0 %v6669_v30  ;;  %v6731_v55 = vld [vmem:[#allocation12 + $0x184] ss:$16 sps:$4 sm:$0xff]  }
 0x388   :  { %4937 = vmatprep.subr.bf16.mxu0 %v6677_v41  ;;  %v6761_v30 = vld [vmem:[#allocation12 + $0x4e4] ss:$16 sps:$4 sm:$0xff]  }
 0x38a   :  { %3054 = vmatpush2.bf16.msra.mxu1 %v6633_v45  ;;  %v6726_v45 = vld [vmem:[#allocation12 + $0x3a0] ss:$16 sps:$4 sm:$0xff]  }
 0x38b   :  { %3055 = vmatprep.subr.bf16.mxu1 %v6641_v44  ;;  %4938 = vmatpush1.bf16.msra.mxu0 %v6675_v34  ;;  %v6734_v44 = vld [vmem:[#allocation12 + $0x384] ss:$16 sps:$4 sm:$0xff]  }
 0x38e   :  { %3056 = vmatpush2.bf16.msra.mxu1 %v6639_v37  ;;  %v6729_v37 = vld [vmem:[#allocation12 + $0x180] ss:$16 sps:$4 sm:$0xff]  }
 0x38f   :  { %3057 = vmatprep.subr.bf16.mxu1 %v6647_v52  ;;  %v6737_v52 = vld [vmem:[#allocation12 + $0x164] ss:$16 sps:$4 sm:$0xff]  }
 0x392   :  { %3058 = vmatpush2.bf16.msra.mxu1 %v6645_v38  ;;  %v6732_v38 = vld [vmem:[#allocation12 + $0x380] ss:$16 sps:$4 sm:$0xff]  }
 0x393   :  { %3059 = vmatprep.subr.bf16.mxu1 %v6650_v25  ;;  %v6740_v25 = vld [vmem:[#allocation12 + $0x364] ss:$16 sps:$4 sm:$0xff]  }
 0x396   :  { %3060 = vmatpush2.bf16.msra.mxu1 %v6648_v42  ;;  %v6735_v42 = vld [vmem:[#allocation12 + $0x160] ss:$16 sps:$4 sm:$0xff]  }
 0x397   :  { %3061 = vmatprep.subr.bf16.mxu1 %v6653_v58  ;;  %v6743_v58 = vld [vmem:[#allocation12 + $0x144] ss:$16 sps:$4 sm:$0xff]  }
 0x39a   :  { %3062 = vmatpush2.bf16.msra.mxu1 %v6651_v49  ;;  %v6738_v49 = vld [vmem:[#allocation12 + $0x360] ss:$16 sps:$4 sm:$0xff]  }
 0x39b   :  { %3063 = vmatprep.subr.bf16.mxu1 %v6656_v46  ;;  %v6746_v46 = vld [vmem:[#allocation12 + $0x344] ss:$16 sps:$4 sm:$0xff]  }
 0x39e   :  { %3064 = vmatpush2.bf16.msra.mxu1 %v6654_v2  ;;  %v6741_v2 = vld [vmem:[#allocation12 + $0x140] ss:$16 sps:$4 sm:$0xff]  }
 0x39f   :  { %3065 = vmatprep.subr.bf16.mxu1 %v6659_v0  ;;  %v6749_v0 = vld [vmem:[#allocation12 + $0x124] ss:$16 sps:$4 sm:$0xff]  }
 0x3a2   :  { %3066 = vmatpush2.bf16.msra.mxu1 %v6657_v28  ;;  %v6744_v28 = vld [vmem:[#allocation12 + $0x340] ss:$16 sps:$4 sm:$0xff]  }
 0x3a3   :  { %3067 = vmatprep.subr.bf16.mxu1 %v6662_v40  ;;  %v6752_v40 = vld [vmem:[#allocation12 + $0x324] ss:$16 sps:$4 sm:$0xff]  }
 0x3a6   :  { %3068 = vmatpush2.bf16.msra.mxu1 %v6660_v56  ;;  %v6747_v56 = vld [vmem:[#allocation12 + $0x120] ss:$16 sps:$4 sm:$0xff]  }
 0x3a7   :  { %4974 = vmatprep.subr.bf16.mxu1 %v6668_v14  ;;  %v6753_v14 = vld [vmem:[#allocation12 + $0x100] ss:$16 sps:$4 sm:$0xff]  }
 0x3a9   :  { %3070 = vmatmul.mubr.bf16.vlgmr.msra.gmra.mxu1 %v8114_v13  ;;  %v6683_v13 = vld [vmem:[#allocation12 + $0x84] ss:$16 sps:$4 sm:$0xff]  }
 0x3aa   :  { %4975 = vmatpush1.bf16.msra.mxu1 %v6666_v17  ;;  %4939 = vmatprep.subr.bf16.mxu0 %v6683_v13  ;;  %v6758_v17 = vld [vmem:[#allocation12 + $0x304] ss:$16 sps:$4 sm:$0xff]  }
 0x3ab   :  { %4976 = vmatprep.subr.bf16.mxu1 %v6674_v10  ;;  %4940 = vmatpush1.bf16.msra.mxu0 %v6681_v54 }
 0x3ac   :  { %4941 = vmatprep.subr.bf16.mxu0 %v6689_v15 }
 0x3ae   :  { %4977 = vmatpush1.bf16.msra.mxu1 %v6672_v21  ;;  %v6764_v21 = vld [vmem:[#allocation12 + $0x6e4] ss:$16 sps:$4 sm:$0xff]  }
 0x3af   :  { %4978 = vmatprep.subr.bf16.mxu1 %v6680_v27  ;;  %4942 = vmatpush1.bf16.msra.mxu0 %v6687_v26 }
 0x3b0   :  { %4943 = vmatprep.subr.bf16.mxu0 %v6695_v29 }
 0x3b2   :  { %4979 = vmatpush1.bf16.msra.mxu1 %v6678_v48 }
 0x3b3   :  { %4980 = vmatprep.subr.bf16.mxu1 %v6686_v62  ;;  %4944 = vmatpush1.bf16.msra.mxu0 %v6693_v24 }
 0x3b4   :  { %4945 = vmatprep.subr.bf16.mxu0 %v6701_v11 }
 0x3b6   :  { %4981 = vmatpush1.bf16.msra.mxu1 %v6684_v20 }
 0x3b7   :  { %4982 = vmatprep.subr.bf16.mxu1 %v6692_v7  ;;  %4946 = vmatpush1.bf16.msra.mxu0 %v6699_v39 }
 0x3b8   :  { %4947 = vmatprep.subr.bf16.mxu0 %v6707_v18 }
 0x3b9   :  { %v2813_v10 = vpop.f32.mrf.mxu0 }
 0x3ba   :  { %4983 = vmatpush1.bf16.msra.mxu1 %v6690_v12 }
 0x3bb   :  { %4984 = vmatprep.subr.bf16.mxu1 %v6698_v32  ;;  %4948 = vmatpush1.bf16.msra.mxu0 %v6705_v59  ;;  %v2815_v41 = vpop.f32.mrf.mxu0 }
 0x3bc   :  { %4949 = vmatprep.subr.bf16.mxu0 %v6713_v57 }
 0x3bd   :  { %v2817_v34 = vpop.f32.mrf.mxu0 }
 0x3be   :  { %4985 = vmatpush1.bf16.msra.mxu1 %v6696_v16 }
 0x3bf   :  { %4986 = vmatprep.subr.bf16.mxu1 %v6704_v3  ;;  %4950 = vmatpush2.bf16.msra.mxu0 %v6711_v1  ;;  %v2819_v48 = vpop.f32.mrf.mxu0  ;;  %v1718_v3 = vld [vmem:[%s8209_s4] sm:$0xf] }
 0x3c0   :  { %4951 = vmatprep.subr.bf16.mxu0 %v6719_v51  ;;  %v1723_v59 = vrot.slane %v1718_v3, %v7528_v43  ;;  %v1727_v18 = vrot.slane %v1718_v3, %v7480_v61  ;;  %v1731_v1 = vrot.slane %v1718_v3, %v7485_v63 }
 0x3c2   :  { %4987 = vmatpush1.bf16.msra.mxu1 %v6702_v23  ;;  %v2816_v51 = vadd.f32 %v2815_v41, %v1727_v18 }
 0x3c3   :  { %4988 = vmatprep.subr.bf16.mxu1 %v6710_v9  ;;  %4952 = vmatpush2.bf16.msra.mxu0 %v6717_v31  ;;  %v1734_v9 = vsub.s32 3, %v7477_v60 }
 0x3c4   :  { %4953 = vmatprep.subr.bf16.mxu0 %v6725_v8 }
 0x3c6   :  { %4989 = vmatpush1.bf16.msra.mxu1 %v6708_v47 }
 0x3c7   :  { %4990 = vmatprep.subr.bf16.mxu1 %v6716_v36  ;;  %4954 = vmatpush2.bf16.msra.mxu0 %v6723_v50  ;;  %v2814_v36 = vadd.f32 %v2813_v10, %v1723_v59  ;;  %v2820_v50 = vadd.f32 %v2819_v48, %v1727_v18 }
 0x3c8   :  { %4955 = vmatprep.subr.bf16.mxu0 %v6731_v55 }
 0x3ca   :  { %4991 = vmatpush2.bf16.msra.mxu1 %v6714_v35 }
 0x3cb   :  { %4992 = vmatprep.subr.bf16.mxu1 %v6722_v19  ;;  %4956 = vmatpush2.bf16.msra.mxu0 %v6729_v37  ;;  %v1735_v19 = vrot.slane %v1718_v3, %v1734_v9  ;;  %v7269_v3 = vmov 572653568  }
 0x3cc   :  { %4957 = vmatprep.subr.bf16.mxu0 %v6737_v52 }
 0x3ce   :  { %4993 = vmatpush2.bf16.msra.mxu1 %v6720_v5 }
 0x3cf   :  { %4994 = vmatprep.subr.bf16.mxu1 %v6728_v4  ;;  %4958 = vmatpush2.bf16.msra.mxu0 %v6735_v42 }
 0x3d0   :  { %4959 = vmatprep.subr.bf16.mxu0 %v6743_v58 }
 0x3d2   :  { %4995 = vmatpush2.bf16.msra.mxu1 %v6726_v45 }
 0x3d3   :  { %4996 = vmatprep.subr.bf16.mxu1 %v6734_v44  ;;  %4960 = vmatpush2.bf16.msra.mxu0 %v6741_v2 }
 0x3d4   :  { %4961 = vmatprep.subr.bf16.mxu0 %v6749_v0 }
 0x3d6   :  { %4997 = vmatpush2.bf16.msra.mxu1 %v6732_v38  ;;  %v2818_v38 = vadd.f32 %v2817_v34, %v1723_v59 }
 0x3d7   :  { %4998 = vmatprep.subr.bf16.mxu1 %v6740_v25  ;;  %4962 = vmatpush2.bf16.msra.mxu0 %v6747_v56 }
 0x3d8   :  { %4963 = vmatprep.subr.bf16.mxu0 %v6755_v6 }
 0x3da   :  { %4999 = vmatpush2.bf16.msra.mxu1 %v6738_v49 }
 0x3db   :  { %5000 = vmatprep.subr.bf16.mxu1 %v6746_v46  ;;  %4964 = vmatpush2.bf16.msra.mxu0 %v6753_v14 }
 0x3dc   :  { %5015 = vmatprep.subr.bf16.mxu0 %v6761_v30 }
 0x3de   :  { %5001 = vmatpush2.bf16.msra.mxu1 %v6744_v28 }
 0x3df   :  { %5002 = vmatprep.subr.bf16.mxu1 %v6752_v40 }
 0x3e1   :  { %v2856_v27 = vpop.f32.mrf.mxu1 }
 0x3e2   :  { %5003 = vmatpush2.bf16.msra.mxu1 %v6750_v33  ;;  %v2857_v31 = vadd.f32 %v2856_v27, %v2814_v36 }
 0x3e3   :  { %5004 = vmatprep.subr.bf16.mxu1 %v6758_v17  ;;  %v2858_v13 = vpop.f32.mrf.mxu1 }
 0x3e4   :  { %v2859_v8 = vadd.f32 %v2858_v13, %v2816_v51 }
 0x3e5   :  { %v2860_v62 = vpop.f32.mrf.mxu1 }
 0x3e6   :  { %5005 = vmatpush2.bf16.msra.mxu1 %v6756_v53  ;;  %v2861_v0 = vadd.f32 %v2860_v62, %v2818_v38 }
 0x3e7   :  { %5056 = vmatprep.subr.bf16.mxu1 %v6764_v21  ;;  %v2862_v15 = vpop.f32.mrf.mxu1 }
 0x3e8   :  { %v2863_v25 = vadd.f32 %v2862_v15, %v2820_v50 }
 0x3e9   :  { %v2942_v7 = vpop.f32.mrf.mxu1 }
 0x3eb   :  { %v2944_v12 = vpop.f32.mrf.mxu1 }
 0x3ed   :  { %v2946_v29 = vpop.f32.mrf.mxu1 }
 0x3ef   :  { %v2948_v16 = vpop.f32.mrf.mxu1 }
 0x3fa   :  { %v2899_v54 = vpop.f32.mrf.mxu0 }
 0x3fb   :  { %v2900_v55 = vadd.f32 %v2899_v54, %v2857_v31 }
 0x3fc   :  { %v2901_v20 = vpop.f32.mrf.mxu0 }
 0x3fd   :  { %v2902_v45 = vadd.f32 %v2901_v20, %v2859_v8  ;;  %v2943_v28 = vadd.f32 %v2942_v7, %v2900_v55 }
 0x3fe   :  { %v2903_v26 = vpop.f32.mrf.mxu0 }
 0x3ff   :  { %v2945_v40 = vadd.f32 %v2944_v12, %v2902_v45  ;;  %v2904_v53 = vadd.f32 %v2903_v26, %v2861_v0  ;;  %v3123_v48 = vmax.f32 %v2943_v28, 0.0 }
 0x400   :  { %v2905_v24 = vpop.f32.mrf.mxu0 }
 0x401   :  { %v2906_v56 = vadd.f32 %v2905_v24, %v2863_v25  ;;  %v3124_v54 = vmax.f32 %v2945_v40, 0.0  ;;  %v2947_v24 = vadd.f32 %v2946_v29, %v2904_v53 }
 0x403   :  { %v2949_v20 = vadd.f32 %v2948_v16, %v2906_v56  ;;  %v3127_v36 = vmax.f32 %v2947_v24, 0.0 }
 0x405   :  { %v3128_v18 = vmax.f32 %v2949_v20, 0.0 }
 0x429   :  { %v2985_v11 = vpop.f32.mrf.mxu1 }
 0x42a   :  { %v2986_v4 = vadd.f32 %v2985_v11, %v1731_v1 }
 0x42b   :  { %v2987_v47 = vpop.f32.mrf.mxu1 }
 0x42c   :  { %v2988_v37 = vadd.f32 %v2987_v47, %v1735_v19 }
 0x42d   :  { %v2989_v35 = vpop.f32.mrf.mxu1 }
 0x42e   :  { %v2990_v49 = vadd.f32 %v2989_v35, %v1731_v1 }
 0x42f   :  { %v2991_v44 = vpop.f32.mrf.mxu1 }
 0x430   :  { %v2992_v33 = vadd.f32 %v2991_v44, %v1735_v19 }
 0x43a   :  { %v3028_v32 = vpop.f32.mrf.mxu0 }
 0x43b   :  { %v3029_v52 = vadd.f32 %v3028_v32, %v2986_v4 }
 0x43c   :  { %v3030_v39 = vpop.f32.mrf.mxu0 }
 0x43d   :  { %v3031_v46 = vadd.f32 %v3030_v39, %v2988_v37 }
 0x43e   :  { %v3032_v23 = vpop.f32.mrf.mxu0 }
 0x43f   :  { %v3033_v17 = vadd.f32 %v3032_v23, %v2990_v49  ;;  %v3224_v23 = vunpack.c.l.s4 %v7269_v3 }
 0x440   :  { %v3034_v57 = vpop.f32.mrf.mxu0 }
 0x441   :  { %v3035_v41 = vadd.f32 %v3034_v57, %v2992_v33  ;;  %v3225_v35 = vunpack.c.0.s8 %v3224_v23 }
 0x442   :  { %v3114_v5 = vpop.f32.mrf.mxu0 }
 0x444   :  { %v3116_v42 = vpop.f32.mrf.mxu0 }
 0x446   :  { %v3118_v21 = vpop.f32.mrf.mxu0 }
 0x448   :  { %v3120_v32 = vpop.f32.mrf.mxu0 }
 0x469   :  { %v3071_v58 = vpop.f32.mrf.mxu1 }
 0x46a   :  { %v3072_v2 = vadd.f32 %v3071_v58, %v3029_v52  ;;  %v3228_v52 = vsub.s32 %v3225_v35, %v7477_v60 }
 0x46b   :  { %v3073_v6 = vpop.f32.mrf.mxu1 }
 0x46c   :  { %v3115_v14 = vadd.f32 %v3114_v5, %v3072_v2  ;;  %v3074_v30 = vadd.f32 %v3073_v6, %v3031_v46  ;;  %v7270_v6 = vmov 1935823168  }
 0x46d   :  { %v3075_v10 = vpop.f32.mrf.mxu1  ;;  %v3294_v33 = vunpack.c.l.s4 %v7270_v6  ;;  %v6768_v6 = vld [vmem:[#allocation12 + $0x6c0] ss:$16 sps:$4 sm:$0xff]  }
 0x46e   :  { %v3125_v27 = vmax.f32 %v3115_v14, 0.0  ;;  %v3117_v34 = vadd.f32 %v3116_v42, %v3074_v30  ;;  %v3076_v13 = vadd.f32 %v3075_v10, %v3033_v17 }
 0x46f   :  { %v3077_v15 = vpop.f32.mrf.mxu1 }
 0x470   :  { %v3126_v62 = vmax.f32 %v3117_v34, 0.0  ;;  %v3119_v7 = vadd.f32 %v3118_v21, %v3076_v13  ;;  %v3078_v12 = vadd.f32 %v3077_v15, %v3035_v41  ;;  %v3131_v39 = vmax.f32 %v3123_v48, %v3125_v27 }
 0x471   :  { %v3295_v13 = vunpack.c.0.s8 %v3294_v33  ;;  %v7271_v48 = vmov 1966171168   ;;  %v6776_v33 = vld [vmem:[#allocation12 + $0x6a4] ss:$16 sps:$4 sm:$0xff]  }
 0x472   :  { %v3132_v11 = vmax.f32 %v3124_v54, %v3126_v62  ;;  %v3121_v26 = vadd.f32 %v3120_v32, %v3078_v12  ;;  %v3129_v59 = vmax.f32 %v3119_v7, 0.0  ;;  %v3312_v54 = vunpack.c.l.s4 %v7271_v48  ;;  %v6794_v48 = vld [vmem:[#allocation12 + $0x644] ss:$16 sps:$4 sm:$0xff]  }
 0x473   :  { %v3298_v23 = vsub.s32 %v3295_v13, %v7477_v60  ;;  %v6786_v13 = vld [vmem:[#allocation12 + $0x660] ss:$16 sps:$4 sm:$0xff]  }
 0x474   :  { %v3139_v47 = vcombine.low %v3131_v39, %v3132_v11  ;;  %v3140_v57 = vcombine.high %v3131_v39, %v3132_v11  ;;  %v3130_v1 = vmax.f32 %v3121_v26, 0.0  ;;  %v3133_v31 = vmax.f32 %v3127_v36, %v3129_v59 }
 0x475   :  { %v3313_v26 = vunpack.c.0.s8 %v3312_v54  ;;  %v6789_v54 = vld [vmem:[#allocation12 + $0x440] ss:$16 sps:$4 sm:$0xff]  }
 0x476   :  { %v3147_v51 = vrot.slane %v3139_v47, %v7542_v22  ;;  %v3154_v16 = vrot.slane %v3140_v57, %v7542_v22  ;;  %v3134_v19 = vmax.f32 %v3128_v18, %v3130_v1 }
 0x478   :  { %v3155_v29 = vcombine.high %v3147_v51, %v3147_v51  ;;  %v3156_v8 = vcombine.high %v3154_v16, %v3154_v16  ;;  %v5909_v5 = vrot.slane %v3147_v51, 9  ;;  %v5911_v4 = vrot.slane %v3154_v16, 9 }
 0x479   :  { %v3157_v50 = vcombine.low %v3133_v31, %v3134_v19  ;;  %v3158_v55 = vcombine.high %v3133_v31, %v3134_v19 }
 0x47a   :  { %v5910_v45 = vrot.slane %v3155_v29, 9  ;;  %v5912_v44 = vrot.slane %v3156_v8, 9  ;;  %v3207_v37 = vmax.f32 %v3147_v51, %v5909_v5  ;;  %v3209_v58 = vmax.f32 %v3154_v16, %v5911_v4 }
 0x47b   :  { %v3165_v38 = vrot.slane %v3157_v50, %v7542_v22  ;;  %v3172_v25 = vrot.slane %v3158_v55, %v7542_v22  ;;  %v3316_v51 = vsub.s32 %v3313_v26, %v7477_v60  ;;  %v6807_v26 = vld [vmem:[#allocation12 + $0x5e0] ss:$16 sps:$4 sm:$0xff]  }
 0x47c   :  { %v3208_v42 = vmax.f32 %v3155_v29, %v5910_v45  ;;  %v3210_v28 = vmax.f32 %v3156_v8, %v5912_v44  ;;  %v3229_v40 = vrot.slane %v3207_v37, %v3228_v52  ;;  %v3243_v53 = vrot.slane %v3209_v58, %v3228_v52  ;;  %v6759_v37 = vld [vmem:[#allocation12 + $0x4e0] ss:$16 sps:$4 sm:$0xff]  }
 0x47d   :  { %v3173_v49 = vcombine.high %v3165_v38, %v3165_v38  ;;  %v3174_v46 = vcombine.high %v3172_v25, %v3172_v25  ;;  %v5913_v2 = vrot.slane %v3165_v38, 9  ;;  %v5915_v0 = vrot.slane %v3172_v25, 9  ;;  %v6762_v58 = vld [vmem:[#allocation12 + $0x6e0] ss:$16 sps:$4 sm:$0xff]  }
 0x47e   :  { %v3236_v56 = vrot.slane %v3208_v42, %v3228_v52  ;;  %v3250_v27 = vrot.slane %v3210_v28, %v3228_v52  ;;  %v6765_v28 = vld [vmem:[#allocation12 + $0x4c0] ss:$16 sps:$4 sm:$0xff]  }
 0x47f   :  { %v5914_v17 = vrot.slane %v3173_v49, 9  ;;  %v5916_v14 = vrot.slane %v3174_v46, 9  ;;  %v3211_v30 = vmax.f32 %v3165_v38, %v5913_v2  ;;  %v3213_v41 = vmax.f32 %v3172_v25, %v5915_v0  ;;  %v6770_v0 = vld [vmem:[#allocation12 + $0x6c4] ss:$16 sps:$4 sm:$0xff]  }
 0x480   :  { %v3279_v21 = vsel %vm1298_vm9, %v3236_v56, %v3229_v40 }
 0x481   :  { %v3280_v10 = vsel %vm1129_vm8, %v3236_v56, %v3279_v21  ;;  %v3212_v22 = vmax.f32 %v3173_v49, %v5914_v17  ;;  %v3214_v15 = vmax.f32 %v3174_v46, %v5916_v14  ;;  %v3257_v20 = vrot.slane %v3211_v30, %v3228_v52  ;;  %v6767_v49 = vld [vmem:[#allocation12 + $0x4c4] ss:$16 sps:$4 sm:$0xff]   ;;  %v6771_v17 = vld [vmem:[#allocation12 + $0x4a0] ss:$16 sps:$4 sm:$0xff]  }
 0x482   :  { %v3281_v34 = vsel %vm8273_vm10, %v3243_v53, %v3280_v10  ;;  %v3271_v12 = vrot.slane %v3213_v41, %v3228_v52  ;;  %v6773_v56 = vld [vmem:[#allocation12 + $0x4a4] ss:$16 sps:$4 sm:$0xff]   ;;  %v6774_v30 = vld [vmem:[#allocation12 + $0x6a0] ss:$16 sps:$4 sm:$0xff]  }
 0x483   :  { %v3264_v62 = vrot.slane %v3212_v22, %v3228_v52  ;;  %v3282_v7 = vsel %vm8274_vm6, %v3243_v53, %v3281_v34  ;;  %v3278_v11 = vrot.slane %v3214_v15, %v3228_v52  ;;  %v6779_v14 = vld [vmem:[#allocation12 + $0x484] ss:$16 sps:$4 sm:$0xff]   ;;  %v6777_v21 = vld [vmem:[#allocation12 + $0x480] ss:$16 sps:$4 sm:$0xff]  }
 0x484   :  { %v3283_v32 = vsel %vm8275_vm14, %v3250_v27, %v3282_v7  ;;  %v6782_v53 = vld [vmem:[#allocation12 + $0x684] ss:$16 sps:$4 sm:$0xff]   ;;  %v6780_v22 = vld [vmem:[#allocation12 + $0x680] ss:$16 sps:$4 sm:$0xff]  }
 0x485   :  { %v3285_v24 = vsel %vm1298_vm9, %v3264_v62, %v3257_v20  ;;  %v3284_v59 = vsel %vm1135_vm13, %v3250_v27, %v3283_v32  ;;  %v6785_v10 = vld [vmem:[#allocation12 + $0x464] ss:$16 sps:$4 sm:$0xff]   ;;  %v6783_v27 = vld [vmem:[#allocation12 + $0x460] ss:$16 sps:$4 sm:$0xff]  }
 0x486   :  { %v3286_v39 = vsel %vm1129_vm8, %v3264_v62, %v3285_v24  ;;  %v3299_v1 = vrot.slane %v3284_v59, %v3298_v23  ;;  %v6788_v41 = vld [vmem:[#allocation12 + $0x664] ss:$16 sps:$4 sm:$0xff]   ;;  %v6792_v20 = vld [vmem:[#allocation12 + $0x640] ss:$16 sps:$4 sm:$0xff]  }
 0x487   :  { %v3287_v3 = vsel %vm8276_vm15, %v3271_v12, %v3286_v39  ;;  %v6791_v34 = vld [vmem:[#allocation12 + $0x444] ss:$16 sps:$4 sm:$0xff]   ;;  %v6795_v7 = vld [vmem:[#allocation12 + $0x420] ss:$16 sps:$4 sm:$0xff]  }
 0x488   :  { %v3288_v18 = vsel %vm8277_vm4, %v3271_v12, %v3287_v3  ;;  %v6797_v15 = vld [vmem:[#allocation12 + $0x424] ss:$16 sps:$4 sm:$0xff]   ;;  %v6798_v24 = vld [vmem:[#allocation12 + $0x620] ss:$16 sps:$4 sm:$0xff]  }
 0x489   :  { %v3289_v47 = vsel %vm8278_vm11, %v3278_v11, %v3288_v18  ;;  %v6800_v62 = vld [vmem:[#allocation12 + $0x624] ss:$16 sps:$4 sm:$0xff]   ;;  %v6801_v39 = vld [vmem:[#allocation12 + $0x400] ss:$16 sps:$4 sm:$0xff]  }
 0x48a   :  { %v3290_v57 = vsel %vm1135_vm13, %v3278_v11, %v3289_v47  ;;  %v6803_v12 = vld [vmem:[#allocation12 + $0x404] ss:$16 sps:$4 sm:$0xff]   ;;  %v6804_v3 = vld [vmem:[#allocation12 + $0x600] ss:$16 sps:$4 sm:$0xff]  }
 0x48b   :  { %v3306_v36 = vrot.slane %v3290_v57, %v3298_v23  ;;  %v6806_v32 = vld [vmem:[#allocation12 + $0x604] ss:$16 sps:$4 sm:$0xff]   ;;  %v6810_v18 = vld [vmem:[#allocation12 + $0x7e0] ss:$16 sps:$4 sm:$0xff]  }
 0x48c   :  { %v6809_v11 = vld [vmem:[#allocation12 + $0x5e4] ss:$16 sps:$4 sm:$0xff]   ;;  %v6813_v57 = vld [vmem:[#allocation12 + $0x5c0] ss:$16 sps:$4 sm:$0xff]  }
 0x48d   :  { %v3309_v16 = vcombine.low %v3299_v1, %v3306_v36  ;;  %v3310_v35 = vcombine.high %v3299_v1, %v3306_v36  ;;  %v6812_v23 = vld [vmem:[#allocation12 + $0x7e4] ss:$16 sps:$4 sm:$0xff]   ;;  %v6816_v36 = vld [vmem:[#allocation12 + $0x7c0] ss:$16 sps:$4 sm:$0xff]  }
 0x48e   :  { %v6815_v59 = vld [vmem:[#allocation12 + $0x5c4] ss:$16 sps:$4 sm:$0xff]  }
 0x48f   :  { %v3317_v19 = vrot.slane %v3309_v16, %v3316_v51  ;;  %v3324_v31 = vrot.slane %v3310_v35, %v3316_v51  ;;  %v6818_v47 = vld [vmem:[#allocation12 + $0x7c4] ss:$16 sps:$4 sm:$0xff]   ;;  %v6819_v16 = vld [vmem:[#allocation12 + $0x5a0] ss:$16 sps:$4 sm:$0xff]  }
 0x490   :  { %v6821_v1 = vld [vmem:[#allocation12 + $0x5a4] ss:$16 sps:$4 sm:$0xff]  }
 0x491   :  { %v3325_v29 = vcombine.high %v3317_v19, %v3317_v19  ;;  %v3333_v8 = vrot.slane %v3317_v19, %v3316_v51  ;;  %v3326_v5 = vcombine.high %v3324_v31, %v3324_v31  ;;  %v8153_v4 = vrot.slane %v3324_v31, %v3316_v51  ;;  %v6827_v35 = vld [vmem:[#allocation12 + $0x584] ss:$16 sps:$4 sm:$0xff]   ;;  %v6822_v19 = vld [vmem:[#allocation12 + $0x7a0] ss:$16 sps:$4 sm:$0xff]  }
 0x492   :  { %v6830_v31 = vld [vmem:[#allocation12 + $0x784] ss:$16 sps:$4 sm:$0xff]  }
 0x493   :  { %v3347_v50 = vrot.slane %v3325_v29, %v3316_v51  ;;  %v3354_v55 = vrot.slane %v3326_v5, %v3316_v51  ;;  %v3355_v45 = vcombine.high %v3333_v8, %v3333_v8  ;;  %v8157_v38 = vpack.c.bf16 %v3333_v8, %v3333_v8  ;;  %v6824_v51 = vld [vmem:[#allocation12 + $0x7a4] ss:$16 sps:$4 sm:$0xff]   ;;  %v6825_v29 = vld [vmem:[#allocation12 + $0x580] ss:$16 sps:$4 sm:$0xff]  }
 0x494   :  { %v6833_v8 = vld [vmem:[#allocation12 + $0x564] ss:$16 sps:$4 sm:$0xff]   ;;  %v6828_v5 = vld [vmem:[#allocation12 + $0x780] ss:$16 sps:$4 sm:$0xff]  }
 0x495   :  { %v8155_v44 = vpack.c.bf16 %v3347_v50, %v3347_v50  ;;  %v3357_v52 = vcombine.high %v3347_v50, %v3347_v50  ;;  %v3358_v25 = vcombine.high %v3354_v55, %v3354_v55  ;;  %v8163_v46 = vpack.c.bf16 %v3354_v55, %v3354_v55  ;;  %v6836_v50 = vld [vmem:[#allocation12 + $0x764] ss:$16 sps:$4 sm:$0xff]   ;;  %v6831_v55 = vld [vmem:[#allocation12 + $0x560] ss:$16 sps:$4 sm:$0xff]  }
 0x496   :  { %v8165_v2 = vpack.c.bf16 %v3355_v45, %v3355_v45  ;;  %v6839_v45 = vld [vmem:[#allocation12 + $0x544] ss:$16 sps:$4 sm:$0xff]  }
 0x497   :  { %4965 = vmatprep.mubr.bf16.mxu0 %v8155_v44  ;;  %v8160_v42 = vpack.c.bf16 %v3357_v52, %v3357_v52  ;;  %v8170_v40 = vpack.c.bf16 %v3358_v25, %v3358_v25  ;;  %v6842_v52 = vld [vmem:[#allocation12 + $0x744] ss:$16 sps:$4 sm:$0xff]   ;;  %v6837_v25 = vld [vmem:[#allocation12 + $0x540] ss:$16 sps:$4 sm:$0xff]  }
 0x498   :  { %4966 = vmatmul.mubr.bf16.vlgmr.msra.gmra.mxu0 %v8157_v38 }
 0x499   :  { %5016 = vmatpush1.bf16.msra.mxu0 %v6759_v37  ;;  %5006 = vmatprep.mubr.bf16.mxu1 %v8160_v42  ;;  %v6834_v37 = vld [vmem:[#allocation12 + $0x760] ss:$16 sps:$4 sm:$0xff]  }
 0x49a   :  { %5047 = vmatprep.mubr.bf16.mxu0 %v8163_v46  ;;  %5007 = vmatmul.mubr.bf16.vlgmr.msra.gmra.mxu1 %v8165_v2 }
 0x49b   :  { %5057 = vmatpush1.bf16.msra.mxu1 %v6762_v58  ;;  %5017 = vmatprep.subr.bf16.mxu0 %v6767_v49  ;;  %v6845_v58 = vld [vmem:[#allocation12 + $0x524] ss:$16 sps:$4 sm:$0xff]   ;;  %v6840_v49 = vld [vmem:[#allocation12 + $0x740] ss:$16 sps:$4 sm:$0xff]  }
 0x49c   :  { %5088 = vmatprep.mubr.bf16.mxu1 %v8170_v40  ;;  %5058 = vmatprep.subr.bf16.mxu1 %v6770_v0  ;;  %v6848_v0 = vld [vmem:[#allocation12 + $0x724] ss:$16 sps:$4 sm:$0xff]  }
 0x49d   :  { %5018 = vmatpush1.bf16.msra.mxu0 %v6765_v28  ;;  %v6843_v28 = vld [vmem:[#allocation12 + $0x520] ss:$16 sps:$4 sm:$0xff]  }
 0x49e   :  { %5019 = vmatprep.subr.bf16.mxu0 %v6773_v56  ;;  %v6851_v56 = vld [vmem:[#allocation12 + $0x504] ss:$16 sps:$4 sm:$0xff]  }
 0x49f   :  { %5059 = vmatpush1.bf16.msra.mxu1 %v6768_v6  ;;  %v6846_v6 = vld [vmem:[#allocation12 + $0x720] ss:$16 sps:$4 sm:$0xff]  }
 0x4a0   :  { %5060 = vmatprep.subr.bf16.mxu1 %v6776_v33  ;;  %v6854_v33 = vld [vmem:[#allocation12 + $0x704] ss:$16 sps:$4 sm:$0xff]  }
 0x4a1   :  { %5020 = vmatpush1.bf16.msra.mxu0 %v6771_v17  ;;  %v6849_v17 = vld [vmem:[#allocation12 + $0x500] ss:$16 sps:$4 sm:$0xff]  }
 0x4a2   :  { %5021 = vmatprep.subr.bf16.mxu0 %v6779_v14  ;;  %v6857_v14 = vld [vmem:[#allocation12 + $0xec] ss:$16 sps:$4 sm:$0xff]  }
 0x4a3   :  { %5061 = vmatpush1.bf16.msra.mxu1 %v6774_v30  ;;  %v6852_v30 = vld [vmem:[#allocation12 + $0x700] ss:$16 sps:$4 sm:$0xff]  }
 0x4a4   :  { %5062 = vmatprep.subr.bf16.mxu1 %v6782_v53  ;;  %v3356_v53 = vcombine.high %v8153_v4, %v8153_v4 }
 0x4a5   :  { %5022 = vmatpush1.bf16.msra.mxu0 %v6777_v21  ;;  %v6860_v21 = vld [vmem:[#allocation12 + $0x2ec] ss:$16 sps:$4 sm:$0xff]  }
 0x4a6   :  { %5023 = vmatprep.subr.bf16.mxu0 %v6785_v10  ;;  %v6855_v10 = vld [vmem:[#allocation12 + $0xe8] ss:$16 sps:$4 sm:$0xff]  }
 0x4a7   :  { %5063 = vmatpush1.bf16.msra.mxu1 %v6780_v22  ;;  %v8177_v22 = vpack.c.bf16 %v8153_v4, %v8153_v4  ;;  %v6864_v4 = vld [vmem:[#allocation12 + $0x2c8] ss:$16 sps:$4 sm:$0xff]  }
 0x4a8   :  { %5064 = vmatprep.subr.bf16.mxu1 %v6788_v41  ;;  %v6863_v41 = vld [vmem:[#allocation12 + $0xcc] ss:$16 sps:$4 sm:$0xff]  }
 0x4a9   :  { %5024 = vmatpush1.bf16.msra.mxu0 %v6783_v27  ;;  %v6858_v27 = vld [vmem:[#allocation12 + $0x2e8] ss:$16 sps:$4 sm:$0xff]  }
 0x4aa   :  { %5025 = vmatprep.subr.bf16.mxu0 %v6791_v34  ;;  %v8180_v34 = vpack.c.bf16 %v3356_v53, %v3356_v53  ;;  %v6938_v53 = vld [vmem:[#allocation12 + $0x34c] ss:$16 sps:$4 sm:$0xff]  }
 0x4ab   :  { %5065 = vmatpush1.bf16.msra.mxu1 %v6786_v13  ;;  %v6866_v13 = vld [vmem:[#allocation12 + $0x2cc] ss:$16 sps:$4 sm:$0xff]  }
 0x4ac   :  { %5066 = vmatprep.subr.bf16.mxu1 %v6794_v48  ;;  %v6861_v48 = vld [vmem:[#allocation12 + $0xc8] ss:$16 sps:$4 sm:$0xff]  }
 0x4ad   :  { %5026 = vmatpush1.bf16.msra.mxu0 %v6789_v54  ;;  %v6869_v54 = vld [vmem:[#allocation12 + $0xac] ss:$16 sps:$4 sm:$0xff]  }
 0x4ae   :  { %5027 = vmatprep.subr.bf16.mxu0 %v6797_v15  ;;  %v6872_v15 = vld [vmem:[#allocation12 + $0x2ac] ss:$16 sps:$4 sm:$0xff]  }
 0x4af   :  { %5067 = vmatpush1.bf16.msra.mxu1 %v6792_v20  ;;  %v6867_v20 = vld [vmem:[#allocation12 + $0xa8] ss:$16 sps:$4 sm:$0xff]  }
 0x4b0   :  { %5068 = vmatprep.subr.bf16.mxu1 %v6800_v62  ;;  %v6875_v62 = vld [vmem:[#allocation12 + $0x8c] ss:$16 sps:$4 sm:$0xff]  }
 0x4b1   :  { %5028 = vmatpush1.bf16.msra.mxu0 %v6795_v7  ;;  %v6870_v7 = vld [vmem:[#allocation12 + $0x2a8] ss:$16 sps:$4 sm:$0xff]  }
 0x4b2   :  { %5029 = vmatprep.subr.bf16.mxu0 %v6803_v12  ;;  %v6878_v12 = vld [vmem:[#allocation12 + $0x28c] ss:$16 sps:$4 sm:$0xff]  }
 0x4b3   :  { %5069 = vmatpush1.bf16.msra.mxu1 %v6798_v24  ;;  %v6881_v24 = vld [vmem:[#allocation12 + $0x6c] ss:$16 sps:$4 sm:$0xff]  }
 0x4b4   :  { %5070 = vmatprep.subr.bf16.mxu1 %v6806_v32  ;;  %v6876_v32 = vld [vmem:[#allocation12 + $0x288] ss:$16 sps:$4 sm:$0xff]  }
 0x4b5   :  { %5030 = vmatpush1.bf16.msra.mxu0 %v6801_v39  ;;  %v6884_v39 = vld [vmem:[#allocation12 + $0x26c] ss:$16 sps:$4 sm:$0xff]  }
 0x4b6   :  { %5031 = vmatprep.subr.bf16.mxu0 %v6809_v11  ;;  %v6887_v11 = vld [vmem:[#allocation12 + $0x4c] ss:$16 sps:$4 sm:$0xff]  }
 0x4b7   :  { %5071 = vmatpush1.bf16.msra.mxu1 %v6804_v3  ;;  %v6882_v3 = vld [vmem:[#allocation12 + $0x268] ss:$16 sps:$4 sm:$0xff]  }
 0x4b8   :  { %5072 = vmatprep.subr.bf16.mxu1 %v6812_v23  ;;  %v6890_v23 = vld [vmem:[#allocation12 + $0x24c] ss:$16 sps:$4 sm:$0xff]  }
 0x4b9   :  { %5032 = vmatpush2.bf16.msra.mxu0 %v6807_v26  ;;  %v6885_v26 = vld [vmem:[#allocation12 + $0x48] ss:$16 sps:$4 sm:$0xff]  }
 0x4ba   :  { %5033 = vmatprep.subr.bf16.mxu0 %v6815_v59  ;;  %v6893_v59 = vld [vmem:[#allocation12 + $0x2c] ss:$16 sps:$4 sm:$0xff]  }
 0x4bb   :  { %5073 = vmatpush2.bf16.msra.mxu1 %v6810_v18  ;;  %v6888_v18 = vld [vmem:[#allocation12 + $0x248] ss:$16 sps:$4 sm:$0xff]  }
 0x4bc   :  { %5074 = vmatprep.subr.bf16.mxu1 %v6818_v47  ;;  %v6896_v47 = vld [vmem:[#allocation12 + $0x22c] ss:$16 sps:$4 sm:$0xff]  }
 0x4bd   :  { %5034 = vmatpush2.bf16.msra.mxu0 %v6813_v57  ;;  %v6891_v57 = vld [vmem:[#allocation12 + $0x28] ss:$16 sps:$4 sm:$0xff]  }
 0x4be   :  { %5035 = vmatprep.subr.bf16.mxu0 %v6821_v1  ;;  %v6899_v1 = vld [vmem:[#allocation12 + $0xc] ss:$16 sps:$4 sm:$0xff]  }
 0x4bf   :  { %5075 = vmatpush2.bf16.msra.mxu1 %v6816_v36  ;;  %v6894_v36 = vld [vmem:[#allocation12 + $0x228] ss:$16 sps:$4 sm:$0xff]  }
 0x4c0   :  { %5076 = vmatprep.subr.bf16.mxu1 %v6824_v51  ;;  %v6902_v51 = vld [vmem:[#allocation12 + $0x20c] ss:$16 sps:$4 sm:$0xff]  }
 0x4c1   :  { %5036 = vmatpush2.bf16.msra.mxu0 %v6819_v16  ;;  %v6897_v16 = vld [vmem:[#allocation12 + $0x8] ss:$16 sps:$4 sm:$0xff]  }
 0x4c2   :  { %5037 = vmatprep.subr.bf16.mxu0 %v6827_v35  ;;  %v6905_v35 = vld [vmem:[#allocation12 + $0x1ec] ss:$16 sps:$4 sm:$0xff]  }
 0x4c3   :  { %5077 = vmatpush2.bf16.msra.mxu1 %v6822_v19  ;;  %v6900_v19 = vld [vmem:[#allocation12 + $0x208] ss:$16 sps:$4 sm:$0xff]  }
 0x4c4   :  { %5078 = vmatprep.subr.bf16.mxu1 %v6830_v31  ;;  %v6908_v31 = vld [vmem:[#allocation12 + $0x3ec] ss:$16 sps:$4 sm:$0xff]  }
 0x4c5   :  { %5038 = vmatpush2.bf16.msra.mxu0 %v6825_v29  ;;  %v6903_v29 = vld [vmem:[#allocation12 + $0x1e8] ss:$16 sps:$4 sm:$0xff]  }
 0x4c6   :  { %5039 = vmatprep.subr.bf16.mxu0 %v6833_v8  ;;  %v6911_v8 = vld [vmem:[#allocation12 + $0x1cc] ss:$16 sps:$4 sm:$0xff]  }
 0x4c7   :  { %5079 = vmatpush2.bf16.msra.mxu1 %v6828_v5  ;;  %v6906_v5 = vld [vmem:[#allocation12 + $0x3e8] ss:$16 sps:$4 sm:$0xff]  }
 0x4c8   :  { %5080 = vmatprep.subr.bf16.mxu1 %v6836_v50  ;;  %v6914_v50 = vld [vmem:[#allocation12 + $0x3cc] ss:$16 sps:$4 sm:$0xff]  }
 0x4c9   :  { %5040 = vmatpush2.bf16.msra.mxu0 %v6831_v55  ;;  %v6909_v55 = vld [vmem:[#allocation12 + $0x1c8] ss:$16 sps:$4 sm:$0xff]  }
 0x4ca   :  { %5041 = vmatprep.subr.bf16.mxu0 %v6839_v45  ;;  %v6917_v45 = vld [vmem:[#allocation12 + $0x1ac] ss:$16 sps:$4 sm:$0xff]  }
 0x4cb   :  { %5081 = vmatpush2.bf16.msra.mxu1 %v6834_v37  ;;  %v6912_v37 = vld [vmem:[#allocation12 + $0x3c8] ss:$16 sps:$4 sm:$0xff]  }
 0x4cc   :  { %5082 = vmatprep.subr.bf16.mxu1 %v6842_v52  ;;  %v6920_v52 = vld [vmem:[#allocation12 + $0x3ac] ss:$16 sps:$4 sm:$0xff]  }
 0x4cd   :  { %5042 = vmatpush2.bf16.msra.mxu0 %v6837_v25  ;;  %v6915_v25 = vld [vmem:[#allocation12 + $0x1a8] ss:$16 sps:$4 sm:$0xff]  }
 0x4ce   :  { %5043 = vmatprep.subr.bf16.mxu0 %v6845_v58  ;;  %v6923_v58 = vld [vmem:[#allocation12 + $0x18c] ss:$16 sps:$4 sm:$0xff]  }
 0x4cf   :  { %5083 = vmatpush2.bf16.msra.mxu1 %v6840_v49  ;;  %v6918_v49 = vld [vmem:[#allocation12 + $0x3a8] ss:$16 sps:$4 sm:$0xff]  }
 0x4d0   :  { %5084 = vmatprep.subr.bf16.mxu1 %v6848_v0  ;;  %v6926_v0 = vld [vmem:[#allocation12 + $0x38c] ss:$16 sps:$4 sm:$0xff]  }
 0x4d1   :  { %5044 = vmatpush2.bf16.msra.mxu0 %v6843_v28  ;;  %v6921_v28 = vld [vmem:[#allocation12 + $0x188] ss:$16 sps:$4 sm:$0xff]  }
 0x4d2   :  { %5045 = vmatprep.subr.bf16.mxu0 %v6851_v56  ;;  %v6929_v56 = vld [vmem:[#allocation12 + $0x16c] ss:$16 sps:$4 sm:$0xff]  }
 0x4d3   :  { %5085 = vmatpush2.bf16.msra.mxu1 %v6846_v6  ;;  %v6924_v6 = vld [vmem:[#allocation12 + $0x388] ss:$16 sps:$4 sm:$0xff]  }
 0x4d4   :  { %5086 = vmatprep.subr.bf16.mxu1 %v6854_v33  ;;  %v6932_v33 = vld [vmem:[#allocation12 + $0x36c] ss:$16 sps:$4 sm:$0xff]  }
 0x4d5   :  { %5046 = vmatpush2.bf16.msra.mxu0 %v6849_v17  ;;  %v6927_v17 = vld [vmem:[#allocation12 + $0x168] ss:$16 sps:$4 sm:$0xff]  }
 0x4d6   :  { %5097 = vmatprep.subr.bf16.mxu0 %v6857_v14  ;;  %v6935_v14 = vld [vmem:[#allocation12 + $0x14c] ss:$16 sps:$4 sm:$0xff]  }
 0x4d7   :  { %5087 = vmatpush2.bf16.msra.mxu1 %v6852_v30  ;;  %v6930_v30 = vld [vmem:[#allocation12 + $0x368] ss:$16 sps:$4 sm:$0xff]  }
 0x4d8   :  { %5048 = vmatmul.mubr.bf16.vlgmr.msra.gmra.mxu0 %v8177_v22  ;;  %5138 = vmatprep.subr.bf16.mxu1 %v6860_v21  ;;  %v6933_v21 = vld [vmem:[#allocation12 + $0x148] ss:$16 sps:$4 sm:$0xff]  }
 0x4d9   :  { %5098 = vmatpush1.bf16.msra.mxu0 %v6855_v10  ;;  %5129 = vmatprep.mubr.bf16.mxu0 %v8155_v44  ;;  %v6873_v44 = vld [vmem:[#allocation12 + $0x88] ss:$16 sps:$4 sm:$0xff]   ;;  %v6941_v10 = vld [vmem:[#allocation12 + $0x12c] ss:$16 sps:$4 sm:$0xff]  }
 0x4da   :  { %5089 = vmatmul.mubr.bf16.vlgmr.msra.gmra.mxu1 %v8180_v34  ;;  %5099 = vmatprep.subr.bf16.mxu0 %v6863_v41  ;;  %v6936_v41 = vld [vmem:[#allocation12 + $0x348] ss:$16 sps:$4 sm:$0xff]  }
 0x4db   :  { %5139 = vmatpush1.bf16.msra.mxu1 %v6858_v27  ;;  %5170 = vmatprep.mubr.bf16.mxu1 %v8160_v42  ;;  %v6879_v42 = vld [vmem:[#allocation12 + $0x68] ss:$16 sps:$4 sm:$0xff]   ;;  %v6944_v27 = vld [vmem:[#allocation12 + $0x32c] ss:$16 sps:$4 sm:$0xff]  }
 0x4dc   :  { %5140 = vmatprep.subr.bf16.mxu1 %v6866_v13  ;;  %v6939_v13 = vld [vmem:[#allocation12 + $0x128] ss:$16 sps:$4 sm:$0xff]  }
 0x4dd   :  { %5100 = vmatpush1.bf16.msra.mxu0 %v6861_v48  ;;  %v6947_v48 = vld [vmem:[#allocation12 + $0x10c] ss:$16 sps:$4 sm:$0xff]  }
 0x4de   :  { %5101 = vmatprep.subr.bf16.mxu0 %v6869_v54  ;;  %v6942_v54 = vld [vmem:[#allocation12 + $0x328] ss:$16 sps:$4 sm:$0xff]  }
 0x4df   :  { %5141 = vmatpush1.bf16.msra.mxu1 %v6864_v4  ;;  %v6950_v4 = vld [vmem:[#allocation12 + $0x30c] ss:$16 sps:$4 sm:$0xff]  }
 0x4e0   :  { %5142 = vmatprep.subr.bf16.mxu1 %v6872_v15  ;;  %v6945_v15 = vld [vmem:[#allocation12 + $0x108] ss:$16 sps:$4 sm:$0xff]  }
 0x4e1   :  { %5102 = vmatpush1.bf16.msra.mxu0 %v6867_v20  ;;  %v6953_v20 = vld [vmem:[#allocation12 + $0x4ec] ss:$16 sps:$4 sm:$0xff]  }
 0x4e2   :  { %5103 = vmatprep.subr.bf16.mxu0 %v6875_v62  ;;  %v6948_v62 = vld [vmem:[#allocation12 + $0x308] ss:$16 sps:$4 sm:$0xff]  }
 0x4e3   :  { %5143 = vmatpush1.bf16.msra.mxu1 %v6870_v7  ;;  %v6956_v7 = vld [vmem:[#allocation12 + $0x6ec] ss:$16 sps:$4 sm:$0xff]  }
 0x4e4   :  { %5144 = vmatprep.subr.bf16.mxu1 %v6878_v12  ;;  %v6951_v12 = vld [vmem:[#allocation12 + $0x4e8] ss:$16 sps:$4 sm:$0xff]  }
 0x4e5   :  { %5104 = vmatpush1.bf16.msra.mxu0 %v6873_v44  ;;  %v6959_v44 = vld [vmem:[#allocation12 + $0x4cc] ss:$16 sps:$4 sm:$0xff]  }
 0x4e6   :  { %5105 = vmatprep.subr.bf16.mxu0 %v6881_v24  ;;  %v6954_v24 = vld [vmem:[#allocation12 + $0x6e8] ss:$16 sps:$4 sm:$0xff]  }
 0x4e7   :  { %5145 = vmatpush1.bf16.msra.mxu1 %v6876_v32  ;;  %v6962_v32 = vld [vmem:[#allocation12 + $0x6cc] ss:$16 sps:$4 sm:$0xff]  }
 0x4e8   :  { %5146 = vmatprep.subr.bf16.mxu1 %v6884_v39  ;;  %v6957_v39 = vld [vmem:[#allocation12 + $0x4c8] ss:$16 sps:$4 sm:$0xff]  }
 0x4e9   :  { %5106 = vmatpush1.bf16.msra.mxu0 %v6879_v42  ;;  %v6965_v42 = vld [vmem:[#allocation12 + $0x4ac] ss:$16 sps:$4 sm:$0xff]  }
 0x4ea   :  { %5107 = vmatprep.subr.bf16.mxu0 %v6887_v11  ;;  %v6960_v11 = vld [vmem:[#allocation12 + $0x6c8] ss:$16 sps:$4 sm:$0xff]  }
 0x4eb   :  { %5147 = vmatpush1.bf16.msra.mxu1 %v6882_v3  ;;  %v6968_v3 = vld [vmem:[#allocation12 + $0x6ac] ss:$16 sps:$4 sm:$0xff]  }
 0x4ec   :  { %5148 = vmatprep.subr.bf16.mxu1 %v6890_v23  ;;  %v6963_v23 = vld [vmem:[#allocation12 + $0x4a8] ss:$16 sps:$4 sm:$0xff]  }
 0x4ed   :  { %5108 = vmatpush1.bf16.msra.mxu0 %v6885_v26  ;;  %v6966_v26 = vld [vmem:[#allocation12 + $0x6a8] ss:$16 sps:$4 sm:$0xff]  }
 0x4ee   :  { %5109 = vmatprep.subr.bf16.mxu0 %v6893_v59  ;;  %v6974_v59 = vld [vmem:[#allocation12 + $0x68c] ss:$16 sps:$4 sm:$0xff]  }
 0x4ef   :  { %5149 = vmatpush1.bf16.msra.mxu1 %v6888_v18  ;;  %v6972_v18 = vld [vmem:[#allocation12 + $0x688] ss:$16 sps:$4 sm:$0xff]  }
 0x4f0   :  { %5150 = vmatprep.subr.bf16.mxu1 %v6896_v47  ;;  %v6980_v47 = vld [vmem:[#allocation12 + $0x66c] ss:$16 sps:$4 sm:$0xff]  }
 0x4f1   :  { %5110 = vmatpush1.bf16.msra.mxu0 %v6891_v57  ;;  %v6983_v57 = vld [vmem:[#allocation12 + $0x44c] ss:$16 sps:$4 sm:$0xff]  }
 0x4f2   :  { %5111 = vmatprep.subr.bf16.mxu0 %v6899_v1  ;;  %v6978_v1 = vld [vmem:[#allocation12 + $0x668] ss:$16 sps:$4 sm:$0xff]  }
 0x4f3   :  { %5151 = vmatpush1.bf16.msra.mxu1 %v6894_v36  ;;  %v6986_v36 = vld [vmem:[#allocation12 + $0x64c] ss:$16 sps:$4 sm:$0xff]  }
 0x4f4   :  { %5152 = vmatprep.subr.bf16.mxu1 %v6902_v51  ;;  %v6981_v51 = vld [vmem:[#allocation12 + $0x448] ss:$16 sps:$4 sm:$0xff]  }
 0x4f5   :  { %5112 = vmatpush1.bf16.msra.mxu0 %v6897_v16  ;;  %v6989_v16 = vld [vmem:[#allocation12 + $0x42c] ss:$16 sps:$4 sm:$0xff]  }
 0x4f6   :  { %5113 = vmatprep.subr.bf16.mxu0 %v6905_v35  ;;  %v6984_v35 = vld [vmem:[#allocation12 + $0x648] ss:$16 sps:$4 sm:$0xff]  }
 0x4f7   :  { %5153 = vmatpush1.bf16.msra.mxu1 %v6900_v19  ;;  %v6992_v19 = vld [vmem:[#allocation12 + $0x62c] ss:$16 sps:$4 sm:$0xff]  }
 0x4f8   :  { %5154 = vmatprep.subr.bf16.mxu1 %v6908_v31  ;;  %v6987_v31 = vld [vmem:[#allocation12 + $0x428] ss:$16 sps:$4 sm:$0xff]  }
 0x4f9   :  { %5114 = vmatpush2.bf16.msra.mxu0 %v6903_v29  ;;  %v6995_v29 = vld [vmem:[#allocation12 + $0x40c] ss:$16 sps:$4 sm:$0xff]  }
 0x4fa   :  { %5115 = vmatprep.subr.bf16.mxu0 %v6911_v8  ;;  %v6990_v8 = vld [vmem:[#allocation12 + $0x628] ss:$16 sps:$4 sm:$0xff]  }
 0x4fb   :  { %5155 = vmatpush2.bf16.msra.mxu1 %v6906_v5  ;;  %v6998_v5 = vld [vmem:[#allocation12 + $0x60c] ss:$16 sps:$4 sm:$0xff]  }
 0x4fc   :  { %5156 = vmatprep.subr.bf16.mxu1 %v6914_v50  ;;  %v6993_v50 = vld [vmem:[#allocation12 + $0x408] ss:$16 sps:$4 sm:$0xff]  }
 0x4fd   :  { %5116 = vmatpush2.bf16.msra.mxu0 %v6909_v55  ;;  %v7001_v55 = vld [vmem:[#allocation12 + $0x5ec] ss:$16 sps:$4 sm:$0xff]  }
 0x4fe   :  { %5117 = vmatprep.subr.bf16.mxu0 %v6917_v45  ;;  %v6996_v45 = vld [vmem:[#allocation12 + $0x608] ss:$16 sps:$4 sm:$0xff]  }
 0x4ff   :  { %5157 = vmatpush2.bf16.msra.mxu1 %v6912_v37  ;;  %v7004_v37 = vld [vmem:[#allocation12 + $0x7ec] ss:$16 sps:$4 sm:$0xff]  }
 0x500   :  { %5158 = vmatprep.subr.bf16.mxu1 %v6920_v52  ;;  %v6999_v52 = vld [vmem:[#allocation12 + $0x5e8] ss:$16 sps:$4 sm:$0xff]  }
 0x501   :  { %5118 = vmatpush2.bf16.msra.mxu0 %v6915_v25  ;;  %v7007_v25 = vld [vmem:[#allocation12 + $0x5cc] ss:$16 sps:$4 sm:$0xff]  }
 0x502   :  { %5119 = vmatprep.subr.bf16.mxu0 %v6923_v58  ;;  %v7002_v58 = vld [vmem:[#allocation12 + $0x7e8] ss:$16 sps:$4 sm:$0xff]  }
 0x503   :  { %5159 = vmatpush2.bf16.msra.mxu1 %v6918_v49  ;;  %v7010_v49 = vld [vmem:[#allocation12 + $0x7cc] ss:$16 sps:$4 sm:$0xff]  }
 0x504   :  { %5160 = vmatprep.subr.bf16.mxu1 %v6926_v0  ;;  %v7005_v0 = vld [vmem:[#allocation12 + $0x5c8] ss:$16 sps:$4 sm:$0xff]  }
 0x505   :  { %5120 = vmatpush2.bf16.msra.mxu0 %v6921_v28  ;;  %v7013_v28 = vld [vmem:[#allocation12 + $0x5ac] ss:$16 sps:$4 sm:$0xff]  }
 0x506   :  { %5121 = vmatprep.subr.bf16.mxu0 %v6929_v56  ;;  %v7008_v56 = vld [vmem:[#allocation12 + $0x7c8] ss:$16 sps:$4 sm:$0xff]  }
 0x507   :  { %5161 = vmatpush2.bf16.msra.mxu1 %v6924_v6  ;;  %v7016_v6 = vld [vmem:[#allocation12 + $0x7ac] ss:$16 sps:$4 sm:$0xff]  }
 0x508   :  { %5162 = vmatprep.subr.bf16.mxu1 %v6932_v33  ;;  %v7011_v33 = vld [vmem:[#allocation12 + $0x5a8] ss:$16 sps:$4 sm:$0xff]  }
 0x509   :  { %5122 = vmatpush2.bf16.msra.mxu0 %v6927_v17  ;;  %v7019_v17 = vld [vmem:[#allocation12 + $0x58c] ss:$16 sps:$4 sm:$0xff]  }
 0x50a   :  { %5123 = vmatprep.subr.bf16.mxu0 %v6935_v14  ;;  %v7014_v14 = vld [vmem:[#allocation12 + $0x7a8] ss:$16 sps:$4 sm:$0xff]  }
 0x50b   :  { %5163 = vmatpush2.bf16.msra.mxu1 %v6930_v30  ;;  %v7022_v30 = vld [vmem:[#allocation12 + $0x78c] ss:$16 sps:$4 sm:$0xff]  }
 0x50c   :  { %5164 = vmatprep.subr.bf16.mxu1 %v6938_v53  ;;  %v7017_v53 = vld [vmem:[#allocation12 + $0x588] ss:$16 sps:$4 sm:$0xff]  }
 0x50d   :  { %5124 = vmatpush2.bf16.msra.mxu0 %v6933_v21  ;;  %v7025_v21 = vld [vmem:[#allocation12 + $0x56c] ss:$16 sps:$4 sm:$0xff]  }
 0x50e   :  { %5125 = vmatprep.subr.bf16.mxu0 %v6941_v10  ;;  %v7020_v10 = vld [vmem:[#allocation12 + $0x788] ss:$16 sps:$4 sm:$0xff]  }
 0x50f   :  { %5165 = vmatpush2.bf16.msra.mxu1 %v6936_v41  ;;  %v7028_v41 = vld [vmem:[#allocation12 + $0x76c] ss:$16 sps:$4 sm:$0xff]  }
 0x510   :  { %5166 = vmatprep.subr.bf16.mxu1 %v6944_v27  ;;  %v7023_v27 = vld [vmem:[#allocation12 + $0x568] ss:$16 sps:$4 sm:$0xff]  }
 0x511   :  { %5126 = vmatpush2.bf16.msra.mxu0 %v6939_v13  ;;  %v7031_v13 = vld [vmem:[#allocation12 + $0x54c] ss:$16 sps:$4 sm:$0xff]  }
 0x512   :  { %5127 = vmatprep.subr.bf16.mxu0 %v6947_v48  ;;  %v7026_v48 = vld [vmem:[#allocation12 + $0x768] ss:$16 sps:$4 sm:$0xff]  }
 0x513   :  { %5167 = vmatpush2.bf16.msra.mxu1 %v6942_v54  ;;  %v7034_v54 = vld [vmem:[#allocation12 + $0x74c] ss:$16 sps:$4 sm:$0xff]  }
 0x514   :  { %5168 = vmatprep.subr.bf16.mxu1 %v6950_v4  ;;  %v7029_v4 = vld [vmem:[#allocation12 + $0x548] ss:$16 sps:$4 sm:$0xff]  }
 0x515   :  { %5128 = vmatpush2.bf16.msra.mxu0 %v6945_v15  ;;  %v7037_v15 = vld [vmem:[#allocation12 + $0x52c] ss:$16 sps:$4 sm:$0xff]  }
 0x516   :  { %5179 = vmatprep.subr.bf16.mxu0 %v6953_v20  ;;  %v7032_v20 = vld [vmem:[#allocation12 + $0x748] ss:$16 sps:$4 sm:$0xff]  }
 0x517   :  { %5169 = vmatpush2.bf16.msra.mxu1 %v6948_v62  ;;  %v7040_v62 = vld [vmem:[#allocation12 + $0x72c] ss:$16 sps:$4 sm:$0xff]  }
 0x518   :  { %5130 = vmatmul.mubr.bf16.vlgmr.msra.gmra.mxu0 %v8157_v38  ;;  %5220 = vmatprep.subr.bf16.mxu1 %v6956_v7  ;;  %v6971_v38 = vld [vmem:[#allocation12 + $0x48c] ss:$16 sps:$4 sm:$0xff]   ;;  %v7035_v7 = vld [vmem:[#allocation12 + $0x528] ss:$16 sps:$4 sm:$0xff]  }
 0x519   :  { %5180 = vmatpush1.bf16.msra.mxu0 %v6951_v12  ;;  %5211 = vmatprep.mubr.bf16.mxu0 %v8163_v46  ;;  %v6969_v46 = vld [vmem:[#allocation12 + $0x488] ss:$16 sps:$4 sm:$0xff]   ;;  %v7043_v12 = vld [vmem:[#allocation12 + $0x50c] ss:$16 sps:$4 sm:$0xff]  }
 0x51a   :  { %5171 = vmatmul.mubr.bf16.vlgmr.msra.gmra.mxu1 %v8165_v2  ;;  %5181 = vmatprep.subr.bf16.mxu0 %v6959_v44  ;;  %v6977_v2 = vld [vmem:[#allocation12 + $0x46c] ss:$16 sps:$4 sm:$0xff]   ;;  %v7038_v44 = vld [vmem:[#allocation12 + $0x728] ss:$16 sps:$4 sm:$0xff]  }
 0x51b   :  { %5221 = vmatpush1.bf16.msra.mxu1 %v6954_v24  ;;  %5252 = vmatprep.mubr.bf16.mxu1 %v8170_v40  ;;  %v6975_v40 = vld [vmem:[#allocation12 + $0x468] ss:$16 sps:$4 sm:$0xff]   ;;  %v7046_v24 = vld [vmem:[#allocation12 + $0x70c] ss:$16 sps:$4 sm:$0xff]  }
 0x51c   :  { %5222 = vmatprep.subr.bf16.mxu1 %v6962_v32  ;;  %v7041_v32 = vld [vmem:[#allocation12 + $0x508] ss:$16 sps:$4 sm:$0xff]  }
 0x51d   :  { %5182 = vmatpush1.bf16.msra.mxu0 %v6957_v39  ;;  %v7047_v39 = vld [vmem:[#allocation15 + $0x78] sm:$0xff]  }
 0x51e   :  { %5183 = vmatprep.subr.bf16.mxu0 %v6965_v42  ;;  %v7044_v42 = vld [vmem:[#allocation12 + $0x708] ss:$16 sps:$4 sm:$0xff]  }
 0x51f   :  { %5223 = vmatpush1.bf16.msra.mxu1 %v6960_v11  ;;  %v7048_v11 = vld [vmem:[#allocation15 + $0x38] sm:$0xff]  }
 0x520   :  { %5224 = vmatprep.subr.bf16.mxu1 %v6968_v3  ;;  %v7049_v3 = vld [vmem:[#allocation15 + $0x70] sm:$0xff]  }
 0x521   :  { %5184 = vmatpush1.bf16.msra.mxu0 %v6963_v23 }
 0x522   :  { %5185 = vmatprep.subr.bf16.mxu0 %v6971_v38  ;;  %v7050_v38 = vld [vmem:[#allocation15 + $0x30] sm:$0xff]  }
 0x523   :  { %5225 = vmatpush1.bf16.msra.mxu1 %v6966_v26 }
 0x524   :  { %5226 = vmatprep.subr.bf16.mxu1 %v6974_v59 }
 0x525   :  { %5186 = vmatpush1.bf16.msra.mxu0 %v6969_v46  ;;  %v7051_v46 = vld [vmem:[#allocation15 + $0x68] sm:$0xff]  }
 0x526   :  { %5187 = vmatprep.subr.bf16.mxu0 %v6977_v2 }
 0x527   :  { %5227 = vmatpush1.bf16.msra.mxu1 %v6972_v18 }
 0x528   :  { %5228 = vmatprep.subr.bf16.mxu1 %v6980_v47  ;;  %v7052_v47 = vld [vmem:[#allocation15 + $0x28] sm:$0xff]  }
 0x529   :  { %5188 = vmatpush1.bf16.msra.mxu0 %v6975_v40 }
 0x52a   :  { %5189 = vmatprep.subr.bf16.mxu0 %v6983_v57 }
 0x52b   :  { %5229 = vmatpush1.bf16.msra.mxu1 %v6978_v1  ;;  %v7053_v1 = vld [vmem:[#allocation15 + $0x60] sm:$0xff]  }
 0x52c   :  { %5230 = vmatprep.subr.bf16.mxu1 %v6986_v36 }
 0x52d   :  { %5190 = vmatpush1.bf16.msra.mxu0 %v6981_v51  ;;  %v7064_v51 = vld [vmem:[#allocation15 + $0xb8] sm:$0xff]  }
 0x52e   :  { %5191 = vmatprep.subr.bf16.mxu0 %v6989_v16  ;;  %v7065_v16 = vld [vmem:[#allocation15 + $0xf0] sm:$0xff]  }
 0x52f   :  { %5231 = vmatpush1.bf16.msra.mxu1 %v6984_v35  ;;  %v7054_v35 = vld [vmem:[#allocation15 + $0x20] sm:$0xff]  }
 0x530   :  { %5232 = vmatprep.subr.bf16.mxu1 %v6992_v19  ;;  %v7066_v19 = vld [vmem:[#allocation15 + $0xb0] sm:$0xff]  }
 0x531   :  { %5192 = vmatpush1.bf16.msra.mxu0 %v6987_v31  ;;  %v7067_v31 = vld [vmem:[#allocation15 + $0xe8] sm:$0xff]  }
 0x532   :  { %5193 = vmatprep.subr.bf16.mxu0 %v6995_v29  ;;  %v7056_v29 = vld [vmem:[#allocation15 + $0x18] sm:$0xff]  }
 0x533   :  { %5233 = vmatpush1.bf16.msra.mxu1 %v6990_v8  ;;  %v7057_v8 = vld [vmem:[#allocation15 + $0x50] sm:$0xff]  }
 0x534   :  { %5234 = vmatprep.subr.bf16.mxu1 %v6998_v5  ;;  %v7068_v5 = vld [vmem:[#allocation15 + $0xa8] sm:$0xff]  }
 0x535   :  { %5194 = vmatpush1.bf16.msra.mxu0 %v6993_v50  ;;  %v7069_v50 = vld [vmem:[#allocation15 + $0xe0] sm:$0xff]  }
 0x536   :  { %5195 = vmatprep.subr.bf16.mxu0 %v7001_v55  ;;  %v7058_v55 = vld [vmem:[#allocation15 + $0x10] sm:$0xff]  }
 0x537   :  { %5235 = vmatpush1.bf16.msra.mxu1 %v6996_v45  ;;  %v7059_v45 = vld [vmem:[#allocation15 + $0x48] sm:$0xff]  }
 0x538   :  { %5236 = vmatprep.subr.bf16.mxu1 %v7004_v37  ;;  %v7070_v37 = vld [vmem:[#allocation15 + $0xa0] sm:$0xff]  }
 0x539   :  { %5196 = vmatpush2.bf16.msra.mxu0 %v6999_v52  ;;  %v7071_v52 = vld [vmem:[#allocation15 + $0xd8] sm:$0xff]  }
 0x53a   :  { %5197 = vmatprep.subr.bf16.mxu0 %v7007_v25  ;;  %v7060_v25 = vld [vmem:[#allocation15 + $0x8] sm:$0xff]  }
 0x53b   :  { %5237 = vmatpush2.bf16.msra.mxu1 %v7002_v58  ;;  %v7061_v58 = vld [vmem:[#allocation15 + $0x40] sm:$0xff]  }
 0x53c   :  { %5238 = vmatprep.subr.bf16.mxu1 %v7010_v49  ;;  %v7072_v49 = vld [vmem:[#allocation15 + $0x98] sm:$0xff]  }
 0x53d   :  { %5198 = vmatpush2.bf16.msra.mxu0 %v7005_v0  ;;  %v7073_v0 = vld [vmem:[#allocation15 + $0xd0] sm:$0xff]  }
 0x53e   :  { %5199 = vmatprep.subr.bf16.mxu0 %v7013_v28  ;;  %v7062_v28 = vld [vmem:[#allocation15] sm:$0xff]  }
 0x53f   :  { %5239 = vmatpush2.bf16.msra.mxu1 %v7008_v56  ;;  %v7074_v56 = vld [vmem:[#allocation15 + $0x90] sm:$0xff]  }
 0x540   :  { %5240 = vmatprep.subr.bf16.mxu1 %v7016_v6  ;;  %v3631_v6 = vld [vmem:[#allocation13] sm:$0xf] }
 0x541   :  { %5200 = vmatpush2.bf16.msra.mxu0 %v7011_v33  ;;  %v3636_v33 = vrot.slane %v3631_v6, %v7528_v43 }
 0x542   :  { %5201 = vmatprep.subr.bf16.mxu0 %v7019_v17  ;;  %v3640_v17 = vrot.slane %v3631_v6, %v7480_v61  ;;  %v7077_v61 = vld [vmem:[#allocation15 + $0xc0] sm:$0xff]  }
 0x543   :  { %5241 = vmatpush2.bf16.msra.mxu1 %v7014_v14 }
 0x544   :  { %5242 = vmatprep.subr.bf16.mxu1 %v7022_v30 }
 0x545   :  { %5202 = vmatpush2.bf16.msra.mxu0 %v7017_v53 }
 0x546   :  { %5203 = vmatprep.subr.bf16.mxu0 %v7025_v21 }
 0x547   :  { %5243 = vmatpush2.bf16.msra.mxu1 %v7020_v10 }
 0x548   :  { %5244 = vmatprep.subr.bf16.mxu1 %v7028_v41 }
 0x549   :  { %5204 = vmatpush2.bf16.msra.mxu0 %v7023_v27 }
 0x54a   :  { %5205 = vmatprep.subr.bf16.mxu0 %v7031_v13 }
 0x54b   :  { %5245 = vmatpush2.bf16.msra.mxu1 %v7026_v48 }
 0x54c   :  { %5246 = vmatprep.subr.bf16.mxu1 %v7034_v54 }
 0x54d   :  { %5206 = vmatpush2.bf16.msra.mxu0 %v7029_v4 }
 0x54e   :  { %5207 = vmatprep.subr.bf16.mxu0 %v7037_v15 }
 0x54f   :  { %5247 = vmatpush2.bf16.msra.mxu1 %v7032_v20 }
 0x550   :  { %5248 = vmatprep.subr.bf16.mxu1 %v7040_v62  ;;  %v7075_v62 = vld [vmem:[#allocation15 + $0xc8] sm:$0xff]  }
 0x551   :  { %5208 = vmatpush2.bf16.msra.mxu0 %v7035_v7  ;;  %v7076_v7 = vld [vmem:[#allocation15 + $0x88] sm:$0xff]  }
 0x552   :  { %5209 = vmatprep.subr.bf16.mxu0 %v7043_v12 }
 0x553   :  { %5249 = vmatpush2.bf16.msra.mxu1 %v7038_v44 }
 0x554   :  { %5250 = vmatprep.subr.bf16.mxu1 %v7046_v24 }
 0x555   :  { %5210 = vmatpush2.bf16.msra.mxu0 %v7041_v32 }
 0x556   :  { %6249 = vmatprep.subr.bf16.mxu0 %v7047_v39  ;;  %v7078_v39 = vld [vmem:[#allocation15 + $0x80] sm:$0xff]  }
 0x557   :  { %5251 = vmatpush2.bf16.msra.mxu1 %v7044_v42 }
 0x558   :  { %5212 = vmatmul.mubr.bf16.vlgmr.msra.gmra.mxu0 %v8177_v22  ;;  %v8190_v23 = vpop.f32.mrf.mxu0  ;;  %v7063_v22 = vld [vmem:[#allocation15 + $0xf8] sm:$0xff]  }
 0x559   :  { %6250 = vmatpush3.bf16.msra.mxu0 %v7048_v11  ;;  %6271 = vmatprep.subr.bf16.mxu1 %v7063_v22  ;;  %v4968_v14 = vadd.f32 %v8190_v23, %v3636_v33 }
 0x55a   :  { %5253 = vmatmul.mubr.bf16.vlgmr.msra.gmra.mxu1 %v8180_v34  ;;  %v4969_v26 = vpop.f32.mrf.mxu0  ;;  %v5008_v59 = vpop.f32.mrf.mxu1  ;;  %6251 = vmatprep.subr.bf16.mxu0 %v7049_v3  ;;  %v7055_v34 = vld [vmem:[#allocation15 + $0x58] sm:$0xff]  }
 0x55b   :  { %6272 = vmatpush3.bf16.msra.mxu1 %v7064_v51  ;;  %v4970_v30 = vadd.f32 %v4969_v26, %v3640_v17  ;;  %v5009_v53 = vadd.f32 %v5008_v59, %v4968_v14 }
 0x55c   :  { %v4971_v2 = vpop.f32.mrf.mxu0  ;;  %v5010_v18 = vpop.f32.mrf.mxu1  ;;  %6273 = vmatprep.subr.bf16.mxu1 %v7065_v16 }
 0x55d   :  { %6252 = vmatpush3.bf16.msra.mxu0 %v7050_v38  ;;  %v5011_v10 = vadd.f32 %v5010_v18, %v4970_v30  ;;  %v3644_v2 = vrot.slane %v3631_v6, %v7485_v63  ;;  %v3648_v18 = vrot.slane %v3631_v6, %v1734_v9 }
 0x55e   :  { %v4972_v40 = vpop.f32.mrf.mxu0  ;;  %v5012_v57 = vpop.f32.mrf.mxu1  ;;  %6253 = vmatprep.subr.bf16.mxu0 %v7051_v46 }
 0x55f   :  { %6274 = vmatpush3.bf16.msra.mxu1 %v7066_v19 }
 0x560   :  { %v5013_v36 = vpop.f32.mrf.mxu1  ;;  %6275 = vmatprep.subr.bf16.mxu1 %v7067_v31 }
 0x561   :  { %6254 = vmatpush3.bf16.msra.mxu0 %v7052_v47 }
 0x562   :  { %6255 = vmatprep.subr.bf16.mxu0 %v7053_v1 }
 0x563   :  { %6276 = vmatpush3.bf16.msra.mxu1 %v7068_v5 }
 0x564   :  { %6277 = vmatprep.subr.bf16.mxu1 %v7069_v50 }
 0x565   :  { %6256 = vmatpush3.bf16.msra.mxu0 %v7054_v35 }
 0x566   :  { %6257 = vmatprep.subr.bf16.mxu0 %v7055_v34 }
 0x567   :  { %6278 = vmatpush3.bf16.msra.mxu1 %v7070_v37 }
 0x568   :  { %6279 = vmatprep.subr.bf16.mxu1 %v7071_v52 }
 0x569   :  { %6258 = vmatpush3.bf16.msra.mxu0 %v7056_v29 }
 0x56a   :  { %6259 = vmatprep.subr.bf16.mxu0 %v7057_v8 }
 0x56b   :  { %6280 = vmatpush3.bf16.msra.mxu1 %v7072_v49 }
 0x56c   :  { %6281 = vmatprep.subr.bf16.mxu1 %v7073_v0 }
 0x56d   :  { %6260 = vmatpush3.bf16.msra.mxu0 %v7058_v55 }
 0x56e   :  { %6261 = vmatprep.subr.bf16.mxu0 %v7059_v45 }
 0x56f   :  { %6282 = vmatpush3.bf16.msra.mxu1 %v7074_v56 }
 0x570   :  { %6283 = vmatprep.subr.bf16.mxu1 %v7075_v62 }
 0x571   :  { %6262 = vmatpush3.bf16.msra.mxu0 %v7060_v25  ;;  %v6173_v25 = vld [vmem:[%s8213_s8] ss:$0 sm:$0xff] }
 0x572   :  { %6263 = vmatprep.subr.bf16.mxu0 %v7061_v58 }
 0x573   :  { %6284 = vmatpush3.bf16.msra.mxu1 %v7076_v7 }
 0x574   :  { %6285 = vmatprep.subr.bf16.mxu1 %v7077_v61 }
 0x575   :  { %6264 = vmatpush3.bf16.msra.mxu0 %v7062_v28 }
 0x577   :  { %6286 = vmatpush3.bf16.msra.mxu1 %v7078_v39 }
 0x598   :  { %v5049_v21 = vpop.f32.mrf.mxu0 }
 0x599   :  { %v5050_v41 = vadd.f32 %v5049_v21, %v5009_v53 }
 0x59a   :  { %v5051_v27 = vpop.f32.mrf.mxu0  ;;  %v5090_v13 = vpop.f32.mrf.mxu1 }
 0x59b   :  { %v5052_v48 = vadd.f32 %v5051_v27, %v5011_v10  ;;  %v5091_v54 = vadd.f32 %v5090_v13, %v5050_v41 }
 0x59c   :  { %v5053_v4 = vpop.f32.mrf.mxu0  ;;  %v5092_v15 = vpop.f32.mrf.mxu1 }
 0x59d   :  { %v5093_v20 = vadd.f32 %v5092_v15, %v5052_v48  ;;  %v5261_v24 = vpack.c.bf16 %v5091_v54, %v5091_v54 }
 0x59e   :  { %v5054_v12 = vpop.f32.mrf.mxu0  ;;  %v5094_v43 = vpop.f32.mrf.mxu1 }
 0x59f   :  { %v5262_v44 = vpack.c.bf16 %v5093_v20, %v5093_v20 }
 0x5a0   :  { %v5095_v32 = vpop.f32.mrf.mxu1 }
 0x5a1   :  { %5560 = vmatprep.mubr.bf16.mxu0 %v5262_v44 }
 0x5a2   :  { %5561 = vmatmul.mubr.bf16.vlgmr.msra.gmra.mxu0 %v5261_v24 }
 0x5d8   :  { %v5131_v42 = vpop.f32.mrf.mxu0 }
 0x5d9   :  { %v5132_v47 = vadd.f32 %v5131_v42, %v3644_v2 }
 0x5da   :  { %v5133_v11 = vpop.f32.mrf.mxu0  ;;  %v5172_v3 = vpop.f32.mrf.mxu1 }
 0x5db   :  { %v5134_v40 = vadd.f32 %v5133_v11, %v3648_v18  ;;  %v5173_v57 = vadd.f32 %v5172_v3, %v5132_v47 }
 0x5dc   :  { %v5135_v23 = vpop.f32.mrf.mxu0  ;;  %v5174_v38 = vpop.f32.mrf.mxu1 }
 0x5dd   :  { %v5175_v36 = vadd.f32 %v5174_v38, %v5134_v40 }
 0x5de   :  { %v5136_v26 = vpop.f32.mrf.mxu0  ;;  %v5176_v59 = vpop.f32.mrf.mxu1 }
 0x5e0   :  { %v5177_v46 = vpop.f32.mrf.mxu1 }
 0x618   :  { %v5213_v1 = vpop.f32.mrf.mxu0 }
 0x619   :  { %v5214_v22 = vadd.f32 %v5213_v1, %v5173_v57 }
 0x61a   :  { %v5215_v51 = vpop.f32.mrf.mxu0  ;;  %v5254_v16 = vpop.f32.mrf.mxu1 }
 0x61b   :  { %v5216_v35 = vadd.f32 %v5215_v51, %v5175_v36  ;;  %v5255_v34 = vadd.f32 %v5254_v16, %v5214_v22 }
 0x61c   :  { %v5217_v19 = vpop.f32.mrf.mxu0  ;;  %v5256_v31 = vpop.f32.mrf.mxu1 }
 0x61d   :  { %v5257_v29 = vadd.f32 %v5256_v31, %v5216_v35  ;;  %v5263_v63 = vpack.c.bf16 %v5255_v34, %v5255_v34 }
 0x61e   :  { %v5218_v8 = vpop.f32.mrf.mxu0  ;;  %v5258_v5 = vpop.f32.mrf.mxu1 }
 0x61f   :  { %v5264_v50 = vpack.c.bf16 %v5257_v29, %v5257_v29 }
 0x620   :  { %v5259_v55 = vpop.f32.mrf.mxu1 }
 0x621   :  { %5600 = vmatprep.mubr.bf16.mxu1 %v5264_v50 }
 0x622   :  { %5601 = vmatmul.mubr.bf16.vlgmr.msra.gmra.mxu1 %v5263_v63 }
 0x662   :  { %v6265_v60 = vpop.f32.mrf.mxu0 }
 0x664   :  { %v6266_v9 = vpop.f32.mrf.mxu0 }
 0x665   :  { %v6267_v45 = vadd.f32 %v6266_v9, %v6265_v60 }
 0x666   :  { %v6268_v37 = vpop.f32.mrf.mxu0 }
 0x667   :  { %v5563_v0 = vadd.f32 %v6267_v45, %v6173_v25 }
 0x668   :  { %v6269_v52 = vpop.f32.mrf.mxu0 }
 0x6e2   :  { %v6287_v58 = vpop.f32.mrf.mxu1 }
 0x6e4   :  { %v6288_v49 = vpop.f32.mrf.mxu1 }
 0x6e5   :  { %v6289_v28 = vadd.f32 %v6288_v49, %v6287_v58 }
 0x6e6   :  { %v6290_v56 = vpop.f32.mrf.mxu1 }
 0x6e7   :  { %v5603_v6 = vadd.f32 %v6289_v28, %v5563_v0 }
 0x6e8   :  { %v6291_v33 = vpop.f32.mrf.mxu1 }
 0x6e9   :  { %5608 = vst [vmem:[#allocation16] sm:$0x3] %v5603_v6 }
 0x6ea   :  { %7230 = shalt.err (!%p7227_p11)
}
 0x6eb   :  { %5618 = dma.vmem_to_hbm [thread:$0]  %s5616_s30, 32, %s8214_s9, [#allocation6]  }
 0x6ec   :  { %7247 = dma.done.wait [#allocation6], 32  }
 0x6ed   :  { %7248 = vsyncadd [#allocation6], 4294967264 }
 0x6ee   :  { %5622 = vsyncpa [#allocation5], 1 }
 0x6ef   :  { %5623 = vsyncpa [#allocation8], 1 }
 0x6f0   :  { %5624 = vsyncpa [#allocation11], 1 }
 0x6f1   :  { %5625 = vsyncpa [#allocation14], 1 }
 0x6f2   :  { %5626 = vsyncpa [#allocation6], 1 }

</bundles_post_ra>
